<compile_context>
chip_gen: v7x
topology: tpu7x:2x2x1
jax: 0.10.0
libtpu: 0.0.40
codegen_flags: <defaults>
</compile_context>

<pallas_src>
import jax
import jax.numpy as jnp
from jax.experimental import pallas as pl
from jax.experimental.pallas import tpu as pltpu


def _make_lstm_kernel(depth, hdim, idim, odim, b_blk, t_blk):
    """Kernel body: one (batch block, time block) per grid step."""
    H = hdim

    def kernel(*refs):
        # refs: x, (wihT, whhT, bias) * depth, wprojT, out, h, c, act, gx
        x_ref = refs[0]
        w_refs = refs[1:1 + 3 * depth]
        wproj_ref = refs[1 + 3 * depth]
        out_ref = refs[2 + 3 * depth]
        h_ref = refs[3 + 3 * depth]      # (depth, b_blk, H)  persistent state
        c_ref = refs[4 + 3 * depth]      # (depth, b_blk, H)  persistent state
        act_ref = refs[5 + 3 * depth]    # (b_blk, t_blk, H)  inter-layer acts
        gx_ref = refs[6 + 3 * depth]     # (b_blk, t_blk, 4H) hoisted x@Wih + b

        t = pl.program_id(1)             # time-block index ("arbitrary" axis)

        @pl.when(t == 0)
        def _():
            # Fresh zero state at the start of every batch block's sequence.
            h_ref[...] = jnp.zeros_like(h_ref)
            c_ref[...] = jnp.zeros_like(c_ref)

        for l in range(depth):           # depth is small & static -> unrolled
            wihT = w_refs[3 * l][...]        # (in_l, 4H)
            whhT = w_refs[3 * l + 1][...]    # (H, 4H)
            bias = w_refs[3 * l + 2][...]    # (1, 4H) == b_ih + b_hh

            if l == 0:
                inp2d = x_ref[...].reshape(b_blk * t_blk, idim)
            else:
                inp2d = act_ref[...].reshape(b_blk * t_blk, H)

            # Hoisted input->hidden projection for the whole time block:
            # one MXU matmul per layer per block (bias added once, not per step).
            gx_ref[...] = (
                jnp.dot(inp2d, wihT, preferred_element_type=jnp.float32) + bias
            ).reshape(b_blk, t_blk, 4 * H)

            h_p = h_ref[l]               # (b_blk, H)
            c_p = c_ref[l]               # (b_blk, H)

            # Sequential recurrence over the block (static unroll, t_blk small).
            for s in range(t_blk):
                gates = gx_ref[:, s, :] + jnp.dot(
                    h_p, whhT, preferred_element_type=jnp.float32)  # (b_blk, 4H)
                # PyTorch gate order: input, forget, cell(g), output
                i = jax.nn.sigmoid(gates[:, 0 * H:1 * H])
                f = jax.nn.sigmoid(gates[:, 1 * H:2 * H])
                g = jnp.tanh(gates[:, 2 * H:3 * H])
                o = jax.nn.sigmoid(gates[:, 3 * H:4 * H])
                c_p = f * c_p + i * g
                h_p = o * jnp.tanh(c_p)
                act_ref[:, s, :] = h_p   # feeds next layer / projection

            h_ref[l] = h_p
            c_ref[l] = c_p

        # Output projection: one matmul per time block, one dense block store.
        top = act_ref[...].reshape(b_blk * t_blk, H)
        out_ref[...] = jnp.dot(
            top, wproj_ref[...], preferred_element_type=jnp.float32
        ).reshape(b_blk, t_blk, odim)

    return kernel


def lstm_forward_pallas(x_btd, params, *, t_blk=16, b_blk=None):
    """x_btd: (B, T, idim) float32 (batch_first). Returns (B, T, odim)."""
    B, T, idim = x_btd.shape
    depth = params["depth"]
    hdim = params["hdim"]
    odim = params["w_proj"].shape[0]

    # Cap the time block at the (8-rounded) sequence length so short sequences
    # don't compute padded timesteps; keep it a multiple of 8 for sublane-aligned
    # reshapes inside the kernel.
    t_round = ((T + 7) // 8) * 8
    t_blk = min(t_blk, t_round)
    assert t_blk % 8 == 0, "t_blk must be a multiple of 8 (sublane alignment)"

    if b_blk is None:
        # Split batch into 2 shards when possible so v7x's two TensorCores each
        # run an independent recurrence (harmless elsewhere).
        b_blk = B // 2 if (B % 2 == 0 and B >= 2) else B
    assert B % b_blk == 0, "b_blk must divide B"

    # Pad time so it divides evenly into blocks; the LSTM is causal, so trailing
    # zero padding cannot affect the real outputs we keep.
    T_pad = ((T + t_blk - 1) // t_blk) * t_blk
    x_p = x_btd if T_pad == T else jnp.pad(
        x_btd, ((0, 0), (0, T_pad - T), (0, 0)))

    grid = (B // b_blk, T_pad // t_blk)

    # Pre-transpose weights so the kernel does plain (M, K) @ (K, N) matmuls.
    weight_args = []
    in_specs = [pl.BlockSpec((b_blk, t_blk, idim), lambda b, t: (b, t, 0))]
    for l in range(depth):
        wihT = params[f"w_ih_{l}"].T                         # (in_l, 4H)
        whhT = params[f"w_hh_{l}"].T                         # (H, 4H)
        bias = (params[f"b_ih_{l}"] + params[f"b_hh_{l}"]).reshape(1, 4 * hdim)
        weight_args += [wihT, whhT, bias]
        in_specs += [
            pl.BlockSpec(wihT.shape, lambda b, t: (0, 0)),
            pl.BlockSpec(whhT.shape, lambda b, t: (0, 0)),
            pl.BlockSpec(bias.shape, lambda b, t: (0, 0)),
        ]
    wprojT = params["w_proj"].T                              # (H, odim)
    weight_args.append(wprojT)
    in_specs.append(pl.BlockSpec(wprojT.shape, lambda b, t: (0, 0)))

    out = pl.pallas_call(
        _make_lstm_kernel(depth, hdim, idim, odim, b_blk, t_blk),
        out_shape=jax.ShapeDtypeStruct((B, T_pad, odim), jnp.float32),
        grid_spec=pltpu.PrefetchScalarGridSpec(
            num_scalar_prefetch=0,
            grid=grid,
            in_specs=in_specs,
            out_specs=pl.BlockSpec((b_blk, t_blk, odim), lambda b, t: (b, t, 0)),
            scratch_shapes=[
                pltpu.VMEM((depth, b_blk, hdim), jnp.float32),      # h state
                pltpu.VMEM((depth, b_blk, hdim), jnp.float32),      # c state
                pltpu.VMEM((b_blk, t_blk, hdim), jnp.float32),      # layer acts
                pltpu.VMEM((b_blk, t_blk, 4 * hdim), jnp.float32),  # x@Wih + b
            ],
        ),
        compiler_params=pltpu.CompilerParams(
            dimension_semantics=("parallel", "arbitrary"),  # batch || , time seq
            vmem_limit_bytes=32 * 1024 * 1024),             # safe on v5e/v6e/v7x
    )(x_p, *weight_args)

    return out[:, :T, :]


def lstm_forward_ref(x_btd, params):
    """Pure-JAX reference (lax.scan) matching PyTorch nn.LSTM + Linear(bias=False)."""
    depth, hdim = params["depth"], params["hdim"]
    B, T, _ = x_btd.shape

    def step(carry, x_t):
        h_all, c_all = carry
        inp = x_t
        new_h, new_c = [], []
        for l in range(depth):
            gates = (inp @ params[f"w_ih_{l}"].T + params[f"b_ih_{l}"]
                     + h_all[l] @ params[f"w_hh_{l}"].T + params[f"b_hh_{l}"])
            i, f, g, o = jnp.split(gates, 4, axis=-1)
            i, f, o = jax.nn.sigmoid(i), jax.nn.sigmoid(f), jax.nn.sigmoid(o)
            g = jnp.tanh(g)
            c = f * c_all[l] + i * g
            h = o * jnp.tanh(c)
            new_h.append(h)
            new_c.append(c)
            inp = h
        return (jnp.stack(new_h), jnp.stack(new_c)), inp

    h0 = jnp.zeros((depth, B, hdim), jnp.float32)
    c0 = jnp.zeros((depth, B, hdim), jnp.float32)
    _, out_tbd = jax.lax.scan(step, (h0, c0), jnp.transpose(x_btd, (1, 0, 2)))
    out_tbd = out_tbd @ params["w_proj"].T
    return jnp.transpose(out_tbd, (1, 0, 2))


def init_params(key, idim, hdim, odim, depth):
    """Deterministic init, PyTorch-style U(-1/sqrt(hdim), 1/sqrt(hdim))."""
    params = {"depth": depth, "hdim": hdim}
    bound = 1.0 / jnp.sqrt(jnp.float32(hdim))
    for l in range(depth):
        in_l = idim if l == 0 else hdim
        key, k1, k2, k3, k4 = jax.random.split(key, 5)
        params[f"w_ih_{l}"] = jax.random.uniform(k1, (4 * hdim, in_l),
                                                 jnp.float32, -bound, bound)
        params[f"w_hh_{l}"] = jax.random.uniform(k2, (4 * hdim, hdim),
                                                 jnp.float32, -bound, bound)
        params[f"b_ih_{l}"] = jax.random.uniform(k3, (4 * hdim,),
                                                 jnp.float32, -bound, bound)
        params[f"b_hh_{l}"] = jax.random.uniform(k4, (4 * hdim,),
                                                 jnp.float32, -bound, bound)
    key, kp = jax.random.split(key)
    params["w_proj"] = jax.random.uniform(kp, (odim, hdim),
                                          jnp.float32, -bound, bound)
    return params


if __name__ == "__main__":
    B, T, idim, hdim, odim, depth = 2, 32, 8, 32, 8, 2

    key = jax.random.PRNGKey(0)
    key, kx = jax.random.split(key)
    x = jax.random.normal(kx, (B, T, idim), jnp.float32)
    params = init_params(key, idim, hdim, odim, depth)

    out = lstm_forward_pallas(x, params)
    out = jax.block_until_ready(out)

    ref = lstm_forward_ref(x, params)
    assert out.shape == (B, T, odim)
    assert jnp.allclose(out, ref, atol=1e-4, rtol=1e-4)
    print("KERNEL_OK")
</pallas_src>

<mosaic_0001>
module attributes {stable_mosaic.version = 11 : i64} {
  func.func @kernel(%arg0: i32, %arg1: i32, %arg2: memref<1x16x8xf32, #tpu.memory_space<vmem>>, %arg3: memref<8x128xf32, #tpu.memory_space<vmem>>, %arg4: memref<32x128xf32, #tpu.memory_space<vmem>>, %arg5: memref<1x128xf32, #tpu.memory_space<vmem>>, %arg6: memref<32x128xf32, #tpu.memory_space<vmem>>, %arg7: memref<32x128xf32, #tpu.memory_space<vmem>>, %arg8: memref<1x128xf32, #tpu.memory_space<vmem>>, %arg9: memref<32x8xf32, #tpu.memory_space<vmem>>, %arg10: memref<1x16x8xf32, #tpu.memory_space<vmem>>, %arg11: memref<2x1x32xf32, #tpu.memory_space<vmem>>, %arg12: memref<2x1x32xf32, #tpu.memory_space<vmem>>, %arg13: memref<1x16x32xf32, #tpu.memory_space<vmem>>, %arg14: memref<1x16x128xf32, #tpu.memory_space<vmem>>) attributes {dimension_semantics = [#tpu.dimension_semantics<parallel>, #tpu.dimension_semantics<arbitrary>], iteration_bounds = array<i64: 2, 2>, scalar_prefetch = 0 : i64, scratch_operands = 4 : i64, tpu.core_type = #tpu.core_type<tc>, window_params = [{transform_indices = @transform_0, window_bounds = array<i64: 1, 16, 8>}, {pipeline_mode = #tpu.pipeline_mode<synchronous>, transform_indices = @transform_1, window_bounds = array<i64: 8, 128>}, {pipeline_mode = #tpu.pipeline_mode<synchronous>, transform_indices = @transform_2, window_bounds = array<i64: 32, 128>}, {pipeline_mode = #tpu.pipeline_mode<synchronous>, transform_indices = @transform_3, window_bounds = array<i64: 1, 128>}, {pipeline_mode = #tpu.pipeline_mode<synchronous>, transform_indices = @transform_4, window_bounds = array<i64: 32, 128>}, {pipeline_mode = #tpu.pipeline_mode<synchronous>, transform_indices = @transform_5, window_bounds = array<i64: 32, 128>}, {pipeline_mode = #tpu.pipeline_mode<synchronous>, transform_indices = @transform_6, window_bounds = array<i64: 1, 128>}, {pipeline_mode = #tpu.pipeline_mode<synchronous>, transform_indices = @transform_7, window_bounds = array<i64: 32, 8>}, {transform_indices = @transform_8, window_bounds = array<i64: 1, 16, 8>}]} {
    %c0_i32 = arith.constant 0 : i32
    %0 = arith.cmpi eq, %arg1, %c0_i32 : i32
    %1 = arith.extui %0 : i1 to i32
    %c0_i32_0 = arith.constant 0 : i32
    %2 = arith.cmpi ne, %1, %c0_i32_0 : i32
    scf.if %2 {
      %cst_363 = arith.constant 0.000000e+00 : f32
      %1073 = vector.broadcast %cst_363 : f32 to vector<2x1x32xf32>
      %c0_364 = arith.constant 0 : index
      %c0_365 = arith.constant 0 : index
      %c0_366 = arith.constant 0 : index
      %1074 = vector.load %arg11[%c0_364, %c0_365, %c0_366] : memref<2x1x32xf32, #tpu.memory_space<vmem>>, vector<2x1x32xf32>
      tpu.vector_store %arg11[%c0_364, %c0_365, %c0_366], %1073 {strides = array<i32>} : memref<2x1x32xf32, #tpu.memory_space<vmem>>, vector<2x1x32xf32>,
      %cst_367 = arith.constant 0.000000e+00 : f32
      %1075 = vector.broadcast %cst_367 : f32 to vector<2x1x32xf32>
      %c0_368 = arith.constant 0 : index
      %c0_369 = arith.constant 0 : index
      %c0_370 = arith.constant 0 : index
      %1076 = vector.load %arg12[%c0_368, %c0_369, %c0_370] : memref<2x1x32xf32, #tpu.memory_space<vmem>>, vector<2x1x32xf32>
      tpu.vector_store %arg12[%c0_368, %c0_369, %c0_370], %1075 {strides = array<i32>} : memref<2x1x32xf32, #tpu.memory_space<vmem>>, vector<2x1x32xf32>,
    } else {
    }
    %c0 = arith.constant 0 : index
    %c0_1 = arith.constant 0 : index
    %3 = vector.load %arg3[%c0, %c0_1] : memref<8x128xf32, #tpu.memory_space<vmem>>, vector<8x128xf32>
    %c0_2 = arith.constant 0 : index
    %c0_3 = arith.constant 0 : index
    %4 = vector.load %arg4[%c0_2, %c0_3] : memref<32x128xf32, #tpu.memory_space<vmem>>, vector<32x128xf32>
    %c0_4 = arith.constant 0 : index
    %c0_5 = arith.constant 0 : index
    %5 = vector.load %arg5[%c0_4, %c0_5] : memref<1x128xf32, #tpu.memory_space<vmem>>, vector<1x128xf32>
    %c0_6 = arith.constant 0 : index
    %c0_7 = arith.constant 0 : index
    %c0_8 = arith.constant 0 : index
    %6 = vector.load %arg2[%c0_6, %c0_7, %c0_8] : memref<1x16x8xf32, #tpu.memory_space<vmem>>, vector<1x16x8xf32>
    %7 = vector.shape_cast %6 : vector<1x16x8xf32> to vector<16x8xf32>
    %cst = arith.constant dense<0.000000e+00> : vector<16x128xf32>
    %8 = tpu.matmul %7, %3, %cst {dimension_numbers = #tpu.dot_dimension_numbers<[1], [0], [0], [1], [0, 0, 1, 1], [], []>} : vector<16x8xf32>, vector<8x128xf32>, vector<16x128xf32> -> vector<16x128xf32>
    %9 = vector.broadcast %5 : vector<1x128xf32> to vector<16x128xf32>
    %10 = arith.addf %8, %9 : vector<16x128xf32>
    %11 = vector.shape_cast %10 : vector<16x128xf32> to vector<1x16x128xf32>
    %c0_9 = arith.constant 0 : index
    %c0_10 = arith.constant 0 : index
    %c0_11 = arith.constant 0 : index
    %12 = vector.load %arg14[%c0_9, %c0_10, %c0_11] : memref<1x16x128xf32, #tpu.memory_space<vmem>>, vector<1x16x128xf32>
    tpu.vector_store %arg14[%c0_9, %c0_10, %c0_11], %11 {strides = array<i32>} : memref<1x16x128xf32, #tpu.memory_space<vmem>>, vector<1x16x128xf32>,
    %c0_12 = arith.constant 0 : index
    %c0_13 = arith.constant 0 : index
    %c0_14 = arith.constant 0 : index
    %13 = vector.load %arg11[%c0_12, %c0_13, %c0_14] : memref<2x1x32xf32, #tpu.memory_space<vmem>>, vector<1x1x32xf32>
    %14 = vector.shape_cast %13 : vector<1x1x32xf32> to vector<1x32xf32>
    %c0_15 = arith.constant 0 : index
    %c0_16 = arith.constant 0 : index
    %c0_17 = arith.constant 0 : index
    %15 = vector.load %arg12[%c0_15, %c0_16, %c0_17] : memref<2x1x32xf32, #tpu.memory_space<vmem>>, vector<1x1x32xf32>
    %16 = vector.shape_cast %15 : vector<1x1x32xf32> to vector<1x32xf32>
    %c0_18 = arith.constant 0 : index
    %c0_19 = arith.constant 0 : index
    %c0_20 = arith.constant 0 : index
    %17 = vector.load %arg14[%c0_18, %c0_19, %c0_20] : memref<1x16x128xf32, #tpu.memory_space<vmem>>, vector<1x1x128xf32>
    %18 = vector.shape_cast %17 : vector<1x1x128xf32> to vector<1x128xf32>
    %cst_21 = arith.constant dense<0.000000e+00> : vector<1x128xf32>
    %19 = tpu.matmul %14, %4, %cst_21 {dimension_numbers = #tpu.dot_dimension_numbers<[1], [0], [0], [1], [0, 0, 1, 1], [], []>} : vector<1x32xf32>, vector<32x128xf32>, vector<1x128xf32> -> vector<1x128xf32>
    %20 = arith.addf %18, %19 : vector<1x128xf32>
    %21 = vector.extract_strided_slice %20 {offsets = [0, 0], sizes = [1, 32], strides = [1, 1]} : vector<1x128xf32> to vector<1x32xf32>
    %22 = arith.negf %21 : vector<1x32xf32>
    %23 = math.exp %22 : vector<1x32xf32>
    %cst_22 = arith.constant 1.000000e+00 : f32
    %24 = vector.broadcast %cst_22 : f32 to vector<1x32xf32>
    %25 = arith.addf %24, %23 : vector<1x32xf32>
    %26 = arith.divf %24, %25 : vector<1x32xf32>
    %27 = vector.extract_strided_slice %20 {offsets = [0, 32], sizes = [1, 32], strides = [1, 1]} : vector<1x128xf32> to vector<1x32xf32>
    %28 = arith.negf %27 : vector<1x32xf32>
    %29 = math.exp %28 : vector<1x32xf32>
    %cst_23 = arith.constant 1.000000e+00 : f32
    %30 = vector.broadcast %cst_23 : f32 to vector<1x32xf32>
    %31 = arith.addf %30, %29 : vector<1x32xf32>
    %32 = arith.divf %30, %31 : vector<1x32xf32>
    %33 = vector.extract_strided_slice %20 {offsets = [0, 64], sizes = [1, 32], strides = [1, 1]} : vector<1x128xf32> to vector<1x32xf32>
    %34 = math.tanh %33 : vector<1x32xf32>
    %35 = vector.extract_strided_slice %20 {offsets = [0, 96], sizes = [1, 32], strides = [1, 1]} : vector<1x128xf32> to vector<1x32xf32>
    %36 = arith.negf %35 : vector<1x32xf32>
    %37 = math.exp %36 : vector<1x32xf32>
    %cst_24 = arith.constant 1.000000e+00 : f32
    %38 = vector.broadcast %cst_24 : f32 to vector<1x32xf32>
    %39 = arith.addf %38, %37 : vector<1x32xf32>
    %40 = arith.divf %38, %39 : vector<1x32xf32>
    %41 = arith.mulf %32, %16 : vector<1x32xf32>
    %42 = arith.mulf %26, %34 : vector<1x32xf32>
    %43 = arith.addf %41, %42 : vector<1x32xf32>
    %44 = math.tanh %43 : vector<1x32xf32>
    %45 = arith.mulf %40, %44 : vector<1x32xf32>
    %c0_25 = arith.constant 0 : index
    %c0_26 = arith.constant 0 : index
    %c0_27 = arith.constant 0 : index
    %46 = vector.load %arg13[%c0_25, %c0_26, %c0_27] : memref<1x16x32xf32, #tpu.memory_space<vmem>>, vector<1x1x32xf32>
    %47 = vector.shape_cast %46 : vector<1x1x32xf32> to vector<1x32xf32>
    %48 = vector.shape_cast %45 : vector<1x32xf32> to vector<1x1x32xf32>
    tpu.vector_store %arg13[%c0_25, %c0_26, %c0_27], %48 {strides = array<i32>} : memref<1x16x32xf32, #tpu.memory_space<vmem>>, vector<1x1x32xf32>,
    %c0_28 = arith.constant 0 : index
    %c1 = arith.constant 1 : index
    %c0_29 = arith.constant 0 : index
    %49 = vector.load %arg14[%c0_28, %c1, %c0_29] : memref<1x16x128xf32, #tpu.memory_space<vmem>>, vector<1x1x128xf32>
    %50 = vector.shape_cast %49 : vector<1x1x128xf32> to vector<1x128xf32>
    %cst_30 = arith.constant dense<0.000000e+00> : vector<1x128xf32>
    %51 = tpu.matmul %45, %4, %cst_30 {dimension_numbers = #tpu.dot_dimension_numbers<[1], [0], [0], [1], [0, 0, 1, 1], [], []>} : vector<1x32xf32>, vector<32x128xf32>, vector<1x128xf32> -> vector<1x128xf32>
    %52 = arith.addf %50, %51 : vector<1x128xf32>
    %53 = vector.extract_strided_slice %52 {offsets = [0, 0], sizes = [1, 32], strides = [1, 1]} : vector<1x128xf32> to vector<1x32xf32>
    %54 = arith.negf %53 : vector<1x32xf32>
    %55 = math.exp %54 : vector<1x32xf32>
    %cst_31 = arith.constant 1.000000e+00 : f32
    %56 = vector.broadcast %cst_31 : f32 to vector<1x32xf32>
    %57 = arith.addf %56, %55 : vector<1x32xf32>
    %58 = arith.divf %56, %57 : vector<1x32xf32>
    %59 = vector.extract_strided_slice %52 {offsets = [0, 32], sizes = [1, 32], strides = [1, 1]} : vector<1x128xf32> to vector<1x32xf32>
    %60 = arith.negf %59 : vector<1x32xf32>
    %61 = math.exp %60 : vector<1x32xf32>
    %cst_32 = arith.constant 1.000000e+00 : f32
    %62 = vector.broadcast %cst_32 : f32 to vector<1x32xf32>
    %63 = arith.addf %62, %61 : vector<1x32xf32>
    %64 = arith.divf %62, %63 : vector<1x32xf32>
    %65 = vector.extract_strided_slice %52 {offsets = [0, 64], sizes = [1, 32], strides = [1, 1]} : vector<1x128xf32> to vector<1x32xf32>
    %66 = math.tanh %65 : vector<1x32xf32>
    %67 = vector.extract_strided_slice %52 {offsets = [0, 96], sizes = [1, 32], strides = [1, 1]} : vector<1x128xf32> to vector<1x32xf32>
    %68 = arith.negf %67 : vector<1x32xf32>
    %69 = math.exp %68 : vector<1x32xf32>
    %cst_33 = arith.constant 1.000000e+00 : f32
    %70 = vector.broadcast %cst_33 : f32 to vector<1x32xf32>
    %71 = arith.addf %70, %69 : vector<1x32xf32>
    %72 = arith.divf %70, %71 : vector<1x32xf32>
    %73 = arith.mulf %64, %43 : vector<1x32xf32>
    %74 = arith.mulf %58, %66 : vector<1x32xf32>
    %75 = arith.addf %73, %74 : vector<1x32xf32>
    %76 = math.tanh %75 : vector<1x32xf32>
    %77 = arith.mulf %72, %76 : vector<1x32xf32>
    %c0_34 = arith.constant 0 : index
    %c1_35 = arith.constant 1 : index
    %c0_36 = arith.constant 0 : index
    %78 = vector.load %arg13[%c0_34, %c1_35, %c0_36] : memref<1x16x32xf32, #tpu.memory_space<vmem>>, vector<1x1x32xf32>
    %79 = vector.shape_cast %78 : vector<1x1x32xf32> to vector<1x32xf32>
    %80 = vector.shape_cast %77 : vector<1x32xf32> to vector<1x1x32xf32>
    tpu.vector_store %arg13[%c0_34, %c1_35, %c0_36], %80 {strides = array<i32>} : memref<1x16x32xf32, #tpu.memory_space<vmem>>, vector<1x1x32xf32>,
    %c0_37 = arith.constant 0 : index
    %c2 = arith.constant 2 : index
    %c0_38 = arith.constant 0 : index
    %81 = vector.load %arg14[%c0_37, %c2, %c0_38] : memref<1x16x128xf32, #tpu.memory_space<vmem>>, vector<1x1x128xf32>
    %82 = vector.shape_cast %81 : vector<1x1x128xf32> to vector<1x128xf32>
    %cst_39 = arith.constant dense<0.000000e+00> : vector<1x128xf32>
    %83 = tpu.matmul %77, %4, %cst_39 {dimension_numbers = #tpu.dot_dimension_numbers<[1], [0], [0], [1], [0, 0, 1, 1], [], []>} : vector<1x32xf32>, vector<32x128xf32>, vector<1x128xf32> -> vector<1x128xf32>
    %84 = arith.addf %82, %83 : vector<1x128xf32>
    %85 = vector.extract_strided_slice %84 {offsets = [0, 0], sizes = [1, 32], strides = [1, 1]} : vector<1x128xf32> to vector<1x32xf32>
    %86 = arith.negf %85 : vector<1x32xf32>
    %87 = math.exp %86 : vector<1x32xf32>
    %cst_40 = arith.constant 1.000000e+00 : f32
    %88 = vector.broadcast %cst_40 : f32 to vector<1x32xf32>
    %89 = arith.addf %88, %87 : vector<1x32xf32>
    %90 = arith.divf %88, %89 : vector<1x32xf32>
    %91 = vector.extract_strided_slice %84 {offsets = [0, 32], sizes = [1, 32], strides = [1, 1]} : vector<1x128xf32> to vector<1x32xf32>
    %92 = arith.negf %91 : vector<1x32xf32>
    %93 = math.exp %92 : vector<1x32xf32>
    %cst_41 = arith.constant 1.000000e+00 : f32
    %94 = vector.broadcast %cst_41 : f32 to vector<1x32xf32>
    %95 = arith.addf %94, %93 : vector<1x32xf32>
    %96 = arith.divf %94, %95 : vector<1x32xf32>
    %97 = vector.extract_strided_slice %84 {offsets = [0, 64], sizes = [1, 32], strides = [1, 1]} : vector<1x128xf32> to vector<1x32xf32>
    %98 = math.tanh %97 : vector<1x32xf32>
    %99 = vector.extract_strided_slice %84 {offsets = [0, 96], sizes = [1, 32], strides = [1, 1]} : vector<1x128xf32> to vector<1x32xf32>
    %100 = arith.negf %99 : vector<1x32xf32>
    %101 = math.exp %100 : vector<1x32xf32>
    %cst_42 = arith.constant 1.000000e+00 : f32
    %102 = vector.broadcast %cst_42 : f32 to vector<1x32xf32>
    %103 = arith.addf %102, %101 : vector<1x32xf32>
    %104 = arith.divf %102, %103 : vector<1x32xf32>
    %105 = arith.mulf %96, %75 : vector<1x32xf32>
    %106 = arith.mulf %90, %98 : vector<1x32xf32>
    %107 = arith.addf %105, %106 : vector<1x32xf32>
    %108 = math.tanh %107 : vector<1x32xf32>
    %109 = arith.mulf %104, %108 : vector<1x32xf32>
    %c0_43 = arith.constant 0 : index
    %c2_44 = arith.constant 2 : index
    %c0_45 = arith.constant 0 : index
    %110 = vector.load %arg13[%c0_43, %c2_44, %c0_45] : memref<1x16x32xf32, #tpu.memory_space<vmem>>, vector<1x1x32xf32>
    %111 = vector.shape_cast %110 : vector<1x1x32xf32> to vector<1x32xf32>
    %112 = vector.shape_cast %109 : vector<1x32xf32> to vector<1x1x32xf32>
    tpu.vector_store %arg13[%c0_43, %c2_44, %c0_45], %112 {strides = array<i32>} : memref<1x16x32xf32, #tpu.memory_space<vmem>>, vector<1x1x32xf32>,
    %c0_46 = arith.constant 0 : index
    %c3 = arith.constant 3 : index
    %c0_47 = arith.constant 0 : index
    %113 = vector.load %arg14[%c0_46, %c3, %c0_47] : memref<1x16x128xf32, #tpu.memory_space<vmem>>, vector<1x1x128xf32>
    %114 = vector.shape_cast %113 : vector<1x1x128xf32> to vector<1x128xf32>
    %cst_48 = arith.constant dense<0.000000e+00> : vector<1x128xf32>
    %115 = tpu.matmul %109, %4, %cst_48 {dimension_numbers = #tpu.dot_dimension_numbers<[1], [0], [0], [1], [0, 0, 1, 1], [], []>} : vector<1x32xf32>, vector<32x128xf32>, vector<1x128xf32> -> vector<1x128xf32>
    %116 = arith.addf %114, %115 : vector<1x128xf32>
    %117 = vector.extract_strided_slice %116 {offsets = [0, 0], sizes = [1, 32], strides = [1, 1]} : vector<1x128xf32> to vector<1x32xf32>
    %118 = arith.negf %117 : vector<1x32xf32>
    %119 = math.exp %118 : vector<1x32xf32>
    %cst_49 = arith.constant 1.000000e+00 : f32
    %120 = vector.broadcast %cst_49 : f32 to vector<1x32xf32>
    %121 = arith.addf %120, %119 : vector<1x32xf32>
    %122 = arith.divf %120, %121 : vector<1x32xf32>
    %123 = vector.extract_strided_slice %116 {offsets = [0, 32], sizes = [1, 32], strides = [1, 1]} : vector<1x128xf32> to vector<1x32xf32>
    %124 = arith.negf %123 : vector<1x32xf32>
    %125 = math.exp %124 : vector<1x32xf32>
    %cst_50 = arith.constant 1.000000e+00 : f32
    %126 = vector.broadcast %cst_50 : f32 to vector<1x32xf32>
    %127 = arith.addf %126, %125 : vector<1x32xf32>
    %128 = arith.divf %126, %127 : vector<1x32xf32>
    %129 = vector.extract_strided_slice %116 {offsets = [0, 64], sizes = [1, 32], strides = [1, 1]} : vector<1x128xf32> to vector<1x32xf32>
    %130 = math.tanh %129 : vector<1x32xf32>
    %131 = vector.extract_strided_slice %116 {offsets = [0, 96], sizes = [1, 32], strides = [1, 1]} : vector<1x128xf32> to vector<1x32xf32>
    %132 = arith.negf %131 : vector<1x32xf32>
    %133 = math.exp %132 : vector<1x32xf32>
    %cst_51 = arith.constant 1.000000e+00 : f32
    %134 = vector.broadcast %cst_51 : f32 to vector<1x32xf32>
    %135 = arith.addf %134, %133 : vector<1x32xf32>
    %136 = arith.divf %134, %135 : vector<1x32xf32>
    %137 = arith.mulf %128, %107 : vector<1x32xf32>
    %138 = arith.mulf %122, %130 : vector<1x32xf32>
    %139 = arith.addf %137, %138 : vector<1x32xf32>
    %140 = math.tanh %139 : vector<1x32xf32>
    %141 = arith.mulf %136, %140 : vector<1x32xf32>
    %c0_52 = arith.constant 0 : index
    %c3_53 = arith.constant 3 : index
    %c0_54 = arith.constant 0 : index
    %142 = vector.load %arg13[%c0_52, %c3_53, %c0_54] : memref<1x16x32xf32, #tpu.memory_space<vmem>>, vector<1x1x32xf32>
    %143 = vector.shape_cast %142 : vector<1x1x32xf32> to vector<1x32xf32>
    %144 = vector.shape_cast %141 : vector<1x32xf32> to vector<1x1x32xf32>
    tpu.vector_store %arg13[%c0_52, %c3_53, %c0_54], %144 {strides = array<i32>} : memref<1x16x32xf32, #tpu.memory_space<vmem>>, vector<1x1x32xf32>,
    %c0_55 = arith.constant 0 : index
    %c4 = arith.constant 4 : index
    %c0_56 = arith.constant 0 : index
    %145 = vector.load %arg14[%c0_55, %c4, %c0_56] : memref<1x16x128xf32, #tpu.memory_space<vmem>>, vector<1x1x128xf32>
    %146 = vector.shape_cast %145 : vector<1x1x128xf32> to vector<1x128xf32>
    %cst_57 = arith.constant dense<0.000000e+00> : vector<1x128xf32>
    %147 = tpu.matmul %141, %4, %cst_57 {dimension_numbers = #tpu.dot_dimension_numbers<[1], [0], [0], [1], [0, 0, 1, 1], [], []>} : vector<1x32xf32>, vector<32x128xf32>, vector<1x128xf32> -> vector<1x128xf32>
    %148 = arith.addf %146, %147 : vector<1x128xf32>
    %149 = vector.extract_strided_slice %148 {offsets = [0, 0], sizes = [1, 32], strides = [1, 1]} : vector<1x128xf32> to vector<1x32xf32>
    %150 = arith.negf %149 : vector<1x32xf32>
    %151 = math.exp %150 : vector<1x32xf32>
    %cst_58 = arith.constant 1.000000e+00 : f32
    %152 = vector.broadcast %cst_58 : f32 to vector<1x32xf32>
    %153 = arith.addf %152, %151 : vector<1x32xf32>
    %154 = arith.divf %152, %153 : vector<1x32xf32>
    %155 = vector.extract_strided_slice %148 {offsets = [0, 32], sizes = [1, 32], strides = [1, 1]} : vector<1x128xf32> to vector<1x32xf32>
    %156 = arith.negf %155 : vector<1x32xf32>
    %157 = math.exp %156 : vector<1x32xf32>
    %cst_59 = arith.constant 1.000000e+00 : f32
    %158 = vector.broadcast %cst_59 : f32 to vector<1x32xf32>
    %159 = arith.addf %158, %157 : vector<1x32xf32>
    %160 = arith.divf %158, %159 : vector<1x32xf32>
    %161 = vector.extract_strided_slice %148 {offsets = [0, 64], sizes = [1, 32], strides = [1, 1]} : vector<1x128xf32> to vector<1x32xf32>
    %162 = math.tanh %161 : vector<1x32xf32>
    %163 = vector.extract_strided_slice %148 {offsets = [0, 96], sizes = [1, 32], strides = [1, 1]} : vector<1x128xf32> to vector<1x32xf32>
    %164 = arith.negf %163 : vector<1x32xf32>
    %165 = math.exp %164 : vector<1x32xf32>
    %cst_60 = arith.constant 1.000000e+00 : f32
    %166 = vector.broadcast %cst_60 : f32 to vector<1x32xf32>
    %167 = arith.addf %166, %165 : vector<1x32xf32>
    %168 = arith.divf %166, %167 : vector<1x32xf32>
    %169 = arith.mulf %160, %139 : vector<1x32xf32>
    %170 = arith.mulf %154, %162 : vector<1x32xf32>
    %171 = arith.addf %169, %170 : vector<1x32xf32>
    %172 = math.tanh %171 : vector<1x32xf32>
    %173 = arith.mulf %168, %172 : vector<1x32xf32>
    %c0_61 = arith.constant 0 : index
    %c4_62 = arith.constant 4 : index
    %c0_63 = arith.constant 0 : index
    %174 = vector.load %arg13[%c0_61, %c4_62, %c0_63] : memref<1x16x32xf32, #tpu.memory_space<vmem>>, vector<1x1x32xf32>
    %175 = vector.shape_cast %174 : vector<1x1x32xf32> to vector<1x32xf32>
    %176 = vector.shape_cast %173 : vector<1x32xf32> to vector<1x1x32xf32>
    tpu.vector_store %arg13[%c0_61, %c4_62, %c0_63], %176 {strides = array<i32>} : memref<1x16x32xf32, #tpu.memory_space<vmem>>, vector<1x1x32xf32>,
    %c0_64 = arith.constant 0 : index
    %c5 = arith.constant 5 : index
    %c0_65 = arith.constant 0 : index
    %177 = vector.load %arg14[%c0_64, %c5, %c0_65] : memref<1x16x128xf32, #tpu.memory_space<vmem>>, vector<1x1x128xf32>
    %178 = vector.shape_cast %177 : vector<1x1x128xf32> to vector<1x128xf32>
    %cst_66 = arith.constant dense<0.000000e+00> : vector<1x128xf32>
    %179 = tpu.matmul %173, %4, %cst_66 {dimension_numbers = #tpu.dot_dimension_numbers<[1], [0], [0], [1], [0, 0, 1, 1], [], []>} : vector<1x32xf32>, vector<32x128xf32>, vector<1x128xf32> -> vector<1x128xf32>
    %180 = arith.addf %178, %179 : vector<1x128xf32>
    %181 = vector.extract_strided_slice %180 {offsets = [0, 0], sizes = [1, 32], strides = [1, 1]} : vector<1x128xf32> to vector<1x32xf32>
    %182 = arith.negf %181 : vector<1x32xf32>
    %183 = math.exp %182 : vector<1x32xf32>
    %cst_67 = arith.constant 1.000000e+00 : f32
    %184 = vector.broadcast %cst_67 : f32 to vector<1x32xf32>
    %185 = arith.addf %184, %183 : vector<1x32xf32>
    %186 = arith.divf %184, %185 : vector<1x32xf32>
    %187 = vector.extract_strided_slice %180 {offsets = [0, 32], sizes = [1, 32], strides = [1, 1]} : vector<1x128xf32> to vector<1x32xf32>
    %188 = arith.negf %187 : vector<1x32xf32>
    %189 = math.exp %188 : vector<1x32xf32>
    %cst_68 = arith.constant 1.000000e+00 : f32
    %190 = vector.broadcast %cst_68 : f32 to vector<1x32xf32>
    %191 = arith.addf %190, %189 : vector<1x32xf32>
    %192 = arith.divf %190, %191 : vector<1x32xf32>
    %193 = vector.extract_strided_slice %180 {offsets = [0, 64], sizes = [1, 32], strides = [1, 1]} : vector<1x128xf32> to vector<1x32xf32>
    %194 = math.tanh %193 : vector<1x32xf32>
    %195 = vector.extract_strided_slice %180 {offsets = [0, 96], sizes = [1, 32], strides = [1, 1]} : vector<1x128xf32> to vector<1x32xf32>
    %196 = arith.negf %195 : vector<1x32xf32>
    %197 = math.exp %196 : vector<1x32xf32>
    %cst_69 = arith.constant 1.000000e+00 : f32
    %198 = vector.broadcast %cst_69 : f32 to vector<1x32xf32>
    %199 = arith.addf %198, %197 : vector<1x32xf32>
    %200 = arith.divf %198, %199 : vector<1x32xf32>
    %201 = arith.mulf %192, %171 : vector<1x32xf32>
    %202 = arith.mulf %186, %194 : vector<1x32xf32>
    %203 = arith.addf %201, %202 : vector<1x32xf32>
    %204 = math.tanh %203 : vector<1x32xf32>
    %205 = arith.mulf %200, %204 : vector<1x32xf32>
    %c0_70 = arith.constant 0 : index
    %c5_71 = arith.constant 5 : index
    %c0_72 = arith.constant 0 : index
    %206 = vector.load %arg13[%c0_70, %c5_71, %c0_72] : memref<1x16x32xf32, #tpu.memory_space<vmem>>, vector<1x1x32xf32>
    %207 = vector.shape_cast %206 : vector<1x1x32xf32> to vector<1x32xf32>
    %208 = vector.shape_cast %205 : vector<1x32xf32> to vector<1x1x32xf32>
    tpu.vector_store %arg13[%c0_70, %c5_71, %c0_72], %208 {strides = array<i32>} : memref<1x16x32xf32, #tpu.memory_space<vmem>>, vector<1x1x32xf32>,
    %c0_73 = arith.constant 0 : index
    %c6 = arith.constant 6 : index
    %c0_74 = arith.constant 0 : index
    %209 = vector.load %arg14[%c0_73, %c6, %c0_74] : memref<1x16x128xf32, #tpu.memory_space<vmem>>, vector<1x1x128xf32>
    %210 = vector.shape_cast %209 : vector<1x1x128xf32> to vector<1x128xf32>
    %cst_75 = arith.constant dense<0.000000e+00> : vector<1x128xf32>
    %211 = tpu.matmul %205, %4, %cst_75 {dimension_numbers = #tpu.dot_dimension_numbers<[1], [0], [0], [1], [0, 0, 1, 1], [], []>} : vector<1x32xf32>, vector<32x128xf32>, vector<1x128xf32> -> vector<1x128xf32>
    %212 = arith.addf %210, %211 : vector<1x128xf32>
    %213 = vector.extract_strided_slice %212 {offsets = [0, 0], sizes = [1, 32], strides = [1, 1]} : vector<1x128xf32> to vector<1x32xf32>
    %214 = arith.negf %213 : vector<1x32xf32>
    %215 = math.exp %214 : vector<1x32xf32>
    %cst_76 = arith.constant 1.000000e+00 : f32
    %216 = vector.broadcast %cst_76 : f32 to vector<1x32xf32>
    %217 = arith.addf %216, %215 : vector<1x32xf32>
    %218 = arith.divf %216, %217 : vector<1x32xf32>
    %219 = vector.extract_strided_slice %212 {offsets = [0, 32], sizes = [1, 32], strides = [1, 1]} : vector<1x128xf32> to vector<1x32xf32>
    %220 = arith.negf %219 : vector<1x32xf32>
    %221 = math.exp %220 : vector<1x32xf32>
    %cst_77 = arith.constant 1.000000e+00 : f32
    %222 = vector.broadcast %cst_77 : f32 to vector<1x32xf32>
    %223 = arith.addf %222, %221 : vector<1x32xf32>
    %224 = arith.divf %222, %223 : vector<1x32xf32>
    %225 = vector.extract_strided_slice %212 {offsets = [0, 64], sizes = [1, 32], strides = [1, 1]} : vector<1x128xf32> to vector<1x32xf32>
    %226 = math.tanh %225 : vector<1x32xf32>
    %227 = vector.extract_strided_slice %212 {offsets = [0, 96], sizes = [1, 32], strides = [1, 1]} : vector<1x128xf32> to vector<1x32xf32>
    %228 = arith.negf %227 : vector<1x32xf32>
    %229 = math.exp %228 : vector<1x32xf32>
    %cst_78 = arith.constant 1.000000e+00 : f32
    %230 = vector.broadcast %cst_78 : f32 to vector<1x32xf32>
    %231 = arith.addf %230, %229 : vector<1x32xf32>
    %232 = arith.divf %230, %231 : vector<1x32xf32>
    %233 = arith.mulf %224, %203 : vector<1x32xf32>
    %234 = arith.mulf %218, %226 : vector<1x32xf32>
    %235 = arith.addf %233, %234 : vector<1x32xf32>
    %236 = math.tanh %235 : vector<1x32xf32>
    %237 = arith.mulf %232, %236 : vector<1x32xf32>
    %c0_79 = arith.constant 0 : index
    %c6_80 = arith.constant 6 : index
    %c0_81 = arith.constant 0 : index
    %238 = vector.load %arg13[%c0_79, %c6_80, %c0_81] : memref<1x16x32xf32, #tpu.memory_space<vmem>>, vector<1x1x32xf32>
    %239 = vector.shape_cast %238 : vector<1x1x32xf32> to vector<1x32xf32>
    %240 = vector.shape_cast %237 : vector<1x32xf32> to vector<1x1x32xf32>
    tpu.vector_store %arg13[%c0_79, %c6_80, %c0_81], %240 {strides = array<i32>} : memref<1x16x32xf32, #tpu.memory_space<vmem>>, vector<1x1x32xf32>,
    %c0_82 = arith.constant 0 : index
    %c7 = arith.constant 7 : index
    %c0_83 = arith.constant 0 : index
    %241 = vector.load %arg14[%c0_82, %c7, %c0_83] : memref<1x16x128xf32, #tpu.memory_space<vmem>>, vector<1x1x128xf32>
    %242 = vector.shape_cast %241 : vector<1x1x128xf32> to vector<1x128xf32>
    %cst_84 = arith.constant dense<0.000000e+00> : vector<1x128xf32>
    %243 = tpu.matmul %237, %4, %cst_84 {dimension_numbers = #tpu.dot_dimension_numbers<[1], [0], [0], [1], [0, 0, 1, 1], [], []>} : vector<1x32xf32>, vector<32x128xf32>, vector<1x128xf32> -> vector<1x128xf32>
    %244 = arith.addf %242, %243 : vector<1x128xf32>
    %245 = vector.extract_strided_slice %244 {offsets = [0, 0], sizes = [1, 32], strides = [1, 1]} : vector<1x128xf32> to vector<1x32xf32>
    %246 = arith.negf %245 : vector<1x32xf32>
    %247 = math.exp %246 : vector<1x32xf32>
    %cst_85 = arith.constant 1.000000e+00 : f32
    %248 = vector.broadcast %cst_85 : f32 to vector<1x32xf32>
    %249 = arith.addf %248, %247 : vector<1x32xf32>
    %250 = arith.divf %248, %249 : vector<1x32xf32>
    %251 = vector.extract_strided_slice %244 {offsets = [0, 32], sizes = [1, 32], strides = [1, 1]} : vector<1x128xf32> to vector<1x32xf32>
    %252 = arith.negf %251 : vector<1x32xf32>
    %253 = math.exp %252 : vector<1x32xf32>
    %cst_86 = arith.constant 1.000000e+00 : f32
    %254 = vector.broadcast %cst_86 : f32 to vector<1x32xf32>
    %255 = arith.addf %254, %253 : vector<1x32xf32>
    %256 = arith.divf %254, %255 : vector<1x32xf32>
    %257 = vector.extract_strided_slice %244 {offsets = [0, 64], sizes = [1, 32], strides = [1, 1]} : vector<1x128xf32> to vector<1x32xf32>
    %258 = math.tanh %257 : vector<1x32xf32>
    %259 = vector.extract_strided_slice %244 {offsets = [0, 96], sizes = [1, 32], strides = [1, 1]} : vector<1x128xf32> to vector<1x32xf32>
    %260 = arith.negf %259 : vector<1x32xf32>
    %261 = math.exp %260 : vector<1x32xf32>
    %cst_87 = arith.constant 1.000000e+00 : f32
    %262 = vector.broadcast %cst_87 : f32 to vector<1x32xf32>
    %263 = arith.addf %262, %261 : vector<1x32xf32>
    %264 = arith.divf %262, %263 : vector<1x32xf32>
    %265 = arith.mulf %256, %235 : vector<1x32xf32>
    %266 = arith.mulf %250, %258 : vector<1x32xf32>
    %267 = arith.addf %265, %266 : vector<1x32xf32>
    %268 = math.tanh %267 : vector<1x32xf32>
    %269 = arith.mulf %264, %268 : vector<1x32xf32>
    %c0_88 = arith.constant 0 : index
    %c7_89 = arith.constant 7 : index
    %c0_90 = arith.constant 0 : index
    %270 = vector.load %arg13[%c0_88, %c7_89, %c0_90] : memref<1x16x32xf32, #tpu.memory_space<vmem>>, vector<1x1x32xf32>
    %271 = vector.shape_cast %270 : vector<1x1x32xf32> to vector<1x32xf32>
    %272 = vector.shape_cast %269 : vector<1x32xf32> to vector<1x1x32xf32>
    tpu.vector_store %arg13[%c0_88, %c7_89, %c0_90], %272 {strides = array<i32>} : memref<1x16x32xf32, #tpu.memory_space<vmem>>, vector<1x1x32xf32>,
    %c0_91 = arith.constant 0 : index
    %c8 = arith.constant 8 : index
    %c0_92 = arith.constant 0 : index
    %273 = vector.load %arg14[%c0_91, %c8, %c0_92] : memref<1x16x128xf32, #tpu.memory_space<vmem>>, vector<1x1x128xf32>
    %274 = vector.shape_cast %273 : vector<1x1x128xf32> to vector<1x128xf32>
    %cst_93 = arith.constant dense<0.000000e+00> : vector<1x128xf32>
    %275 = tpu.matmul %269, %4, %cst_93 {dimension_numbers = #tpu.dot_dimension_numbers<[1], [0], [0], [1], [0, 0, 1, 1], [], []>} : vector<1x32xf32>, vector<32x128xf32>, vector<1x128xf32> -> vector<1x128xf32>
    %276 = arith.addf %274, %275 : vector<1x128xf32>
    %277 = vector.extract_strided_slice %276 {offsets = [0, 0], sizes = [1, 32], strides = [1, 1]} : vector<1x128xf32> to vector<1x32xf32>
    %278 = arith.negf %277 : vector<1x32xf32>
    %279 = math.exp %278 : vector<1x32xf32>
    %cst_94 = arith.constant 1.000000e+00 : f32
    %280 = vector.broadcast %cst_94 : f32 to vector<1x32xf32>
    %281 = arith.addf %280, %279 : vector<1x32xf32>
    %282 = arith.divf %280, %281 : vector<1x32xf32>
    %283 = vector.extract_strided_slice %276 {offsets = [0, 32], sizes = [1, 32], strides = [1, 1]} : vector<1x128xf32> to vector<1x32xf32>
    %284 = arith.negf %283 : vector<1x32xf32>
    %285 = math.exp %284 : vector<1x32xf32>
    %cst_95 = arith.constant 1.000000e+00 : f32
    %286 = vector.broadcast %cst_95 : f32 to vector<1x32xf32>
    %287 = arith.addf %286, %285 : vector<1x32xf32>
    %288 = arith.divf %286, %287 : vector<1x32xf32>
    %289 = vector.extract_strided_slice %276 {offsets = [0, 64], sizes = [1, 32], strides = [1, 1]} : vector<1x128xf32> to vector<1x32xf32>
    %290 = math.tanh %289 : vector<1x32xf32>
    %291 = vector.extract_strided_slice %276 {offsets = [0, 96], sizes = [1, 32], strides = [1, 1]} : vector<1x128xf32> to vector<1x32xf32>
    %292 = arith.negf %291 : vector<1x32xf32>
    %293 = math.exp %292 : vector<1x32xf32>
    %cst_96 = arith.constant 1.000000e+00 : f32
    %294 = vector.broadcast %cst_96 : f32 to vector<1x32xf32>
    %295 = arith.addf %294, %293 : vector<1x32xf32>
    %296 = arith.divf %294, %295 : vector<1x32xf32>
    %297 = arith.mulf %288, %267 : vector<1x32xf32>
    %298 = arith.mulf %282, %290 : vector<1x32xf32>
    %299 = arith.addf %297, %298 : vector<1x32xf32>
    %300 = math.tanh %299 : vector<1x32xf32>
    %301 = arith.mulf %296, %300 : vector<1x32xf32>
    %c0_97 = arith.constant 0 : index
    %c8_98 = arith.constant 8 : index
    %c0_99 = arith.constant 0 : index
    %302 = vector.load %arg13[%c0_97, %c8_98, %c0_99] : memref<1x16x32xf32, #tpu.memory_space<vmem>>, vector<1x1x32xf32>
    %303 = vector.shape_cast %302 : vector<1x1x32xf32> to vector<1x32xf32>
    %304 = vector.shape_cast %301 : vector<1x32xf32> to vector<1x1x32xf32>
    tpu.vector_store %arg13[%c0_97, %c8_98, %c0_99], %304 {strides = array<i32>} : memref<1x16x32xf32, #tpu.memory_space<vmem>>, vector<1x1x32xf32>,
    %c0_100 = arith.constant 0 : index
    %c9 = arith.constant 9 : index
    %c0_101 = arith.constant 0 : index
    %305 = vector.load %arg14[%c0_100, %c9, %c0_101] : memref<1x16x128xf32, #tpu.memory_space<vmem>>, vector<1x1x128xf32>
    %306 = vector.shape_cast %305 : vector<1x1x128xf32> to vector<1x128xf32>
    %cst_102 = arith.constant dense<0.000000e+00> : vector<1x128xf32>
    %307 = tpu.matmul %301, %4, %cst_102 {dimension_numbers = #tpu.dot_dimension_numbers<[1], [0], [0], [1], [0, 0, 1, 1], [], []>} : vector<1x32xf32>, vector<32x128xf32>, vector<1x128xf32> -> vector<1x128xf32>
    %308 = arith.addf %306, %307 : vector<1x128xf32>
    %309 = vector.extract_strided_slice %308 {offsets = [0, 0], sizes = [1, 32], strides = [1, 1]} : vector<1x128xf32> to vector<1x32xf32>
    %310 = arith.negf %309 : vector<1x32xf32>
    %311 = math.exp %310 : vector<1x32xf32>
    %cst_103 = arith.constant 1.000000e+00 : f32
    %312 = vector.broadcast %cst_103 : f32 to vector<1x32xf32>
    %313 = arith.addf %312, %311 : vector<1x32xf32>
    %314 = arith.divf %312, %313 : vector<1x32xf32>
    %315 = vector.extract_strided_slice %308 {offsets = [0, 32], sizes = [1, 32], strides = [1, 1]} : vector<1x128xf32> to vector<1x32xf32>
    %316 = arith.negf %315 : vector<1x32xf32>
    %317 = math.exp %316 : vector<1x32xf32>
    %cst_104 = arith.constant 1.000000e+00 : f32
    %318 = vector.broadcast %cst_104 : f32 to vector<1x32xf32>
    %319 = arith.addf %318, %317 : vector<1x32xf32>
    %320 = arith.divf %318, %319 : vector<1x32xf32>
    %321 = vector.extract_strided_slice %308 {offsets = [0, 64], sizes = [1, 32], strides = [1, 1]} : vector<1x128xf32> to vector<1x32xf32>
    %322 = math.tanh %321 : vector<1x32xf32>
    %323 = vector.extract_strided_slice %308 {offsets = [0, 96], sizes = [1, 32], strides = [1, 1]} : vector<1x128xf32> to vector<1x32xf32>
    %324 = arith.negf %323 : vector<1x32xf32>
    %325 = math.exp %324 : vector<1x32xf32>
    %cst_105 = arith.constant 1.000000e+00 : f32
    %326 = vector.broadcast %cst_105 : f32 to vector<1x32xf32>
    %327 = arith.addf %326, %325 : vector<1x32xf32>
    %328 = arith.divf %326, %327 : vector<1x32xf32>
    %329 = arith.mulf %320, %299 : vector<1x32xf32>
    %330 = arith.mulf %314, %322 : vector<1x32xf32>
    %331 = arith.addf %329, %330 : vector<1x32xf32>
    %332 = math.tanh %331 : vector<1x32xf32>
    %333 = arith.mulf %328, %332 : vector<1x32xf32>
    %c0_106 = arith.constant 0 : index
    %c9_107 = arith.constant 9 : index
    %c0_108 = arith.constant 0 : index
    %334 = vector.load %arg13[%c0_106, %c9_107, %c0_108] : memref<1x16x32xf32, #tpu.memory_space<vmem>>, vector<1x1x32xf32>
    %335 = vector.shape_cast %334 : vector<1x1x32xf32> to vector<1x32xf32>
    %336 = vector.shape_cast %333 : vector<1x32xf32> to vector<1x1x32xf32>
    tpu.vector_store %arg13[%c0_106, %c9_107, %c0_108], %336 {strides = array<i32>} : memref<1x16x32xf32, #tpu.memory_space<vmem>>, vector<1x1x32xf32>,
    %c0_109 = arith.constant 0 : index
    %c10 = arith.constant 10 : index
    %c0_110 = arith.constant 0 : index
    %337 = vector.load %arg14[%c0_109, %c10, %c0_110] : memref<1x16x128xf32, #tpu.memory_space<vmem>>, vector<1x1x128xf32>
    %338 = vector.shape_cast %337 : vector<1x1x128xf32> to vector<1x128xf32>
    %cst_111 = arith.constant dense<0.000000e+00> : vector<1x128xf32>
    %339 = tpu.matmul %333, %4, %cst_111 {dimension_numbers = #tpu.dot_dimension_numbers<[1], [0], [0], [1], [0, 0, 1, 1], [], []>} : vector<1x32xf32>, vector<32x128xf32>, vector<1x128xf32> -> vector<1x128xf32>
    %340 = arith.addf %338, %339 : vector<1x128xf32>
    %341 = vector.extract_strided_slice %340 {offsets = [0, 0], sizes = [1, 32], strides = [1, 1]} : vector<1x128xf32> to vector<1x32xf32>
    %342 = arith.negf %341 : vector<1x32xf32>
    %343 = math.exp %342 : vector<1x32xf32>
    %cst_112 = arith.constant 1.000000e+00 : f32
    %344 = vector.broadcast %cst_112 : f32 to vector<1x32xf32>
    %345 = arith.addf %344, %343 : vector<1x32xf32>
    %346 = arith.divf %344, %345 : vector<1x32xf32>
    %347 = vector.extract_strided_slice %340 {offsets = [0, 32], sizes = [1, 32], strides = [1, 1]} : vector<1x128xf32> to vector<1x32xf32>
    %348 = arith.negf %347 : vector<1x32xf32>
    %349 = math.exp %348 : vector<1x32xf32>
    %cst_113 = arith.constant 1.000000e+00 : f32
    %350 = vector.broadcast %cst_113 : f32 to vector<1x32xf32>
    %351 = arith.addf %350, %349 : vector<1x32xf32>
    %352 = arith.divf %350, %351 : vector<1x32xf32>
    %353 = vector.extract_strided_slice %340 {offsets = [0, 64], sizes = [1, 32], strides = [1, 1]} : vector<1x128xf32> to vector<1x32xf32>
    %354 = math.tanh %353 : vector<1x32xf32>
    %355 = vector.extract_strided_slice %340 {offsets = [0, 96], sizes = [1, 32], strides = [1, 1]} : vector<1x128xf32> to vector<1x32xf32>
    %356 = arith.negf %355 : vector<1x32xf32>
    %357 = math.exp %356 : vector<1x32xf32>
    %cst_114 = arith.constant 1.000000e+00 : f32
    %358 = vector.broadcast %cst_114 : f32 to vector<1x32xf32>
    %359 = arith.addf %358, %357 : vector<1x32xf32>
    %360 = arith.divf %358, %359 : vector<1x32xf32>
    %361 = arith.mulf %352, %331 : vector<1x32xf32>
    %362 = arith.mulf %346, %354 : vector<1x32xf32>
    %363 = arith.addf %361, %362 : vector<1x32xf32>
    %364 = math.tanh %363 : vector<1x32xf32>
    %365 = arith.mulf %360, %364 : vector<1x32xf32>
    %c0_115 = arith.constant 0 : index
    %c10_116 = arith.constant 10 : index
    %c0_117 = arith.constant 0 : index
    %366 = vector.load %arg13[%c0_115, %c10_116, %c0_117] : memref<1x16x32xf32, #tpu.memory_space<vmem>>, vector<1x1x32xf32>
    %367 = vector.shape_cast %366 : vector<1x1x32xf32> to vector<1x32xf32>
    %368 = vector.shape_cast %365 : vector<1x32xf32> to vector<1x1x32xf32>
    tpu.vector_store %arg13[%c0_115, %c10_116, %c0_117], %368 {strides = array<i32>} : memref<1x16x32xf32, #tpu.memory_space<vmem>>, vector<1x1x32xf32>,
    %c0_118 = arith.constant 0 : index
    %c11 = arith.constant 11 : index
    %c0_119 = arith.constant 0 : index
    %369 = vector.load %arg14[%c0_118, %c11, %c0_119] : memref<1x16x128xf32, #tpu.memory_space<vmem>>, vector<1x1x128xf32>
    %370 = vector.shape_cast %369 : vector<1x1x128xf32> to vector<1x128xf32>
    %cst_120 = arith.constant dense<0.000000e+00> : vector<1x128xf32>
    %371 = tpu.matmul %365, %4, %cst_120 {dimension_numbers = #tpu.dot_dimension_numbers<[1], [0], [0], [1], [0, 0, 1, 1], [], []>} : vector<1x32xf32>, vector<32x128xf32>, vector<1x128xf32> -> vector<1x128xf32>
    %372 = arith.addf %370, %371 : vector<1x128xf32>
    %373 = vector.extract_strided_slice %372 {offsets = [0, 0], sizes = [1, 32], strides = [1, 1]} : vector<1x128xf32> to vector<1x32xf32>
    %374 = arith.negf %373 : vector<1x32xf32>
    %375 = math.exp %374 : vector<1x32xf32>
    %cst_121 = arith.constant 1.000000e+00 : f32
    %376 = vector.broadcast %cst_121 : f32 to vector<1x32xf32>
    %377 = arith.addf %376, %375 : vector<1x32xf32>
    %378 = arith.divf %376, %377 : vector<1x32xf32>
    %379 = vector.extract_strided_slice %372 {offsets = [0, 32], sizes = [1, 32], strides = [1, 1]} : vector<1x128xf32> to vector<1x32xf32>
    %380 = arith.negf %379 : vector<1x32xf32>
    %381 = math.exp %380 : vector<1x32xf32>
    %cst_122 = arith.constant 1.000000e+00 : f32
    %382 = vector.broadcast %cst_122 : f32 to vector<1x32xf32>
    %383 = arith.addf %382, %381 : vector<1x32xf32>
    %384 = arith.divf %382, %383 : vector<1x32xf32>
    %385 = vector.extract_strided_slice %372 {offsets = [0, 64], sizes = [1, 32], strides = [1, 1]} : vector<1x128xf32> to vector<1x32xf32>
    %386 = math.tanh %385 : vector<1x32xf32>
    %387 = vector.extract_strided_slice %372 {offsets = [0, 96], sizes = [1, 32], strides = [1, 1]} : vector<1x128xf32> to vector<1x32xf32>
    %388 = arith.negf %387 : vector<1x32xf32>
    %389 = math.exp %388 : vector<1x32xf32>
    %cst_123 = arith.constant 1.000000e+00 : f32
    %390 = vector.broadcast %cst_123 : f32 to vector<1x32xf32>
    %391 = arith.addf %390, %389 : vector<1x32xf32>
    %392 = arith.divf %390, %391 : vector<1x32xf32>
    %393 = arith.mulf %384, %363 : vector<1x32xf32>
    %394 = arith.mulf %378, %386 : vector<1x32xf32>
    %395 = arith.addf %393, %394 : vector<1x32xf32>
    %396 = math.tanh %395 : vector<1x32xf32>
    %397 = arith.mulf %392, %396 : vector<1x32xf32>
    %c0_124 = arith.constant 0 : index
    %c11_125 = arith.constant 11 : index
    %c0_126 = arith.constant 0 : index
    %398 = vector.load %arg13[%c0_124, %c11_125, %c0_126] : memref<1x16x32xf32, #tpu.memory_space<vmem>>, vector<1x1x32xf32>
    %399 = vector.shape_cast %398 : vector<1x1x32xf32> to vector<1x32xf32>
    %400 = vector.shape_cast %397 : vector<1x32xf32> to vector<1x1x32xf32>
    tpu.vector_store %arg13[%c0_124, %c11_125, %c0_126], %400 {strides = array<i32>} : memref<1x16x32xf32, #tpu.memory_space<vmem>>, vector<1x1x32xf32>,
    %c0_127 = arith.constant 0 : index
    %c12 = arith.constant 12 : index
    %c0_128 = arith.constant 0 : index
    %401 = vector.load %arg14[%c0_127, %c12, %c0_128] : memref<1x16x128xf32, #tpu.memory_space<vmem>>, vector<1x1x128xf32>
    %402 = vector.shape_cast %401 : vector<1x1x128xf32> to vector<1x128xf32>
    %cst_129 = arith.constant dense<0.000000e+00> : vector<1x128xf32>
    %403 = tpu.matmul %397, %4, %cst_129 {dimension_numbers = #tpu.dot_dimension_numbers<[1], [0], [0], [1], [0, 0, 1, 1], [], []>} : vector<1x32xf32>, vector<32x128xf32>, vector<1x128xf32> -> vector<1x128xf32>
    %404 = arith.addf %402, %403 : vector<1x128xf32>
    %405 = vector.extract_strided_slice %404 {offsets = [0, 0], sizes = [1, 32], strides = [1, 1]} : vector<1x128xf32> to vector<1x32xf32>
    %406 = arith.negf %405 : vector<1x32xf32>
    %407 = math.exp %406 : vector<1x32xf32>
    %cst_130 = arith.constant 1.000000e+00 : f32
    %408 = vector.broadcast %cst_130 : f32 to vector<1x32xf32>
    %409 = arith.addf %408, %407 : vector<1x32xf32>
    %410 = arith.divf %408, %409 : vector<1x32xf32>
    %411 = vector.extract_strided_slice %404 {offsets = [0, 32], sizes = [1, 32], strides = [1, 1]} : vector<1x128xf32> to vector<1x32xf32>
    %412 = arith.negf %411 : vector<1x32xf32>
    %413 = math.exp %412 : vector<1x32xf32>
    %cst_131 = arith.constant 1.000000e+00 : f32
    %414 = vector.broadcast %cst_131 : f32 to vector<1x32xf32>
    %415 = arith.addf %414, %413 : vector<1x32xf32>
    %416 = arith.divf %414, %415 : vector<1x32xf32>
    %417 = vector.extract_strided_slice %404 {offsets = [0, 64], sizes = [1, 32], strides = [1, 1]} : vector<1x128xf32> to vector<1x32xf32>
    %418 = math.tanh %417 : vector<1x32xf32>
    %419 = vector.extract_strided_slice %404 {offsets = [0, 96], sizes = [1, 32], strides = [1, 1]} : vector<1x128xf32> to vector<1x32xf32>
    %420 = arith.negf %419 : vector<1x32xf32>
    %421 = math.exp %420 : vector<1x32xf32>
    %cst_132 = arith.constant 1.000000e+00 : f32
    %422 = vector.broadcast %cst_132 : f32 to vector<1x32xf32>
    %423 = arith.addf %422, %421 : vector<1x32xf32>
    %424 = arith.divf %422, %423 : vector<1x32xf32>
    %425 = arith.mulf %416, %395 : vector<1x32xf32>
    %426 = arith.mulf %410, %418 : vector<1x32xf32>
    %427 = arith.addf %425, %426 : vector<1x32xf32>
    %428 = math.tanh %427 : vector<1x32xf32>
    %429 = arith.mulf %424, %428 : vector<1x32xf32>
    %c0_133 = arith.constant 0 : index
    %c12_134 = arith.constant 12 : index
    %c0_135 = arith.constant 0 : index
    %430 = vector.load %arg13[%c0_133, %c12_134, %c0_135] : memref<1x16x32xf32, #tpu.memory_space<vmem>>, vector<1x1x32xf32>
    %431 = vector.shape_cast %430 : vector<1x1x32xf32> to vector<1x32xf32>
    %432 = vector.shape_cast %429 : vector<1x32xf32> to vector<1x1x32xf32>
    tpu.vector_store %arg13[%c0_133, %c12_134, %c0_135], %432 {strides = array<i32>} : memref<1x16x32xf32, #tpu.memory_space<vmem>>, vector<1x1x32xf32>,
    %c0_136 = arith.constant 0 : index
    %c13 = arith.constant 13 : index
    %c0_137 = arith.constant 0 : index
    %433 = vector.load %arg14[%c0_136, %c13, %c0_137] : memref<1x16x128xf32, #tpu.memory_space<vmem>>, vector<1x1x128xf32>
    %434 = vector.shape_cast %433 : vector<1x1x128xf32> to vector<1x128xf32>
    %cst_138 = arith.constant dense<0.000000e+00> : vector<1x128xf32>
    %435 = tpu.matmul %429, %4, %cst_138 {dimension_numbers = #tpu.dot_dimension_numbers<[1], [0], [0], [1], [0, 0, 1, 1], [], []>} : vector<1x32xf32>, vector<32x128xf32>, vector<1x128xf32> -> vector<1x128xf32>
    %436 = arith.addf %434, %435 : vector<1x128xf32>
    %437 = vector.extract_strided_slice %436 {offsets = [0, 0], sizes = [1, 32], strides = [1, 1]} : vector<1x128xf32> to vector<1x32xf32>
    %438 = arith.negf %437 : vector<1x32xf32>
    %439 = math.exp %438 : vector<1x32xf32>
    %cst_139 = arith.constant 1.000000e+00 : f32
    %440 = vector.broadcast %cst_139 : f32 to vector<1x32xf32>
    %441 = arith.addf %440, %439 : vector<1x32xf32>
    %442 = arith.divf %440, %441 : vector<1x32xf32>
    %443 = vector.extract_strided_slice %436 {offsets = [0, 32], sizes = [1, 32], strides = [1, 1]} : vector<1x128xf32> to vector<1x32xf32>
    %444 = arith.negf %443 : vector<1x32xf32>
    %445 = math.exp %444 : vector<1x32xf32>
    %cst_140 = arith.constant 1.000000e+00 : f32
    %446 = vector.broadcast %cst_140 : f32 to vector<1x32xf32>
    %447 = arith.addf %446, %445 : vector<1x32xf32>
    %448 = arith.divf %446, %447 : vector<1x32xf32>
    %449 = vector.extract_strided_slice %436 {offsets = [0, 64], sizes = [1, 32], strides = [1, 1]} : vector<1x128xf32> to vector<1x32xf32>
    %450 = math.tanh %449 : vector<1x32xf32>
    %451 = vector.extract_strided_slice %436 {offsets = [0, 96], sizes = [1, 32], strides = [1, 1]} : vector<1x128xf32> to vector<1x32xf32>
    %452 = arith.negf %451 : vector<1x32xf32>
    %453 = math.exp %452 : vector<1x32xf32>
    %cst_141 = arith.constant 1.000000e+00 : f32
    %454 = vector.broadcast %cst_141 : f32 to vector<1x32xf32>
    %455 = arith.addf %454, %453 : vector<1x32xf32>
    %456 = arith.divf %454, %455 : vector<1x32xf32>
    %457 = arith.mulf %448, %427 : vector<1x32xf32>
    %458 = arith.mulf %442, %450 : vector<1x32xf32>
    %459 = arith.addf %457, %458 : vector<1x32xf32>
    %460 = math.tanh %459 : vector<1x32xf32>
    %461 = arith.mulf %456, %460 : vector<1x32xf32>
    %c0_142 = arith.constant 0 : index
    %c13_143 = arith.constant 13 : index
    %c0_144 = arith.constant 0 : index
    %462 = vector.load %arg13[%c0_142, %c13_143, %c0_144] : memref<1x16x32xf32, #tpu.memory_space<vmem>>, vector<1x1x32xf32>
    %463 = vector.shape_cast %462 : vector<1x1x32xf32> to vector<1x32xf32>
    %464 = vector.shape_cast %461 : vector<1x32xf32> to vector<1x1x32xf32>
    tpu.vector_store %arg13[%c0_142, %c13_143, %c0_144], %464 {strides = array<i32>} : memref<1x16x32xf32, #tpu.memory_space<vmem>>, vector<1x1x32xf32>,
    %c0_145 = arith.constant 0 : index
    %c14 = arith.constant 14 : index
    %c0_146 = arith.constant 0 : index
    %465 = vector.load %arg14[%c0_145, %c14, %c0_146] : memref<1x16x128xf32, #tpu.memory_space<vmem>>, vector<1x1x128xf32>
    %466 = vector.shape_cast %465 : vector<1x1x128xf32> to vector<1x128xf32>
    %cst_147 = arith.constant dense<0.000000e+00> : vector<1x128xf32>
    %467 = tpu.matmul %461, %4, %cst_147 {dimension_numbers = #tpu.dot_dimension_numbers<[1], [0], [0], [1], [0, 0, 1, 1], [], []>} : vector<1x32xf32>, vector<32x128xf32>, vector<1x128xf32> -> vector<1x128xf32>
    %468 = arith.addf %466, %467 : vector<1x128xf32>
    %469 = vector.extract_strided_slice %468 {offsets = [0, 0], sizes = [1, 32], strides = [1, 1]} : vector<1x128xf32> to vector<1x32xf32>
    %470 = arith.negf %469 : vector<1x32xf32>
    %471 = math.exp %470 : vector<1x32xf32>
    %cst_148 = arith.constant 1.000000e+00 : f32
    %472 = vector.broadcast %cst_148 : f32 to vector<1x32xf32>
    %473 = arith.addf %472, %471 : vector<1x32xf32>
    %474 = arith.divf %472, %473 : vector<1x32xf32>
    %475 = vector.extract_strided_slice %468 {offsets = [0, 32], sizes = [1, 32], strides = [1, 1]} : vector<1x128xf32> to vector<1x32xf32>
    %476 = arith.negf %475 : vector<1x32xf32>
    %477 = math.exp %476 : vector<1x32xf32>
    %cst_149 = arith.constant 1.000000e+00 : f32
    %478 = vector.broadcast %cst_149 : f32 to vector<1x32xf32>
    %479 = arith.addf %478, %477 : vector<1x32xf32>
    %480 = arith.divf %478, %479 : vector<1x32xf32>
    %481 = vector.extract_strided_slice %468 {offsets = [0, 64], sizes = [1, 32], strides = [1, 1]} : vector<1x128xf32> to vector<1x32xf32>
    %482 = math.tanh %481 : vector<1x32xf32>
    %483 = vector.extract_strided_slice %468 {offsets = [0, 96], sizes = [1, 32], strides = [1, 1]} : vector<1x128xf32> to vector<1x32xf32>
    %484 = arith.negf %483 : vector<1x32xf32>
    %485 = math.exp %484 : vector<1x32xf32>
    %cst_150 = arith.constant 1.000000e+00 : f32
    %486 = vector.broadcast %cst_150 : f32 to vector<1x32xf32>
    %487 = arith.addf %486, %485 : vector<1x32xf32>
    %488 = arith.divf %486, %487 : vector<1x32xf32>
    %489 = arith.mulf %480, %459 : vector<1x32xf32>
    %490 = arith.mulf %474, %482 : vector<1x32xf32>
    %491 = arith.addf %489, %490 : vector<1x32xf32>
    %492 = math.tanh %491 : vector<1x32xf32>
    %493 = arith.mulf %488, %492 : vector<1x32xf32>
    %c0_151 = arith.constant 0 : index
    %c14_152 = arith.constant 14 : index
    %c0_153 = arith.constant 0 : index
    %494 = vector.load %arg13[%c0_151, %c14_152, %c0_153] : memref<1x16x32xf32, #tpu.memory_space<vmem>>, vector<1x1x32xf32>
    %495 = vector.shape_cast %494 : vector<1x1x32xf32> to vector<1x32xf32>
    %496 = vector.shape_cast %493 : vector<1x32xf32> to vector<1x1x32xf32>
    tpu.vector_store %arg13[%c0_151, %c14_152, %c0_153], %496 {strides = array<i32>} : memref<1x16x32xf32, #tpu.memory_space<vmem>>, vector<1x1x32xf32>,
    %c0_154 = arith.constant 0 : index
    %c15 = arith.constant 15 : index
    %c0_155 = arith.constant 0 : index
    %497 = vector.load %arg14[%c0_154, %c15, %c0_155] : memref<1x16x128xf32, #tpu.memory_space<vmem>>, vector<1x1x128xf32>
    %498 = vector.shape_cast %497 : vector<1x1x128xf32> to vector<1x128xf32>
    %cst_156 = arith.constant dense<0.000000e+00> : vector<1x128xf32>
    %499 = tpu.matmul %493, %4, %cst_156 {dimension_numbers = #tpu.dot_dimension_numbers<[1], [0], [0], [1], [0, 0, 1, 1], [], []>} : vector<1x32xf32>, vector<32x128xf32>, vector<1x128xf32> -> vector<1x128xf32>
    %500 = arith.addf %498, %499 : vector<1x128xf32>
    %501 = vector.extract_strided_slice %500 {offsets = [0, 0], sizes = [1, 32], strides = [1, 1]} : vector<1x128xf32> to vector<1x32xf32>
    %502 = arith.negf %501 : vector<1x32xf32>
    %503 = math.exp %502 : vector<1x32xf32>
    %cst_157 = arith.constant 1.000000e+00 : f32
    %504 = vector.broadcast %cst_157 : f32 to vector<1x32xf32>
    %505 = arith.addf %504, %503 : vector<1x32xf32>
    %506 = arith.divf %504, %505 : vector<1x32xf32>
    %507 = vector.extract_strided_slice %500 {offsets = [0, 32], sizes = [1, 32], strides = [1, 1]} : vector<1x128xf32> to vector<1x32xf32>
    %508 = arith.negf %507 : vector<1x32xf32>
    %509 = math.exp %508 : vector<1x32xf32>
    %cst_158 = arith.constant 1.000000e+00 : f32
    %510 = vector.broadcast %cst_158 : f32 to vector<1x32xf32>
    %511 = arith.addf %510, %509 : vector<1x32xf32>
    %512 = arith.divf %510, %511 : vector<1x32xf32>
    %513 = vector.extract_strided_slice %500 {offsets = [0, 64], sizes = [1, 32], strides = [1, 1]} : vector<1x128xf32> to vector<1x32xf32>
    %514 = math.tanh %513 : vector<1x32xf32>
    %515 = vector.extract_strided_slice %500 {offsets = [0, 96], sizes = [1, 32], strides = [1, 1]} : vector<1x128xf32> to vector<1x32xf32>
    %516 = arith.negf %515 : vector<1x32xf32>
    %517 = math.exp %516 : vector<1x32xf32>
    %cst_159 = arith.constant 1.000000e+00 : f32
    %518 = vector.broadcast %cst_159 : f32 to vector<1x32xf32>
    %519 = arith.addf %518, %517 : vector<1x32xf32>
    %520 = arith.divf %518, %519 : vector<1x32xf32>
    %521 = arith.mulf %512, %491 : vector<1x32xf32>
    %522 = arith.mulf %506, %514 : vector<1x32xf32>
    %523 = arith.addf %521, %522 : vector<1x32xf32>
    %524 = math.tanh %523 : vector<1x32xf32>
    %525 = arith.mulf %520, %524 : vector<1x32xf32>
    %c0_160 = arith.constant 0 : index
    %c15_161 = arith.constant 15 : index
    %c0_162 = arith.constant 0 : index
    %526 = vector.load %arg13[%c0_160, %c15_161, %c0_162] : memref<1x16x32xf32, #tpu.memory_space<vmem>>, vector<1x1x32xf32>
    %527 = vector.shape_cast %526 : vector<1x1x32xf32> to vector<1x32xf32>
    %528 = vector.shape_cast %525 : vector<1x32xf32> to vector<1x1x32xf32>
    tpu.vector_store %arg13[%c0_160, %c15_161, %c0_162], %528 {strides = array<i32>} : memref<1x16x32xf32, #tpu.memory_space<vmem>>, vector<1x1x32xf32>,
    %c0_163 = arith.constant 0 : index
    %c0_164 = arith.constant 0 : index
    %c0_165 = arith.constant 0 : index
    %529 = vector.load %arg11[%c0_163, %c0_164, %c0_165] : memref<2x1x32xf32, #tpu.memory_space<vmem>>, vector<1x1x32xf32>
    %530 = vector.shape_cast %529 : vector<1x1x32xf32> to vector<1x32xf32>
    %531 = vector.shape_cast %525 : vector<1x32xf32> to vector<1x1x32xf32>
    tpu.vector_store %arg11[%c0_163, %c0_164, %c0_165], %531 {strides = array<i32>} : memref<2x1x32xf32, #tpu.memory_space<vmem>>, vector<1x1x32xf32>,
    %c0_166 = arith.constant 0 : index
    %c0_167 = arith.constant 0 : index
    %c0_168 = arith.constant 0 : index
    %532 = vector.load %arg12[%c0_166, %c0_167, %c0_168] : memref<2x1x32xf32, #tpu.memory_space<vmem>>, vector<1x1x32xf32>
    %533 = vector.shape_cast %532 : vector<1x1x32xf32> to vector<1x32xf32>
    %534 = vector.shape_cast %523 : vector<1x32xf32> to vector<1x1x32xf32>
    tpu.vector_store %arg12[%c0_166, %c0_167, %c0_168], %534 {strides = array<i32>} : memref<2x1x32xf32, #tpu.memory_space<vmem>>, vector<1x1x32xf32>,
    %c0_169 = arith.constant 0 : index
    %c0_170 = arith.constant 0 : index
    %535 = vector.load %arg6[%c0_169, %c0_170] : memref<32x128xf32, #tpu.memory_space<vmem>>, vector<32x128xf32>
    %c0_171 = arith.constant 0 : index
    %c0_172 = arith.constant 0 : index
    %536 = vector.load %arg7[%c0_171, %c0_172] : memref<32x128xf32, #tpu.memory_space<vmem>>, vector<32x128xf32>
    %c0_173 = arith.constant 0 : index
    %c0_174 = arith.constant 0 : index
    %537 = vector.load %arg8[%c0_173, %c0_174] : memref<1x128xf32, #tpu.memory_space<vmem>>, vector<1x128xf32>
    %c0_175 = arith.constant 0 : index
    %c0_176 = arith.constant 0 : index
    %c0_177 = arith.constant 0 : index
    %538 = vector.load %arg13[%c0_175, %c0_176, %c0_177] : memref<1x16x32xf32, #tpu.memory_space<vmem>>, vector<1x16x32xf32>
    %539 = vector.shape_cast %538 : vector<1x16x32xf32> to vector<16x32xf32>
    %cst_178 = arith.constant dense<0.000000e+00> : vector<16x128xf32>
    %540 = tpu.matmul %539, %535, %cst_178 {dimension_numbers = #tpu.dot_dimension_numbers<[1], [0], [0], [1], [0, 0, 1, 1], [], []>} : vector<16x32xf32>, vector<32x128xf32>, vector<16x128xf32> -> vector<16x128xf32>
    %541 = vector.broadcast %537 : vector<1x128xf32> to vector<16x128xf32>
    %542 = arith.addf %540, %541 : vector<16x128xf32>
    %543 = vector.shape_cast %542 : vector<16x128xf32> to vector<1x16x128xf32>
    %c0_179 = arith.constant 0 : index
    %c0_180 = arith.constant 0 : index
    %c0_181 = arith.constant 0 : index
    %544 = vector.load %arg14[%c0_179, %c0_180, %c0_181] : memref<1x16x128xf32, #tpu.memory_space<vmem>>, vector<1x16x128xf32>
    tpu.vector_store %arg14[%c0_179, %c0_180, %c0_181], %543 {strides = array<i32>} : memref<1x16x128xf32, #tpu.memory_space<vmem>>, vector<1x16x128xf32>,
    %c1_182 = arith.constant 1 : index
    %c0_183 = arith.constant 0 : index
    %c0_184 = arith.constant 0 : index
    %545 = vector.load %arg11[%c1_182, %c0_183, %c0_184] : memref<2x1x32xf32, #tpu.memory_space<vmem>>, vector<1x1x32xf32>
    %546 = vector.shape_cast %545 : vector<1x1x32xf32> to vector<1x32xf32>
    %c1_185 = arith.constant 1 : index
    %c0_186 = arith.constant 0 : index
    %c0_187 = arith.constant 0 : index
    %547 = vector.load %arg12[%c1_185, %c0_186, %c0_187] : memref<2x1x32xf32, #tpu.memory_space<vmem>>, vector<1x1x32xf32>
    %548 = vector.shape_cast %547 : vector<1x1x32xf32> to vector<1x32xf32>
    %c0_188 = arith.constant 0 : index
    %c0_189 = arith.constant 0 : index
    %c0_190 = arith.constant 0 : index
    %549 = vector.load %arg14[%c0_188, %c0_189, %c0_190] : memref<1x16x128xf32, #tpu.memory_space<vmem>>, vector<1x1x128xf32>
    %550 = vector.shape_cast %549 : vector<1x1x128xf32> to vector<1x128xf32>
    %cst_191 = arith.constant dense<0.000000e+00> : vector<1x128xf32>
    %551 = tpu.matmul %546, %536, %cst_191 {dimension_numbers = #tpu.dot_dimension_numbers<[1], [0], [0], [1], [0, 0, 1, 1], [], []>} : vector<1x32xf32>, vector<32x128xf32>, vector<1x128xf32> -> vector<1x128xf32>
    %552 = arith.addf %550, %551 : vector<1x128xf32>
    %553 = vector.extract_strided_slice %552 {offsets = [0, 0], sizes = [1, 32], strides = [1, 1]} : vector<1x128xf32> to vector<1x32xf32>
    %554 = arith.negf %553 : vector<1x32xf32>
    %555 = math.exp %554 : vector<1x32xf32>
    %cst_192 = arith.constant 1.000000e+00 : f32
    %556 = vector.broadcast %cst_192 : f32 to vector<1x32xf32>
    %557 = arith.addf %556, %555 : vector<1x32xf32>
    %558 = arith.divf %556, %557 : vector<1x32xf32>
    %559 = vector.extract_strided_slice %552 {offsets = [0, 32], sizes = [1, 32], strides = [1, 1]} : vector<1x128xf32> to vector<1x32xf32>
    %560 = arith.negf %559 : vector<1x32xf32>
    %561 = math.exp %560 : vector<1x32xf32>
    %cst_193 = arith.constant 1.000000e+00 : f32
    %562 = vector.broadcast %cst_193 : f32 to vector<1x32xf32>
    %563 = arith.addf %562, %561 : vector<1x32xf32>
    %564 = arith.divf %562, %563 : vector<1x32xf32>
    %565 = vector.extract_strided_slice %552 {offsets = [0, 64], sizes = [1, 32], strides = [1, 1]} : vector<1x128xf32> to vector<1x32xf32>
    %566 = math.tanh %565 : vector<1x32xf32>
    %567 = vector.extract_strided_slice %552 {offsets = [0, 96], sizes = [1, 32], strides = [1, 1]} : vector<1x128xf32> to vector<1x32xf32>
    %568 = arith.negf %567 : vector<1x32xf32>
    %569 = math.exp %568 : vector<1x32xf32>
    %cst_194 = arith.constant 1.000000e+00 : f32
    %570 = vector.broadcast %cst_194 : f32 to vector<1x32xf32>
    %571 = arith.addf %570, %569 : vector<1x32xf32>
    %572 = arith.divf %570, %571 : vector<1x32xf32>
    %573 = arith.mulf %564, %548 : vector<1x32xf32>
    %574 = arith.mulf %558, %566 : vector<1x32xf32>
    %575 = arith.addf %573, %574 : vector<1x32xf32>
    %576 = math.tanh %575 : vector<1x32xf32>
    %577 = arith.mulf %572, %576 : vector<1x32xf32>
    %c0_195 = arith.constant 0 : index
    %c0_196 = arith.constant 0 : index
    %c0_197 = arith.constant 0 : index
    %578 = vector.load %arg13[%c0_195, %c0_196, %c0_197] : memref<1x16x32xf32, #tpu.memory_space<vmem>>, vector<1x1x32xf32>
    %579 = vector.shape_cast %578 : vector<1x1x32xf32> to vector<1x32xf32>
    %580 = vector.shape_cast %577 : vector<1x32xf32> to vector<1x1x32xf32>
    tpu.vector_store %arg13[%c0_195, %c0_196, %c0_197], %580 {strides = array<i32>} : memref<1x16x32xf32, #tpu.memory_space<vmem>>, vector<1x1x32xf32>,
    %c0_198 = arith.constant 0 : index
    %c1_199 = arith.constant 1 : index
    %c0_200 = arith.constant 0 : index
    %581 = vector.load %arg14[%c0_198, %c1_199, %c0_200] : memref<1x16x128xf32, #tpu.memory_space<vmem>>, vector<1x1x128xf32>
    %582 = vector.shape_cast %581 : vector<1x1x128xf32> to vector<1x128xf32>
    %cst_201 = arith.constant dense<0.000000e+00> : vector<1x128xf32>
    %583 = tpu.matmul %577, %536, %cst_201 {dimension_numbers = #tpu.dot_dimension_numbers<[1], [0], [0], [1], [0, 0, 1, 1], [], []>} : vector<1x32xf32>, vector<32x128xf32>, vector<1x128xf32> -> vector<1x128xf32>
    %584 = arith.addf %582, %583 : vector<1x128xf32>
    %585 = vector.extract_strided_slice %584 {offsets = [0, 0], sizes = [1, 32], strides = [1, 1]} : vector<1x128xf32> to vector<1x32xf32>
    %586 = arith.negf %585 : vector<1x32xf32>
    %587 = math.exp %586 : vector<1x32xf32>
    %cst_202 = arith.constant 1.000000e+00 : f32
    %588 = vector.broadcast %cst_202 : f32 to vector<1x32xf32>
    %589 = arith.addf %588, %587 : vector<1x32xf32>
    %590 = arith.divf %588, %589 : vector<1x32xf32>
    %591 = vector.extract_strided_slice %584 {offsets = [0, 32], sizes = [1, 32], strides = [1, 1]} : vector<1x128xf32> to vector<1x32xf32>
    %592 = arith.negf %591 : vector<1x32xf32>
    %593 = math.exp %592 : vector<1x32xf32>
    %cst_203 = arith.constant 1.000000e+00 : f32
    %594 = vector.broadcast %cst_203 : f32 to vector<1x32xf32>
    %595 = arith.addf %594, %593 : vector<1x32xf32>
    %596 = arith.divf %594, %595 : vector<1x32xf32>
    %597 = vector.extract_strided_slice %584 {offsets = [0, 64], sizes = [1, 32], strides = [1, 1]} : vector<1x128xf32> to vector<1x32xf32>
    %598 = math.tanh %597 : vector<1x32xf32>
    %599 = vector.extract_strided_slice %584 {offsets = [0, 96], sizes = [1, 32], strides = [1, 1]} : vector<1x128xf32> to vector<1x32xf32>
    %600 = arith.negf %599 : vector<1x32xf32>
    %601 = math.exp %600 : vector<1x32xf32>
    %cst_204 = arith.constant 1.000000e+00 : f32
    %602 = vector.broadcast %cst_204 : f32 to vector<1x32xf32>
    %603 = arith.addf %602, %601 : vector<1x32xf32>
    %604 = arith.divf %602, %603 : vector<1x32xf32>
    %605 = arith.mulf %596, %575 : vector<1x32xf32>
    %606 = arith.mulf %590, %598 : vector<1x32xf32>
    %607 = arith.addf %605, %606 : vector<1x32xf32>
    %608 = math.tanh %607 : vector<1x32xf32>
    %609 = arith.mulf %604, %608 : vector<1x32xf32>
    %c0_205 = arith.constant 0 : index
    %c1_206 = arith.constant 1 : index
    %c0_207 = arith.constant 0 : index
    %610 = vector.load %arg13[%c0_205, %c1_206, %c0_207] : memref<1x16x32xf32, #tpu.memory_space<vmem>>, vector<1x1x32xf32>
    %611 = vector.shape_cast %610 : vector<1x1x32xf32> to vector<1x32xf32>
    %612 = vector.shape_cast %609 : vector<1x32xf32> to vector<1x1x32xf32>
    tpu.vector_store %arg13[%c0_205, %c1_206, %c0_207], %612 {strides = array<i32>} : memref<1x16x32xf32, #tpu.memory_space<vmem>>, vector<1x1x32xf32>,
    %c0_208 = arith.constant 0 : index
    %c2_209 = arith.constant 2 : index
    %c0_210 = arith.constant 0 : index
    %613 = vector.load %arg14[%c0_208, %c2_209, %c0_210] : memref<1x16x128xf32, #tpu.memory_space<vmem>>, vector<1x1x128xf32>
    %614 = vector.shape_cast %613 : vector<1x1x128xf32> to vector<1x128xf32>
    %cst_211 = arith.constant dense<0.000000e+00> : vector<1x128xf32>
    %615 = tpu.matmul %609, %536, %cst_211 {dimension_numbers = #tpu.dot_dimension_numbers<[1], [0], [0], [1], [0, 0, 1, 1], [], []>} : vector<1x32xf32>, vector<32x128xf32>, vector<1x128xf32> -> vector<1x128xf32>
    %616 = arith.addf %614, %615 : vector<1x128xf32>
    %617 = vector.extract_strided_slice %616 {offsets = [0, 0], sizes = [1, 32], strides = [1, 1]} : vector<1x128xf32> to vector<1x32xf32>
    %618 = arith.negf %617 : vector<1x32xf32>
    %619 = math.exp %618 : vector<1x32xf32>
    %cst_212 = arith.constant 1.000000e+00 : f32
    %620 = vector.broadcast %cst_212 : f32 to vector<1x32xf32>
    %621 = arith.addf %620, %619 : vector<1x32xf32>
    %622 = arith.divf %620, %621 : vector<1x32xf32>
    %623 = vector.extract_strided_slice %616 {offsets = [0, 32], sizes = [1, 32], strides = [1, 1]} : vector<1x128xf32> to vector<1x32xf32>
    %624 = arith.negf %623 : vector<1x32xf32>
    %625 = math.exp %624 : vector<1x32xf32>
    %cst_213 = arith.constant 1.000000e+00 : f32
    %626 = vector.broadcast %cst_213 : f32 to vector<1x32xf32>
    %627 = arith.addf %626, %625 : vector<1x32xf32>
    %628 = arith.divf %626, %627 : vector<1x32xf32>
    %629 = vector.extract_strided_slice %616 {offsets = [0, 64], sizes = [1, 32], strides = [1, 1]} : vector<1x128xf32> to vector<1x32xf32>
    %630 = math.tanh %629 : vector<1x32xf32>
    %631 = vector.extract_strided_slice %616 {offsets = [0, 96], sizes = [1, 32], strides = [1, 1]} : vector<1x128xf32> to vector<1x32xf32>
    %632 = arith.negf %631 : vector<1x32xf32>
    %633 = math.exp %632 : vector<1x32xf32>
    %cst_214 = arith.constant 1.000000e+00 : f32
    %634 = vector.broadcast %cst_214 : f32 to vector<1x32xf32>
    %635 = arith.addf %634, %633 : vector<1x32xf32>
    %636 = arith.divf %634, %635 : vector<1x32xf32>
    %637 = arith.mulf %628, %607 : vector<1x32xf32>
    %638 = arith.mulf %622, %630 : vector<1x32xf32>
    %639 = arith.addf %637, %638 : vector<1x32xf32>
    %640 = math.tanh %639 : vector<1x32xf32>
    %641 = arith.mulf %636, %640 : vector<1x32xf32>
    %c0_215 = arith.constant 0 : index
    %c2_216 = arith.constant 2 : index
    %c0_217 = arith.constant 0 : index
    %642 = vector.load %arg13[%c0_215, %c2_216, %c0_217] : memref<1x16x32xf32, #tpu.memory_space<vmem>>, vector<1x1x32xf32>
    %643 = vector.shape_cast %642 : vector<1x1x32xf32> to vector<1x32xf32>
    %644 = vector.shape_cast %641 : vector<1x32xf32> to vector<1x1x32xf32>
    tpu.vector_store %arg13[%c0_215, %c2_216, %c0_217], %644 {strides = array<i32>} : memref<1x16x32xf32, #tpu.memory_space<vmem>>, vector<1x1x32xf32>,
    %c0_218 = arith.constant 0 : index
    %c3_219 = arith.constant 3 : index
    %c0_220 = arith.constant 0 : index
    %645 = vector.load %arg14[%c0_218, %c3_219, %c0_220] : memref<1x16x128xf32, #tpu.memory_space<vmem>>, vector<1x1x128xf32>
    %646 = vector.shape_cast %645 : vector<1x1x128xf32> to vector<1x128xf32>
    %cst_221 = arith.constant dense<0.000000e+00> : vector<1x128xf32>
    %647 = tpu.matmul %641, %536, %cst_221 {dimension_numbers = #tpu.dot_dimension_numbers<[1], [0], [0], [1], [0, 0, 1, 1], [], []>} : vector<1x32xf32>, vector<32x128xf32>, vector<1x128xf32> -> vector<1x128xf32>
    %648 = arith.addf %646, %647 : vector<1x128xf32>
    %649 = vector.extract_strided_slice %648 {offsets = [0, 0], sizes = [1, 32], strides = [1, 1]} : vector<1x128xf32> to vector<1x32xf32>
    %650 = arith.negf %649 : vector<1x32xf32>
    %651 = math.exp %650 : vector<1x32xf32>
    %cst_222 = arith.constant 1.000000e+00 : f32
    %652 = vector.broadcast %cst_222 : f32 to vector<1x32xf32>
    %653 = arith.addf %652, %651 : vector<1x32xf32>
    %654 = arith.divf %652, %653 : vector<1x32xf32>
    %655 = vector.extract_strided_slice %648 {offsets = [0, 32], sizes = [1, 32], strides = [1, 1]} : vector<1x128xf32> to vector<1x32xf32>
    %656 = arith.negf %655 : vector<1x32xf32>
    %657 = math.exp %656 : vector<1x32xf32>
    %cst_223 = arith.constant 1.000000e+00 : f32
    %658 = vector.broadcast %cst_223 : f32 to vector<1x32xf32>
    %659 = arith.addf %658, %657 : vector<1x32xf32>
    %660 = arith.divf %658, %659 : vector<1x32xf32>
    %661 = vector.extract_strided_slice %648 {offsets = [0, 64], sizes = [1, 32], strides = [1, 1]} : vector<1x128xf32> to vector<1x32xf32>
    %662 = math.tanh %661 : vector<1x32xf32>
    %663 = vector.extract_strided_slice %648 {offsets = [0, 96], sizes = [1, 32], strides = [1, 1]} : vector<1x128xf32> to vector<1x32xf32>
    %664 = arith.negf %663 : vector<1x32xf32>
    %665 = math.exp %664 : vector<1x32xf32>
    %cst_224 = arith.constant 1.000000e+00 : f32
    %666 = vector.broadcast %cst_224 : f32 to vector<1x32xf32>
    %667 = arith.addf %666, %665 : vector<1x32xf32>
    %668 = arith.divf %666, %667 : vector<1x32xf32>
    %669 = arith.mulf %660, %639 : vector<1x32xf32>
    %670 = arith.mulf %654, %662 : vector<1x32xf32>
    %671 = arith.addf %669, %670 : vector<1x32xf32>
    %672 = math.tanh %671 : vector<1x32xf32>
    %673 = arith.mulf %668, %672 : vector<1x32xf32>
    %c0_225 = arith.constant 0 : index
    %c3_226 = arith.constant 3 : index
    %c0_227 = arith.constant 0 : index
    %674 = vector.load %arg13[%c0_225, %c3_226, %c0_227] : memref<1x16x32xf32, #tpu.memory_space<vmem>>, vector<1x1x32xf32>
    %675 = vector.shape_cast %674 : vector<1x1x32xf32> to vector<1x32xf32>
    %676 = vector.shape_cast %673 : vector<1x32xf32> to vector<1x1x32xf32>
    tpu.vector_store %arg13[%c0_225, %c3_226, %c0_227], %676 {strides = array<i32>} : memref<1x16x32xf32, #tpu.memory_space<vmem>>, vector<1x1x32xf32>,
    %c0_228 = arith.constant 0 : index
    %c4_229 = arith.constant 4 : index
    %c0_230 = arith.constant 0 : index
    %677 = vector.load %arg14[%c0_228, %c4_229, %c0_230] : memref<1x16x128xf32, #tpu.memory_space<vmem>>, vector<1x1x128xf32>
    %678 = vector.shape_cast %677 : vector<1x1x128xf32> to vector<1x128xf32>
    %cst_231 = arith.constant dense<0.000000e+00> : vector<1x128xf32>
    %679 = tpu.matmul %673, %536, %cst_231 {dimension_numbers = #tpu.dot_dimension_numbers<[1], [0], [0], [1], [0, 0, 1, 1], [], []>} : vector<1x32xf32>, vector<32x128xf32>, vector<1x128xf32> -> vector<1x128xf32>
    %680 = arith.addf %678, %679 : vector<1x128xf32>
    %681 = vector.extract_strided_slice %680 {offsets = [0, 0], sizes = [1, 32], strides = [1, 1]} : vector<1x128xf32> to vector<1x32xf32>
    %682 = arith.negf %681 : vector<1x32xf32>
    %683 = math.exp %682 : vector<1x32xf32>
    %cst_232 = arith.constant 1.000000e+00 : f32
    %684 = vector.broadcast %cst_232 : f32 to vector<1x32xf32>
    %685 = arith.addf %684, %683 : vector<1x32xf32>
    %686 = arith.divf %684, %685 : vector<1x32xf32>
    %687 = vector.extract_strided_slice %680 {offsets = [0, 32], sizes = [1, 32], strides = [1, 1]} : vector<1x128xf32> to vector<1x32xf32>
    %688 = arith.negf %687 : vector<1x32xf32>
    %689 = math.exp %688 : vector<1x32xf32>
    %cst_233 = arith.constant 1.000000e+00 : f32
    %690 = vector.broadcast %cst_233 : f32 to vector<1x32xf32>
    %691 = arith.addf %690, %689 : vector<1x32xf32>
    %692 = arith.divf %690, %691 : vector<1x32xf32>
    %693 = vector.extract_strided_slice %680 {offsets = [0, 64], sizes = [1, 32], strides = [1, 1]} : vector<1x128xf32> to vector<1x32xf32>
    %694 = math.tanh %693 : vector<1x32xf32>
    %695 = vector.extract_strided_slice %680 {offsets = [0, 96], sizes = [1, 32], strides = [1, 1]} : vector<1x128xf32> to vector<1x32xf32>
    %696 = arith.negf %695 : vector<1x32xf32>
    %697 = math.exp %696 : vector<1x32xf32>
    %cst_234 = arith.constant 1.000000e+00 : f32
    %698 = vector.broadcast %cst_234 : f32 to vector<1x32xf32>
    %699 = arith.addf %698, %697 : vector<1x32xf32>
    %700 = arith.divf %698, %699 : vector<1x32xf32>
    %701 = arith.mulf %692, %671 : vector<1x32xf32>
    %702 = arith.mulf %686, %694 : vector<1x32xf32>
    %703 = arith.addf %701, %702 : vector<1x32xf32>
    %704 = math.tanh %703 : vector<1x32xf32>
    %705 = arith.mulf %700, %704 : vector<1x32xf32>
    %c0_235 = arith.constant 0 : index
    %c4_236 = arith.constant 4 : index
    %c0_237 = arith.constant 0 : index
    %706 = vector.load %arg13[%c0_235, %c4_236, %c0_237] : memref<1x16x32xf32, #tpu.memory_space<vmem>>, vector<1x1x32xf32>
    %707 = vector.shape_cast %706 : vector<1x1x32xf32> to vector<1x32xf32>
    %708 = vector.shape_cast %705 : vector<1x32xf32> to vector<1x1x32xf32>
    tpu.vector_store %arg13[%c0_235, %c4_236, %c0_237], %708 {strides = array<i32>} : memref<1x16x32xf32, #tpu.memory_space<vmem>>, vector<1x1x32xf32>,
    %c0_238 = arith.constant 0 : index
    %c5_239 = arith.constant 5 : index
    %c0_240 = arith.constant 0 : index
    %709 = vector.load %arg14[%c0_238, %c5_239, %c0_240] : memref<1x16x128xf32, #tpu.memory_space<vmem>>, vector<1x1x128xf32>
    %710 = vector.shape_cast %709 : vector<1x1x128xf32> to vector<1x128xf32>
    %cst_241 = arith.constant dense<0.000000e+00> : vector<1x128xf32>
    %711 = tpu.matmul %705, %536, %cst_241 {dimension_numbers = #tpu.dot_dimension_numbers<[1], [0], [0], [1], [0, 0, 1, 1], [], []>} : vector<1x32xf32>, vector<32x128xf32>, vector<1x128xf32> -> vector<1x128xf32>
    %712 = arith.addf %710, %711 : vector<1x128xf32>
    %713 = vector.extract_strided_slice %712 {offsets = [0, 0], sizes = [1, 32], strides = [1, 1]} : vector<1x128xf32> to vector<1x32xf32>
    %714 = arith.negf %713 : vector<1x32xf32>
    %715 = math.exp %714 : vector<1x32xf32>
    %cst_242 = arith.constant 1.000000e+00 : f32
    %716 = vector.broadcast %cst_242 : f32 to vector<1x32xf32>
    %717 = arith.addf %716, %715 : vector<1x32xf32>
    %718 = arith.divf %716, %717 : vector<1x32xf32>
    %719 = vector.extract_strided_slice %712 {offsets = [0, 32], sizes = [1, 32], strides = [1, 1]} : vector<1x128xf32> to vector<1x32xf32>
    %720 = arith.negf %719 : vector<1x32xf32>
    %721 = math.exp %720 : vector<1x32xf32>
    %cst_243 = arith.constant 1.000000e+00 : f32
    %722 = vector.broadcast %cst_243 : f32 to vector<1x32xf32>
    %723 = arith.addf %722, %721 : vector<1x32xf32>
    %724 = arith.divf %722, %723 : vector<1x32xf32>
    %725 = vector.extract_strided_slice %712 {offsets = [0, 64], sizes = [1, 32], strides = [1, 1]} : vector<1x128xf32> to vector<1x32xf32>
    %726 = math.tanh %725 : vector<1x32xf32>
    %727 = vector.extract_strided_slice %712 {offsets = [0, 96], sizes = [1, 32], strides = [1, 1]} : vector<1x128xf32> to vector<1x32xf32>
    %728 = arith.negf %727 : vector<1x32xf32>
    %729 = math.exp %728 : vector<1x32xf32>
    %cst_244 = arith.constant 1.000000e+00 : f32
    %730 = vector.broadcast %cst_244 : f32 to vector<1x32xf32>
    %731 = arith.addf %730, %729 : vector<1x32xf32>
    %732 = arith.divf %730, %731 : vector<1x32xf32>
    %733 = arith.mulf %724, %703 : vector<1x32xf32>
    %734 = arith.mulf %718, %726 : vector<1x32xf32>
    %735 = arith.addf %733, %734 : vector<1x32xf32>
    %736 = math.tanh %735 : vector<1x32xf32>
    %737 = arith.mulf %732, %736 : vector<1x32xf32>
    %c0_245 = arith.constant 0 : index
    %c5_246 = arith.constant 5 : index
    %c0_247 = arith.constant 0 : index
    %738 = vector.load %arg13[%c0_245, %c5_246, %c0_247] : memref<1x16x32xf32, #tpu.memory_space<vmem>>, vector<1x1x32xf32>
    %739 = vector.shape_cast %738 : vector<1x1x32xf32> to vector<1x32xf32>
    %740 = vector.shape_cast %737 : vector<1x32xf32> to vector<1x1x32xf32>
    tpu.vector_store %arg13[%c0_245, %c5_246, %c0_247], %740 {strides = array<i32>} : memref<1x16x32xf32, #tpu.memory_space<vmem>>, vector<1x1x32xf32>,
    %c0_248 = arith.constant 0 : index
    %c6_249 = arith.constant 6 : index
    %c0_250 = arith.constant 0 : index
    %741 = vector.load %arg14[%c0_248, %c6_249, %c0_250] : memref<1x16x128xf32, #tpu.memory_space<vmem>>, vector<1x1x128xf32>
    %742 = vector.shape_cast %741 : vector<1x1x128xf32> to vector<1x128xf32>
    %cst_251 = arith.constant dense<0.000000e+00> : vector<1x128xf32>
    %743 = tpu.matmul %737, %536, %cst_251 {dimension_numbers = #tpu.dot_dimension_numbers<[1], [0], [0], [1], [0, 0, 1, 1], [], []>} : vector<1x32xf32>, vector<32x128xf32>, vector<1x128xf32> -> vector<1x128xf32>
    %744 = arith.addf %742, %743 : vector<1x128xf32>
    %745 = vector.extract_strided_slice %744 {offsets = [0, 0], sizes = [1, 32], strides = [1, 1]} : vector<1x128xf32> to vector<1x32xf32>
    %746 = arith.negf %745 : vector<1x32xf32>
    %747 = math.exp %746 : vector<1x32xf32>
    %cst_252 = arith.constant 1.000000e+00 : f32
    %748 = vector.broadcast %cst_252 : f32 to vector<1x32xf32>
    %749 = arith.addf %748, %747 : vector<1x32xf32>
    %750 = arith.divf %748, %749 : vector<1x32xf32>
    %751 = vector.extract_strided_slice %744 {offsets = [0, 32], sizes = [1, 32], strides = [1, 1]} : vector<1x128xf32> to vector<1x32xf32>
    %752 = arith.negf %751 : vector<1x32xf32>
    %753 = math.exp %752 : vector<1x32xf32>
    %cst_253 = arith.constant 1.000000e+00 : f32
    %754 = vector.broadcast %cst_253 : f32 to vector<1x32xf32>
    %755 = arith.addf %754, %753 : vector<1x32xf32>
    %756 = arith.divf %754, %755 : vector<1x32xf32>
    %757 = vector.extract_strided_slice %744 {offsets = [0, 64], sizes = [1, 32], strides = [1, 1]} : vector<1x128xf32> to vector<1x32xf32>
    %758 = math.tanh %757 : vector<1x32xf32>
    %759 = vector.extract_strided_slice %744 {offsets = [0, 96], sizes = [1, 32], strides = [1, 1]} : vector<1x128xf32> to vector<1x32xf32>
    %760 = arith.negf %759 : vector<1x32xf32>
    %761 = math.exp %760 : vector<1x32xf32>
    %cst_254 = arith.constant 1.000000e+00 : f32
    %762 = vector.broadcast %cst_254 : f32 to vector<1x32xf32>
    %763 = arith.addf %762, %761 : vector<1x32xf32>
    %764 = arith.divf %762, %763 : vector<1x32xf32>
    %765 = arith.mulf %756, %735 : vector<1x32xf32>
    %766 = arith.mulf %750, %758 : vector<1x32xf32>
    %767 = arith.addf %765, %766 : vector<1x32xf32>
    %768 = math.tanh %767 : vector<1x32xf32>
    %769 = arith.mulf %764, %768 : vector<1x32xf32>
    %c0_255 = arith.constant 0 : index
    %c6_256 = arith.constant 6 : index
    %c0_257 = arith.constant 0 : index
    %770 = vector.load %arg13[%c0_255, %c6_256, %c0_257] : memref<1x16x32xf32, #tpu.memory_space<vmem>>, vector<1x1x32xf32>
    %771 = vector.shape_cast %770 : vector<1x1x32xf32> to vector<1x32xf32>
    %772 = vector.shape_cast %769 : vector<1x32xf32> to vector<1x1x32xf32>
    tpu.vector_store %arg13[%c0_255, %c6_256, %c0_257], %772 {strides = array<i32>} : memref<1x16x32xf32, #tpu.memory_space<vmem>>, vector<1x1x32xf32>,
    %c0_258 = arith.constant 0 : index
    %c7_259 = arith.constant 7 : index
    %c0_260 = arith.constant 0 : index
    %773 = vector.load %arg14[%c0_258, %c7_259, %c0_260] : memref<1x16x128xf32, #tpu.memory_space<vmem>>, vector<1x1x128xf32>
    %774 = vector.shape_cast %773 : vector<1x1x128xf32> to vector<1x128xf32>
    %cst_261 = arith.constant dense<0.000000e+00> : vector<1x128xf32>
    %775 = tpu.matmul %769, %536, %cst_261 {dimension_numbers = #tpu.dot_dimension_numbers<[1], [0], [0], [1], [0, 0, 1, 1], [], []>} : vector<1x32xf32>, vector<32x128xf32>, vector<1x128xf32> -> vector<1x128xf32>
    %776 = arith.addf %774, %775 : vector<1x128xf32>
    %777 = vector.extract_strided_slice %776 {offsets = [0, 0], sizes = [1, 32], strides = [1, 1]} : vector<1x128xf32> to vector<1x32xf32>
    %778 = arith.negf %777 : vector<1x32xf32>
    %779 = math.exp %778 : vector<1x32xf32>
    %cst_262 = arith.constant 1.000000e+00 : f32
    %780 = vector.broadcast %cst_262 : f32 to vector<1x32xf32>
    %781 = arith.addf %780, %779 : vector<1x32xf32>
    %782 = arith.divf %780, %781 : vector<1x32xf32>
    %783 = vector.extract_strided_slice %776 {offsets = [0, 32], sizes = [1, 32], strides = [1, 1]} : vector<1x128xf32> to vector<1x32xf32>
    %784 = arith.negf %783 : vector<1x32xf32>
    %785 = math.exp %784 : vector<1x32xf32>
    %cst_263 = arith.constant 1.000000e+00 : f32
    %786 = vector.broadcast %cst_263 : f32 to vector<1x32xf32>
    %787 = arith.addf %786, %785 : vector<1x32xf32>
    %788 = arith.divf %786, %787 : vector<1x32xf32>
    %789 = vector.extract_strided_slice %776 {offsets = [0, 64], sizes = [1, 32], strides = [1, 1]} : vector<1x128xf32> to vector<1x32xf32>
    %790 = math.tanh %789 : vector<1x32xf32>
    %791 = vector.extract_strided_slice %776 {offsets = [0, 96], sizes = [1, 32], strides = [1, 1]} : vector<1x128xf32> to vector<1x32xf32>
    %792 = arith.negf %791 : vector<1x32xf32>
    %793 = math.exp %792 : vector<1x32xf32>
    %cst_264 = arith.constant 1.000000e+00 : f32
    %794 = vector.broadcast %cst_264 : f32 to vector<1x32xf32>
    %795 = arith.addf %794, %793 : vector<1x32xf32>
    %796 = arith.divf %794, %795 : vector<1x32xf32>
    %797 = arith.mulf %788, %767 : vector<1x32xf32>
    %798 = arith.mulf %782, %790 : vector<1x32xf32>
    %799 = arith.addf %797, %798 : vector<1x32xf32>
    %800 = math.tanh %799 : vector<1x32xf32>
    %801 = arith.mulf %796, %800 : vector<1x32xf32>
    %c0_265 = arith.constant 0 : index
    %c7_266 = arith.constant 7 : index
    %c0_267 = arith.constant 0 : index
    %802 = vector.load %arg13[%c0_265, %c7_266, %c0_267] : memref<1x16x32xf32, #tpu.memory_space<vmem>>, vector<1x1x32xf32>
    %803 = vector.shape_cast %802 : vector<1x1x32xf32> to vector<1x32xf32>
    %804 = vector.shape_cast %801 : vector<1x32xf32> to vector<1x1x32xf32>
    tpu.vector_store %arg13[%c0_265, %c7_266, %c0_267], %804 {strides = array<i32>} : memref<1x16x32xf32, #tpu.memory_space<vmem>>, vector<1x1x32xf32>,
    %c0_268 = arith.constant 0 : index
    %c8_269 = arith.constant 8 : index
    %c0_270 = arith.constant 0 : index
    %805 = vector.load %arg14[%c0_268, %c8_269, %c0_270] : memref<1x16x128xf32, #tpu.memory_space<vmem>>, vector<1x1x128xf32>
    %806 = vector.shape_cast %805 : vector<1x1x128xf32> to vector<1x128xf32>
    %cst_271 = arith.constant dense<0.000000e+00> : vector<1x128xf32>
    %807 = tpu.matmul %801, %536, %cst_271 {dimension_numbers = #tpu.dot_dimension_numbers<[1], [0], [0], [1], [0, 0, 1, 1], [], []>} : vector<1x32xf32>, vector<32x128xf32>, vector<1x128xf32> -> vector<1x128xf32>
    %808 = arith.addf %806, %807 : vector<1x128xf32>
    %809 = vector.extract_strided_slice %808 {offsets = [0, 0], sizes = [1, 32], strides = [1, 1]} : vector<1x128xf32> to vector<1x32xf32>
    %810 = arith.negf %809 : vector<1x32xf32>
    %811 = math.exp %810 : vector<1x32xf32>
    %cst_272 = arith.constant 1.000000e+00 : f32
    %812 = vector.broadcast %cst_272 : f32 to vector<1x32xf32>
    %813 = arith.addf %812, %811 : vector<1x32xf32>
    %814 = arith.divf %812, %813 : vector<1x32xf32>
    %815 = vector.extract_strided_slice %808 {offsets = [0, 32], sizes = [1, 32], strides = [1, 1]} : vector<1x128xf32> to vector<1x32xf32>
    %816 = arith.negf %815 : vector<1x32xf32>
    %817 = math.exp %816 : vector<1x32xf32>
    %cst_273 = arith.constant 1.000000e+00 : f32
    %818 = vector.broadcast %cst_273 : f32 to vector<1x32xf32>
    %819 = arith.addf %818, %817 : vector<1x32xf32>
    %820 = arith.divf %818, %819 : vector<1x32xf32>
    %821 = vector.extract_strided_slice %808 {offsets = [0, 64], sizes = [1, 32], strides = [1, 1]} : vector<1x128xf32> to vector<1x32xf32>
    %822 = math.tanh %821 : vector<1x32xf32>
    %823 = vector.extract_strided_slice %808 {offsets = [0, 96], sizes = [1, 32], strides = [1, 1]} : vector<1x128xf32> to vector<1x32xf32>
    %824 = arith.negf %823 : vector<1x32xf32>
    %825 = math.exp %824 : vector<1x32xf32>
    %cst_274 = arith.constant 1.000000e+00 : f32
    %826 = vector.broadcast %cst_274 : f32 to vector<1x32xf32>
    %827 = arith.addf %826, %825 : vector<1x32xf32>
    %828 = arith.divf %826, %827 : vector<1x32xf32>
    %829 = arith.mulf %820, %799 : vector<1x32xf32>
    %830 = arith.mulf %814, %822 : vector<1x32xf32>
    %831 = arith.addf %829, %830 : vector<1x32xf32>
    %832 = math.tanh %831 : vector<1x32xf32>
    %833 = arith.mulf %828, %832 : vector<1x32xf32>
    %c0_275 = arith.constant 0 : index
    %c8_276 = arith.constant 8 : index
    %c0_277 = arith.constant 0 : index
    %834 = vector.load %arg13[%c0_275, %c8_276, %c0_277] : memref<1x16x32xf32, #tpu.memory_space<vmem>>, vector<1x1x32xf32>
    %835 = vector.shape_cast %834 : vector<1x1x32xf32> to vector<1x32xf32>
    %836 = vector.shape_cast %833 : vector<1x32xf32> to vector<1x1x32xf32>
    tpu.vector_store %arg13[%c0_275, %c8_276, %c0_277], %836 {strides = array<i32>} : memref<1x16x32xf32, #tpu.memory_space<vmem>>, vector<1x1x32xf32>,
    %c0_278 = arith.constant 0 : index
    %c9_279 = arith.constant 9 : index
    %c0_280 = arith.constant 0 : index
    %837 = vector.load %arg14[%c0_278, %c9_279, %c0_280] : memref<1x16x128xf32, #tpu.memory_space<vmem>>, vector<1x1x128xf32>
    %838 = vector.shape_cast %837 : vector<1x1x128xf32> to vector<1x128xf32>
    %cst_281 = arith.constant dense<0.000000e+00> : vector<1x128xf32>
    %839 = tpu.matmul %833, %536, %cst_281 {dimension_numbers = #tpu.dot_dimension_numbers<[1], [0], [0], [1], [0, 0, 1, 1], [], []>} : vector<1x32xf32>, vector<32x128xf32>, vector<1x128xf32> -> vector<1x128xf32>
    %840 = arith.addf %838, %839 : vector<1x128xf32>
    %841 = vector.extract_strided_slice %840 {offsets = [0, 0], sizes = [1, 32], strides = [1, 1]} : vector<1x128xf32> to vector<1x32xf32>
    %842 = arith.negf %841 : vector<1x32xf32>
    %843 = math.exp %842 : vector<1x32xf32>
    %cst_282 = arith.constant 1.000000e+00 : f32
    %844 = vector.broadcast %cst_282 : f32 to vector<1x32xf32>
    %845 = arith.addf %844, %843 : vector<1x32xf32>
    %846 = arith.divf %844, %845 : vector<1x32xf32>
    %847 = vector.extract_strided_slice %840 {offsets = [0, 32], sizes = [1, 32], strides = [1, 1]} : vector<1x128xf32> to vector<1x32xf32>
    %848 = arith.negf %847 : vector<1x32xf32>
    %849 = math.exp %848 : vector<1x32xf32>
    %cst_283 = arith.constant 1.000000e+00 : f32
    %850 = vector.broadcast %cst_283 : f32 to vector<1x32xf32>
    %851 = arith.addf %850, %849 : vector<1x32xf32>
    %852 = arith.divf %850, %851 : vector<1x32xf32>
    %853 = vector.extract_strided_slice %840 {offsets = [0, 64], sizes = [1, 32], strides = [1, 1]} : vector<1x128xf32> to vector<1x32xf32>
    %854 = math.tanh %853 : vector<1x32xf32>
    %855 = vector.extract_strided_slice %840 {offsets = [0, 96], sizes = [1, 32], strides = [1, 1]} : vector<1x128xf32> to vector<1x32xf32>
    %856 = arith.negf %855 : vector<1x32xf32>
    %857 = math.exp %856 : vector<1x32xf32>
    %cst_284 = arith.constant 1.000000e+00 : f32
    %858 = vector.broadcast %cst_284 : f32 to vector<1x32xf32>
    %859 = arith.addf %858, %857 : vector<1x32xf32>
    %860 = arith.divf %858, %859 : vector<1x32xf32>
    %861 = arith.mulf %852, %831 : vector<1x32xf32>
    %862 = arith.mulf %846, %854 : vector<1x32xf32>
    %863 = arith.addf %861, %862 : vector<1x32xf32>
    %864 = math.tanh %863 : vector<1x32xf32>
    %865 = arith.mulf %860, %864 : vector<1x32xf32>
    %c0_285 = arith.constant 0 : index
    %c9_286 = arith.constant 9 : index
    %c0_287 = arith.constant 0 : index
    %866 = vector.load %arg13[%c0_285, %c9_286, %c0_287] : memref<1x16x32xf32, #tpu.memory_space<vmem>>, vector<1x1x32xf32>
    %867 = vector.shape_cast %866 : vector<1x1x32xf32> to vector<1x32xf32>
    %868 = vector.shape_cast %865 : vector<1x32xf32> to vector<1x1x32xf32>
    tpu.vector_store %arg13[%c0_285, %c9_286, %c0_287], %868 {strides = array<i32>} : memref<1x16x32xf32, #tpu.memory_space<vmem>>, vector<1x1x32xf32>,
    %c0_288 = arith.constant 0 : index
    %c10_289 = arith.constant 10 : index
    %c0_290 = arith.constant 0 : index
    %869 = vector.load %arg14[%c0_288, %c10_289, %c0_290] : memref<1x16x128xf32, #tpu.memory_space<vmem>>, vector<1x1x128xf32>
    %870 = vector.shape_cast %869 : vector<1x1x128xf32> to vector<1x128xf32>
    %cst_291 = arith.constant dense<0.000000e+00> : vector<1x128xf32>
    %871 = tpu.matmul %865, %536, %cst_291 {dimension_numbers = #tpu.dot_dimension_numbers<[1], [0], [0], [1], [0, 0, 1, 1], [], []>} : vector<1x32xf32>, vector<32x128xf32>, vector<1x128xf32> -> vector<1x128xf32>
    %872 = arith.addf %870, %871 : vector<1x128xf32>
    %873 = vector.extract_strided_slice %872 {offsets = [0, 0], sizes = [1, 32], strides = [1, 1]} : vector<1x128xf32> to vector<1x32xf32>
    %874 = arith.negf %873 : vector<1x32xf32>
    %875 = math.exp %874 : vector<1x32xf32>
    %cst_292 = arith.constant 1.000000e+00 : f32
    %876 = vector.broadcast %cst_292 : f32 to vector<1x32xf32>
    %877 = arith.addf %876, %875 : vector<1x32xf32>
    %878 = arith.divf %876, %877 : vector<1x32xf32>
    %879 = vector.extract_strided_slice %872 {offsets = [0, 32], sizes = [1, 32], strides = [1, 1]} : vector<1x128xf32> to vector<1x32xf32>
    %880 = arith.negf %879 : vector<1x32xf32>
    %881 = math.exp %880 : vector<1x32xf32>
    %cst_293 = arith.constant 1.000000e+00 : f32
    %882 = vector.broadcast %cst_293 : f32 to vector<1x32xf32>
    %883 = arith.addf %882, %881 : vector<1x32xf32>
    %884 = arith.divf %882, %883 : vector<1x32xf32>
    %885 = vector.extract_strided_slice %872 {offsets = [0, 64], sizes = [1, 32], strides = [1, 1]} : vector<1x128xf32> to vector<1x32xf32>
    %886 = math.tanh %885 : vector<1x32xf32>
    %887 = vector.extract_strided_slice %872 {offsets = [0, 96], sizes = [1, 32], strides = [1, 1]} : vector<1x128xf32> to vector<1x32xf32>
    %888 = arith.negf %887 : vector<1x32xf32>
    %889 = math.exp %888 : vector<1x32xf32>
    %cst_294 = arith.constant 1.000000e+00 : f32
    %890 = vector.broadcast %cst_294 : f32 to vector<1x32xf32>
    %891 = arith.addf %890, %889 : vector<1x32xf32>
    %892 = arith.divf %890, %891 : vector<1x32xf32>
    %893 = arith.mulf %884, %863 : vector<1x32xf32>
    %894 = arith.mulf %878, %886 : vector<1x32xf32>
    %895 = arith.addf %893, %894 : vector<1x32xf32>
    %896 = math.tanh %895 : vector<1x32xf32>
    %897 = arith.mulf %892, %896 : vector<1x32xf32>
    %c0_295 = arith.constant 0 : index
    %c10_296 = arith.constant 10 : index
    %c0_297 = arith.constant 0 : index
    %898 = vector.load %arg13[%c0_295, %c10_296, %c0_297] : memref<1x16x32xf32, #tpu.memory_space<vmem>>, vector<1x1x32xf32>
    %899 = vector.shape_cast %898 : vector<1x1x32xf32> to vector<1x32xf32>
    %900 = vector.shape_cast %897 : vector<1x32xf32> to vector<1x1x32xf32>
    tpu.vector_store %arg13[%c0_295, %c10_296, %c0_297], %900 {strides = array<i32>} : memref<1x16x32xf32, #tpu.memory_space<vmem>>, vector<1x1x32xf32>,
    %c0_298 = arith.constant 0 : index
    %c11_299 = arith.constant 11 : index
    %c0_300 = arith.constant 0 : index
    %901 = vector.load %arg14[%c0_298, %c11_299, %c0_300] : memref<1x16x128xf32, #tpu.memory_space<vmem>>, vector<1x1x128xf32>
    %902 = vector.shape_cast %901 : vector<1x1x128xf32> to vector<1x128xf32>
    %cst_301 = arith.constant dense<0.000000e+00> : vector<1x128xf32>
    %903 = tpu.matmul %897, %536, %cst_301 {dimension_numbers = #tpu.dot_dimension_numbers<[1], [0], [0], [1], [0, 0, 1, 1], [], []>} : vector<1x32xf32>, vector<32x128xf32>, vector<1x128xf32> -> vector<1x128xf32>
    %904 = arith.addf %902, %903 : vector<1x128xf32>
    %905 = vector.extract_strided_slice %904 {offsets = [0, 0], sizes = [1, 32], strides = [1, 1]} : vector<1x128xf32> to vector<1x32xf32>
    %906 = arith.negf %905 : vector<1x32xf32>
    %907 = math.exp %906 : vector<1x32xf32>
    %cst_302 = arith.constant 1.000000e+00 : f32
    %908 = vector.broadcast %cst_302 : f32 to vector<1x32xf32>
    %909 = arith.addf %908, %907 : vector<1x32xf32>
    %910 = arith.divf %908, %909 : vector<1x32xf32>
    %911 = vector.extract_strided_slice %904 {offsets = [0, 32], sizes = [1, 32], strides = [1, 1]} : vector<1x128xf32> to vector<1x32xf32>
    %912 = arith.negf %911 : vector<1x32xf32>
    %913 = math.exp %912 : vector<1x32xf32>
    %cst_303 = arith.constant 1.000000e+00 : f32
    %914 = vector.broadcast %cst_303 : f32 to vector<1x32xf32>
    %915 = arith.addf %914, %913 : vector<1x32xf32>
    %916 = arith.divf %914, %915 : vector<1x32xf32>
    %917 = vector.extract_strided_slice %904 {offsets = [0, 64], sizes = [1, 32], strides = [1, 1]} : vector<1x128xf32> to vector<1x32xf32>
    %918 = math.tanh %917 : vector<1x32xf32>
    %919 = vector.extract_strided_slice %904 {offsets = [0, 96], sizes = [1, 32], strides = [1, 1]} : vector<1x128xf32> to vector<1x32xf32>
    %920 = arith.negf %919 : vector<1x32xf32>
    %921 = math.exp %920 : vector<1x32xf32>
    %cst_304 = arith.constant 1.000000e+00 : f32
    %922 = vector.broadcast %cst_304 : f32 to vector<1x32xf32>
    %923 = arith.addf %922, %921 : vector<1x32xf32>
    %924 = arith.divf %922, %923 : vector<1x32xf32>
    %925 = arith.mulf %916, %895 : vector<1x32xf32>
    %926 = arith.mulf %910, %918 : vector<1x32xf32>
    %927 = arith.addf %925, %926 : vector<1x32xf32>
    %928 = math.tanh %927 : vector<1x32xf32>
    %929 = arith.mulf %924, %928 : vector<1x32xf32>
    %c0_305 = arith.constant 0 : index
    %c11_306 = arith.constant 11 : index
    %c0_307 = arith.constant 0 : index
    %930 = vector.load %arg13[%c0_305, %c11_306, %c0_307] : memref<1x16x32xf32, #tpu.memory_space<vmem>>, vector<1x1x32xf32>
    %931 = vector.shape_cast %930 : vector<1x1x32xf32> to vector<1x32xf32>
    %932 = vector.shape_cast %929 : vector<1x32xf32> to vector<1x1x32xf32>
    tpu.vector_store %arg13[%c0_305, %c11_306, %c0_307], %932 {strides = array<i32>} : memref<1x16x32xf32, #tpu.memory_space<vmem>>, vector<1x1x32xf32>,
    %c0_308 = arith.constant 0 : index
    %c12_309 = arith.constant 12 : index
    %c0_310 = arith.constant 0 : index
    %933 = vector.load %arg14[%c0_308, %c12_309, %c0_310] : memref<1x16x128xf32, #tpu.memory_space<vmem>>, vector<1x1x128xf32>
    %934 = vector.shape_cast %933 : vector<1x1x128xf32> to vector<1x128xf32>
    %cst_311 = arith.constant dense<0.000000e+00> : vector<1x128xf32>
    %935 = tpu.matmul %929, %536, %cst_311 {dimension_numbers = #tpu.dot_dimension_numbers<[1], [0], [0], [1], [0, 0, 1, 1], [], []>} : vector<1x32xf32>, vector<32x128xf32>, vector<1x128xf32> -> vector<1x128xf32>
    %936 = arith.addf %934, %935 : vector<1x128xf32>
    %937 = vector.extract_strided_slice %936 {offsets = [0, 0], sizes = [1, 32], strides = [1, 1]} : vector<1x128xf32> to vector<1x32xf32>
    %938 = arith.negf %937 : vector<1x32xf32>
    %939 = math.exp %938 : vector<1x32xf32>
    %cst_312 = arith.constant 1.000000e+00 : f32
    %940 = vector.broadcast %cst_312 : f32 to vector<1x32xf32>
    %941 = arith.addf %940, %939 : vector<1x32xf32>
    %942 = arith.divf %940, %941 : vector<1x32xf32>
    %943 = vector.extract_strided_slice %936 {offsets = [0, 32], sizes = [1, 32], strides = [1, 1]} : vector<1x128xf32> to vector<1x32xf32>
    %944 = arith.negf %943 : vector<1x32xf32>
    %945 = math.exp %944 : vector<1x32xf32>
    %cst_313 = arith.constant 1.000000e+00 : f32
    %946 = vector.broadcast %cst_313 : f32 to vector<1x32xf32>
    %947 = arith.addf %946, %945 : vector<1x32xf32>
    %948 = arith.divf %946, %947 : vector<1x32xf32>
    %949 = vector.extract_strided_slice %936 {offsets = [0, 64], sizes = [1, 32], strides = [1, 1]} : vector<1x128xf32> to vector<1x32xf32>
    %950 = math.tanh %949 : vector<1x32xf32>
    %951 = vector.extract_strided_slice %936 {offsets = [0, 96], sizes = [1, 32], strides = [1, 1]} : vector<1x128xf32> to vector<1x32xf32>
    %952 = arith.negf %951 : vector<1x32xf32>
    %953 = math.exp %952 : vector<1x32xf32>
    %cst_314 = arith.constant 1.000000e+00 : f32
    %954 = vector.broadcast %cst_314 : f32 to vector<1x32xf32>
    %955 = arith.addf %954, %953 : vector<1x32xf32>
    %956 = arith.divf %954, %955 : vector<1x32xf32>
    %957 = arith.mulf %948, %927 : vector<1x32xf32>
    %958 = arith.mulf %942, %950 : vector<1x32xf32>
    %959 = arith.addf %957, %958 : vector<1x32xf32>
    %960 = math.tanh %959 : vector<1x32xf32>
    %961 = arith.mulf %956, %960 : vector<1x32xf32>
    %c0_315 = arith.constant 0 : index
    %c12_316 = arith.constant 12 : index
    %c0_317 = arith.constant 0 : index
    %962 = vector.load %arg13[%c0_315, %c12_316, %c0_317] : memref<1x16x32xf32, #tpu.memory_space<vmem>>, vector<1x1x32xf32>
    %963 = vector.shape_cast %962 : vector<1x1x32xf32> to vector<1x32xf32>
    %964 = vector.shape_cast %961 : vector<1x32xf32> to vector<1x1x32xf32>
    tpu.vector_store %arg13[%c0_315, %c12_316, %c0_317], %964 {strides = array<i32>} : memref<1x16x32xf32, #tpu.memory_space<vmem>>, vector<1x1x32xf32>,
    %c0_318 = arith.constant 0 : index
    %c13_319 = arith.constant 13 : index
    %c0_320 = arith.constant 0 : index
    %965 = vector.load %arg14[%c0_318, %c13_319, %c0_320] : memref<1x16x128xf32, #tpu.memory_space<vmem>>, vector<1x1x128xf32>
    %966 = vector.shape_cast %965 : vector<1x1x128xf32> to vector<1x128xf32>
    %cst_321 = arith.constant dense<0.000000e+00> : vector<1x128xf32>
    %967 = tpu.matmul %961, %536, %cst_321 {dimension_numbers = #tpu.dot_dimension_numbers<[1], [0], [0], [1], [0, 0, 1, 1], [], []>} : vector<1x32xf32>, vector<32x128xf32>, vector<1x128xf32> -> vector<1x128xf32>
    %968 = arith.addf %966, %967 : vector<1x128xf32>
    %969 = vector.extract_strided_slice %968 {offsets = [0, 0], sizes = [1, 32], strides = [1, 1]} : vector<1x128xf32> to vector<1x32xf32>
    %970 = arith.negf %969 : vector<1x32xf32>
    %971 = math.exp %970 : vector<1x32xf32>
    %cst_322 = arith.constant 1.000000e+00 : f32
    %972 = vector.broadcast %cst_322 : f32 to vector<1x32xf32>
    %973 = arith.addf %972, %971 : vector<1x32xf32>
    %974 = arith.divf %972, %973 : vector<1x32xf32>
    %975 = vector.extract_strided_slice %968 {offsets = [0, 32], sizes = [1, 32], strides = [1, 1]} : vector<1x128xf32> to vector<1x32xf32>
    %976 = arith.negf %975 : vector<1x32xf32>
    %977 = math.exp %976 : vector<1x32xf32>
    %cst_323 = arith.constant 1.000000e+00 : f32
    %978 = vector.broadcast %cst_323 : f32 to vector<1x32xf32>
    %979 = arith.addf %978, %977 : vector<1x32xf32>
    %980 = arith.divf %978, %979 : vector<1x32xf32>
    %981 = vector.extract_strided_slice %968 {offsets = [0, 64], sizes = [1, 32], strides = [1, 1]} : vector<1x128xf32> to vector<1x32xf32>
    %982 = math.tanh %981 : vector<1x32xf32>
    %983 = vector.extract_strided_slice %968 {offsets = [0, 96], sizes = [1, 32], strides = [1, 1]} : vector<1x128xf32> to vector<1x32xf32>
    %984 = arith.negf %983 : vector<1x32xf32>
    %985 = math.exp %984 : vector<1x32xf32>
    %cst_324 = arith.constant 1.000000e+00 : f32
    %986 = vector.broadcast %cst_324 : f32 to vector<1x32xf32>
    %987 = arith.addf %986, %985 : vector<1x32xf32>
    %988 = arith.divf %986, %987 : vector<1x32xf32>
    %989 = arith.mulf %980, %959 : vector<1x32xf32>
    %990 = arith.mulf %974, %982 : vector<1x32xf32>
    %991 = arith.addf %989, %990 : vector<1x32xf32>
    %992 = math.tanh %991 : vector<1x32xf32>
    %993 = arith.mulf %988, %992 : vector<1x32xf32>
    %c0_325 = arith.constant 0 : index
    %c13_326 = arith.constant 13 : index
    %c0_327 = arith.constant 0 : index
    %994 = vector.load %arg13[%c0_325, %c13_326, %c0_327] : memref<1x16x32xf32, #tpu.memory_space<vmem>>, vector<1x1x32xf32>
    %995 = vector.shape_cast %994 : vector<1x1x32xf32> to vector<1x32xf32>
    %996 = vector.shape_cast %993 : vector<1x32xf32> to vector<1x1x32xf32>
    tpu.vector_store %arg13[%c0_325, %c13_326, %c0_327], %996 {strides = array<i32>} : memref<1x16x32xf32, #tpu.memory_space<vmem>>, vector<1x1x32xf32>,
    %c0_328 = arith.constant 0 : index
    %c14_329 = arith.constant 14 : index
    %c0_330 = arith.constant 0 : index
    %997 = vector.load %arg14[%c0_328, %c14_329, %c0_330] : memref<1x16x128xf32, #tpu.memory_space<vmem>>, vector<1x1x128xf32>
    %998 = vector.shape_cast %997 : vector<1x1x128xf32> to vector<1x128xf32>
    %cst_331 = arith.constant dense<0.000000e+00> : vector<1x128xf32>
    %999 = tpu.matmul %993, %536, %cst_331 {dimension_numbers = #tpu.dot_dimension_numbers<[1], [0], [0], [1], [0, 0, 1, 1], [], []>} : vector<1x32xf32>, vector<32x128xf32>, vector<1x128xf32> -> vector<1x128xf32>
    %1000 = arith.addf %998, %999 : vector<1x128xf32>
    %1001 = vector.extract_strided_slice %1000 {offsets = [0, 0], sizes = [1, 32], strides = [1, 1]} : vector<1x128xf32> to vector<1x32xf32>
    %1002 = arith.negf %1001 : vector<1x32xf32>
    %1003 = math.exp %1002 : vector<1x32xf32>
    %cst_332 = arith.constant 1.000000e+00 : f32
    %1004 = vector.broadcast %cst_332 : f32 to vector<1x32xf32>
    %1005 = arith.addf %1004, %1003 : vector<1x32xf32>
    %1006 = arith.divf %1004, %1005 : vector<1x32xf32>
    %1007 = vector.extract_strided_slice %1000 {offsets = [0, 32], sizes = [1, 32], strides = [1, 1]} : vector<1x128xf32> to vector<1x32xf32>
    %1008 = arith.negf %1007 : vector<1x32xf32>
    %1009 = math.exp %1008 : vector<1x32xf32>
    %cst_333 = arith.constant 1.000000e+00 : f32
    %1010 = vector.broadcast %cst_333 : f32 to vector<1x32xf32>
    %1011 = arith.addf %1010, %1009 : vector<1x32xf32>
    %1012 = arith.divf %1010, %1011 : vector<1x32xf32>
    %1013 = vector.extract_strided_slice %1000 {offsets = [0, 64], sizes = [1, 32], strides = [1, 1]} : vector<1x128xf32> to vector<1x32xf32>
    %1014 = math.tanh %1013 : vector<1x32xf32>
    %1015 = vector.extract_strided_slice %1000 {offsets = [0, 96], sizes = [1, 32], strides = [1, 1]} : vector<1x128xf32> to vector<1x32xf32>
    %1016 = arith.negf %1015 : vector<1x32xf32>
    %1017 = math.exp %1016 : vector<1x32xf32>
    %cst_334 = arith.constant 1.000000e+00 : f32
    %1018 = vector.broadcast %cst_334 : f32 to vector<1x32xf32>
    %1019 = arith.addf %1018, %1017 : vector<1x32xf32>
    %1020 = arith.divf %1018, %1019 : vector<1x32xf32>
    %1021 = arith.mulf %1012, %991 : vector<1x32xf32>
    %1022 = arith.mulf %1006, %1014 : vector<1x32xf32>
    %1023 = arith.addf %1021, %1022 : vector<1x32xf32>
    %1024 = math.tanh %1023 : vector<1x32xf32>
    %1025 = arith.mulf %1020, %1024 : vector<1x32xf32>
    %c0_335 = arith.constant 0 : index
    %c14_336 = arith.constant 14 : index
    %c0_337 = arith.constant 0 : index
    %1026 = vector.load %arg13[%c0_335, %c14_336, %c0_337] : memref<1x16x32xf32, #tpu.memory_space<vmem>>, vector<1x1x32xf32>
    %1027 = vector.shape_cast %1026 : vector<1x1x32xf32> to vector<1x32xf32>
    %1028 = vector.shape_cast %1025 : vector<1x32xf32> to vector<1x1x32xf32>
    tpu.vector_store %arg13[%c0_335, %c14_336, %c0_337], %1028 {strides = array<i32>} : memref<1x16x32xf32, #tpu.memory_space<vmem>>, vector<1x1x32xf32>,
    %c0_338 = arith.constant 0 : index
    %c15_339 = arith.constant 15 : index
    %c0_340 = arith.constant 0 : index
    %1029 = vector.load %arg14[%c0_338, %c15_339, %c0_340] : memref<1x16x128xf32, #tpu.memory_space<vmem>>, vector<1x1x128xf32>
    %1030 = vector.shape_cast %1029 : vector<1x1x128xf32> to vector<1x128xf32>
    %cst_341 = arith.constant dense<0.000000e+00> : vector<1x128xf32>
    %1031 = tpu.matmul %1025, %536, %cst_341 {dimension_numbers = #tpu.dot_dimension_numbers<[1], [0], [0], [1], [0, 0, 1, 1], [], []>} : vector<1x32xf32>, vector<32x128xf32>, vector<1x128xf32> -> vector<1x128xf32>
    %1032 = arith.addf %1030, %1031 : vector<1x128xf32>
    %1033 = vector.extract_strided_slice %1032 {offsets = [0, 0], sizes = [1, 32], strides = [1, 1]} : vector<1x128xf32> to vector<1x32xf32>
    %1034 = arith.negf %1033 : vector<1x32xf32>
    %1035 = math.exp %1034 : vector<1x32xf32>
    %cst_342 = arith.constant 1.000000e+00 : f32
    %1036 = vector.broadcast %cst_342 : f32 to vector<1x32xf32>
    %1037 = arith.addf %1036, %1035 : vector<1x32xf32>
    %1038 = arith.divf %1036, %1037 : vector<1x32xf32>
    %1039 = vector.extract_strided_slice %1032 {offsets = [0, 32], sizes = [1, 32], strides = [1, 1]} : vector<1x128xf32> to vector<1x32xf32>
    %1040 = arith.negf %1039 : vector<1x32xf32>
    %1041 = math.exp %1040 : vector<1x32xf32>
    %cst_343 = arith.constant 1.000000e+00 : f32
    %1042 = vector.broadcast %cst_343 : f32 to vector<1x32xf32>
    %1043 = arith.addf %1042, %1041 : vector<1x32xf32>
    %1044 = arith.divf %1042, %1043 : vector<1x32xf32>
    %1045 = vector.extract_strided_slice %1032 {offsets = [0, 64], sizes = [1, 32], strides = [1, 1]} : vector<1x128xf32> to vector<1x32xf32>
    %1046 = math.tanh %1045 : vector<1x32xf32>
    %1047 = vector.extract_strided_slice %1032 {offsets = [0, 96], sizes = [1, 32], strides = [1, 1]} : vector<1x128xf32> to vector<1x32xf32>
    %1048 = arith.negf %1047 : vector<1x32xf32>
    %1049 = math.exp %1048 : vector<1x32xf32>
    %cst_344 = arith.constant 1.000000e+00 : f32
    %1050 = vector.broadcast %cst_344 : f32 to vector<1x32xf32>
    %1051 = arith.addf %1050, %1049 : vector<1x32xf32>
    %1052 = arith.divf %1050, %1051 : vector<1x32xf32>
    %1053 = arith.mulf %1044, %1023 : vector<1x32xf32>
    %1054 = arith.mulf %1038, %1046 : vector<1x32xf32>
    %1055 = arith.addf %1053, %1054 : vector<1x32xf32>
    %1056 = math.tanh %1055 : vector<1x32xf32>
    %1057 = arith.mulf %1052, %1056 : vector<1x32xf32>
    %c0_345 = arith.constant 0 : index
    %c15_346 = arith.constant 15 : index
    %c0_347 = arith.constant 0 : index
    %1058 = vector.load %arg13[%c0_345, %c15_346, %c0_347] : memref<1x16x32xf32, #tpu.memory_space<vmem>>, vector<1x1x32xf32>
    %1059 = vector.shape_cast %1058 : vector<1x1x32xf32> to vector<1x32xf32>
    %1060 = vector.shape_cast %1057 : vector<1x32xf32> to vector<1x1x32xf32>
    tpu.vector_store %arg13[%c0_345, %c15_346, %c0_347], %1060 {strides = array<i32>} : memref<1x16x32xf32, #tpu.memory_space<vmem>>, vector<1x1x32xf32>,
    %c1_348 = arith.constant 1 : index
    %c0_349 = arith.constant 0 : index
    %c0_350 = arith.constant 0 : index
    %1061 = vector.load %arg11[%c1_348, %c0_349, %c0_350] : memref<2x1x32xf32, #tpu.memory_space<vmem>>, vector<1x1x32xf32>
    %1062 = vector.shape_cast %1061 : vector<1x1x32xf32> to vector<1x32xf32>
    %1063 = vector.shape_cast %1057 : vector<1x32xf32> to vector<1x1x32xf32>
    tpu.vector_store %arg11[%c1_348, %c0_349, %c0_350], %1063 {strides = array<i32>} : memref<2x1x32xf32, #tpu.memory_space<vmem>>, vector<1x1x32xf32>,
    %c1_351 = arith.constant 1 : index
    %c0_352 = arith.constant 0 : index
    %c0_353 = arith.constant 0 : index
    %1064 = vector.load %arg12[%c1_351, %c0_352, %c0_353] : memref<2x1x32xf32, #tpu.memory_space<vmem>>, vector<1x1x32xf32>
    %1065 = vector.shape_cast %1064 : vector<1x1x32xf32> to vector<1x32xf32>
    %1066 = vector.shape_cast %1055 : vector<1x32xf32> to vector<1x1x32xf32>
    tpu.vector_store %arg12[%c1_351, %c0_352, %c0_353], %1066 {strides = array<i32>} : memref<2x1x32xf32, #tpu.memory_space<vmem>>, vector<1x1x32xf32>,
    %c0_354 = arith.constant 0 : index
    %c0_355 = arith.constant 0 : index
    %c0_356 = arith.constant 0 : index
    %1067 = vector.load %arg13[%c0_354, %c0_355, %c0_356] : memref<1x16x32xf32, #tpu.memory_space<vmem>>, vector<1x16x32xf32>
    %1068 = vector.shape_cast %1067 : vector<1x16x32xf32> to vector<16x32xf32>
    %c0_357 = arith.constant 0 : index
    %c0_358 = arith.constant 0 : index
    %1069 = vector.load %arg9[%c0_357, %c0_358] : memref<32x8xf32, #tpu.memory_space<vmem>>, vector<32x8xf32>
    %cst_359 = arith.constant dense<0.000000e+00> : vector<16x8xf32>
    %1070 = tpu.matmul %1068, %1069, %cst_359 {dimension_numbers = #tpu.dot_dimension_numbers<[1], [0], [0], [1], [0, 0, 1, 1], [], []>} : vector<16x32xf32>, vector<32x8xf32>, vector<16x8xf32> -> vector<16x8xf32>
    %1071 = vector.shape_cast %1070 : vector<16x8xf32> to vector<1x16x8xf32>
    %c0_360 = arith.constant 0 : index
    %c0_361 = arith.constant 0 : index
    %c0_362 = arith.constant 0 : index
    %1072 = vector.load %arg10[%c0_360, %c0_361, %c0_362] : memref<1x16x8xf32, #tpu.memory_space<vmem>>, vector<1x16x8xf32>
    tpu.vector_store %arg10[%c0_360, %c0_361, %c0_362], %1071 {strides = array<i32>} : memref<1x16x8xf32, #tpu.memory_space<vmem>>, vector<1x16x8xf32>,
    return
  }
  func.func @transform_0(%arg0: i32, %arg1: i32) -> (i32, i32, i32) {
    %c0_i32 = arith.constant 0 : i32
    %c0_i32_0 = arith.constant 0 : i32
    return %arg0, %arg1, %c0_i32 : i32, i32, i32
  }
  func.func @transform_1(%arg0: i32, %arg1: i32) -> (i32, i32) {
    %c0_i32 = arith.constant 0 : i32
    %c0_i32_0 = arith.constant 0 : i32
    %c0_i32_1 = arith.constant 0 : i32
    return %c0_i32, %c0_i32_0 : i32, i32
  }
  func.func @transform_2(%arg0: i32, %arg1: i32) -> (i32, i32) {
    %c0_i32 = arith.constant 0 : i32
    %c0_i32_0 = arith.constant 0 : i32
    %c0_i32_1 = arith.constant 0 : i32
    return %c0_i32, %c0_i32_0 : i32, i32
  }
  func.func @transform_3(%arg0: i32, %arg1: i32) -> (i32, i32) {
    %c0_i32 = arith.constant 0 : i32
    %c0_i32_0 = arith.constant 0 : i32
    %c0_i32_1 = arith.constant 0 : i32
    return %c0_i32, %c0_i32_0 : i32, i32
  }
  func.func @transform_4(%arg0: i32, %arg1: i32) -> (i32, i32) {
    %c0_i32 = arith.constant 0 : i32
    %c0_i32_0 = arith.constant 0 : i32
    %c0_i32_1 = arith.constant 0 : i32
    return %c0_i32, %c0_i32_0 : i32, i32
  }
  func.func @transform_5(%arg0: i32, %arg1: i32) -> (i32, i32) {
    %c0_i32 = arith.constant 0 : i32
    %c0_i32_0 = arith.constant 0 : i32
    %c0_i32_1 = arith.constant 0 : i32
    return %c0_i32, %c0_i32_0 : i32, i32
  }
  func.func @transform_6(%arg0: i32, %arg1: i32) -> (i32, i32) {
    %c0_i32 = arith.constant 0 : i32
    %c0_i32_0 = arith.constant 0 : i32
    %c0_i32_1 = arith.constant 0 : i32
    return %c0_i32, %c0_i32_0 : i32, i32
  }
  func.func @transform_7(%arg0: i32, %arg1: i32) -> (i32, i32) {
    %c0_i32 = arith.constant 0 : i32
    %c0_i32_0 = arith.constant 0 : i32
    %c0_i32_1 = arith.constant 0 : i32
    return %c0_i32, %c0_i32_0 : i32, i32
  }
  func.func @transform_8(%arg0: i32, %arg1: i32) -> (i32, i32, i32) {
    %c0_i32 = arith.constant 0 : i32
    %c0_i32_0 = arith.constant 0 : i32
    return %arg0, %arg1, %c0_i32 : i32, i32, i32
  }
}

</mosaic_0001>

<bundles_post_ra>
// kernel: tpu_custom_call.1
= control target key start
LH: loop header
LB: loop body
LE: loop exit
PB: predicated region body
PF: predicated region fallthrough
CT: control target
= control target key end

     0   :  { %s5310_s27 = smov 0   ;;  %s5312_s28 = smov 0   ;;  %s5832_s0 = inlined_call_operand.vmem [shape: f32[2,32,8], index: 0, kind: input, shape index: {}]   ;;  %s5833_s1 = inlined_call_operand.vmem [shape: f32[8,128], index: 1, kind: input, shape index: {}]   ;;  %s5834_s2 = inlined_call_operand.vmem [shape: f32[32,128], index: 2, kind: input, shape index: {}]   ;;  %s5835_s3 = inlined_call_operand.vmem [shape: f32[1,128], index: 3, kind: input, shape index: {}]   ;;  %s5836_s4 = inlined_call_operand.vmem [shape: f32[32,128], index: 4, kind: input, shape index: {}]   ;;  %s5837_s5 = inlined_call_operand.vmem [shape: f32[32,128], index: 5, kind: input, shape index: {}]   ;;  %s5838_s6 = inlined_call_operand.vmem [shape: f32[1,128], index: 6, kind: input, shape index: {}]   ;;  %s5839_s7 = inlined_call_operand.vmem [shape: f32[32,8], index: 7, kind: input, shape index: {}]   ;;  %s5840_s8 = inlined_call_operand.vmem [shape: f32[2,32,8], index: 8, kind: output, shape index: {}]  }
   0x1   :  { %s5314_s29 = smov 0   ;;  %s5316_s30 = smov 0  }
   0x2   :  { %s5318_s9 = smov 0  }
   0x3 LB: > { %s27_s10 = sadd.s32 1, %s5248_s29  ;;  %s30_s11 = sadd.s32 1, %s5252_s30  ;;  %s5256_s9 = sphi %s5318_s9, %s18_s9   ;;  %s5252_s30 = sphi %s5316_s30, %s5844_s30   ;;  %s5248_s29 = sphi %s5314_s29, %s5843_s29   ;;  %s5244_s28 = sphi %s5312_s28, %s5842_s28   ;;  %s5240_s27 = sphi %s5310_s27, %s5841_s27  }
   0x4   : > { %p28_p0 = scmp.ge.s32.totalorder %s27_s10, 2  ;;  %p4069_p1 = scmp.ge.s32.totalorder %s5256_s9, 1 }
   0x5   : > { %p283_p2 = scmp.lt.s32.totalorder %s5256_s9, 5 }
   0x6   : > { %s5846_s10 = smov (%p28_p0, %s27_s10), 0  ;;  %s5848_s11 = smov (!%p28_p0, %s30_s11), %s5252_s30 }
   0x7   : > { %p284_p3 = pnand %p4069_p1, %p283_p2  ;;  %p32_p4 = scmp.ge.s32.totalorder %s5848_s11, 2 }
   0x8   : > { %s4070_s12 = sshll.u32 (!%p284_p3), %s5240_s27, 1  ;;  %p326_p5 = scmp.lt.s32.totalorder (!%p284_p3), %s5244_s28, 1 }
   0x9   : > { %s5850_s11 = smov (%p32_p4, %s5848_s11), 0  ;;  %287 = sbr.rel (%p284_p3) target bundleno = 22743 (0x58d7), region = 52 }
   0xa   : > { %p328_p6 = scmp.lt.s32.totalorder (!%p284_p3), %s4070_s12, 3  ;;  %p4076_p7 = scmp.ne.s32.totalorder (!%p284_p3), %s5240_s27, 0 }
  0x10   : > { %s5852_s28 = smov (!%p326_p5, %s5244_s28), 1  ;;  %s5854_s12 = smov (!%p328_p6, %s4070_s12), 3 }
  0x11   : > { %s4071_s13 = sshll.u32 %s5852_s28, 2  ;;  %348 = sbr.rel (%p4076_p7) target bundleno = 24 (0x18), region = 56  ;;  %vm349_vm0 = vcmask (!%p4076_p7), 253952   ;;  %v5258_v0 = vmov (!%p4076_p7), 0.0  }
  0x12   : > { %s331_s14 = sadd.s32 %s4071_s13, %s5854_s12  ;;  %350 = vst.msk [vmem:[#allocation2] sm:$0x1] (!%p4076_p7), %vm349_vm0, %v5258_v0  ;;  %351 = vst.msk [vmem:[#allocation2 + $0x1] sm:$0x1] (!%p4076_p7), %vm349_vm0, %v5258_v0 }
  0x13   : > { %s4072_s15 = sshll.u32 %s331_s14, 3  ;;  %352 = vst.msk [vmem:[#allocation3] sm:$0x1] (!%p4076_p7), %vm349_vm0, %v5258_v0  ;;  %353 = vst.msk [vmem:[#allocation3 + $0x1] sm:$0x1] (!%p4076_p7), %vm349_vm0, %v5258_v0 }
  0x14   : > { %s333_s18 = scalar_lea.vmem %s5832_s0, %s4072_s15  ;;  %s5346_s21 = scalar_lea.vmem %s5840_s8, %s4072_s15 }
  0x18 PF: > { %v354_v1 = vld [vmem:[%s5833_s1] sm:$0xff]  ;;  %vm368_vm1 = vcmask 64512   ;;  %v361_v3 = vld [vmem:[%s333_s18 + $0x8] sm:$0xff]  ;;  %v357_v6 = vld [vmem:[%s5834_s2 + $0x10] sm:$0xff]  ;;  %v5259_v7 = vmov 0.0|0.0   ;;  %vm5260_vm2 = vmmov 0  }
  0x19   : > { %v360_v2 = vld [vmem:[%s333_s18] sm:$0xff]  ;;  %4328 = vmatprep.subr.mxu0 %v354_v1  ;;  %v356_v5 = vld [vmem:[%s5834_s2 + $0x8] sm:$0xff]  ;;  %4707 = vmatprep.subr.bf16.mxu1 %v5259_v7  ;;  %v358_v9 = vld [vmem:[%s5834_s2 + $0x18] sm:$0xff]  ;;  %v5261_v10 = vmov 0.0   ;;  %vm455_vm3 = vcmask 261120   ;;  %s5262_s17 = smov 64  }
  0x1a   : > { %4330 = vmatprep.mubr.msk.f32.mxu0 %vm368_vm1, %v360_v2  ;;  %v355_v4 = vld [vmem:[%s5834_s2] sm:$0xff]  ;;  %4329 = vmatpush3.msra.mxu0 %v354_v1  ;;  %v5371_v11 = vpack.c.bf16 %v358_v9, %v357_v6  ;;  %s5263_s18 = smov 32   ;;  %vm566_vm4 = vcmask 253952   ;;  %s5264_s24 = smov 96  }
  0x1b   : > { %v5362_v8 = vpack.c.bf16 %v356_v5, %v355_v4  ;;  %4331 = vmatmul.mubr.msk.f32.vlgmr.msra.gmra.mrb[0].mxu0 %vm368_vm1, %v361_v3  ;;  %4341 = vmatprep.mubr.msk.f32.mxu1 %vm5260_vm2, %v5261_v10  ;;  %v452_v12 = vld [vmem:[#allocation2] sm:$0x1]  ;;  %v4082_v23 = vld [vmem:[#allocation3] ss:$0 sm:$0xff] }
  0x1c   : > { %4713 = vmatprep.subr.bf16.mxu0 %v5259_v7  ;;  %4352 = vmatprep.mubr.msk.f32.mxu0 %vm5260_vm2, %v5261_v10  ;;  %v4077_v13 = vld [vmem:[%s5835_s3] ss:$0 sm:$0xff] }
  0x1d   : > { %4709 = vmatpush3.bf16.msra.mxu1 %v5362_v8  ;;  %4715 = vmatpush3.bf16.msra.mxu0 %v5362_v8 }
  0x1e   : > { %4710 = vmatprep.subr.bf16.mxu1 %v5259_v7  ;;  %4716 = vmatprep.subr.bf16.mxu0 %v5259_v7 }
  0x21   : > { %4712 = vmatpush3.bf16.msra.mxu1 %v5371_v11  ;;  %4718 = vmatpush3.bf16.msra.mxu0 %v5371_v11 }
  0x22   : > { %4719 = vmatprep.subr.bf16.mxu1 %v5259_v7  ;;  %4725 = vmatprep.subr.bf16.mxu0 %v5259_v7 }
  0x24   : > { %4342 = vmatmul.mubr.msk.f32.vlgmr.msra.gmra.mrb[0].mxu1 %vm455_vm3, %v452_v12 }
  0x25   : > { %4721 = vmatpush3.bf16.msra.mxu1 %v5362_v8  ;;  %4363 = vmatprep.mubr.msk.f32.mxu1 %vm5260_vm2, %v5261_v10 }
  0x26   : > { %4722 = vmatprep.subr.bf16.mxu1 %v5259_v7 }
  0x29   : > { %4724 = vmatpush3.bf16.msra.mxu1 %v5371_v11 }
  0x2a   : > { %4731 = vmatprep.subr.bf16.mxu1 %v5259_v7 }
  0xee   : > { %v4332_v14 = vpop.f32.mrb[0].mxu0 }
  0xef   : > { %v447_v15 = vadd.f32 %v4332_v14, %v4077_v13  ;;  %v441_v16 = vpop.f32.mrb[1].mxu0 }
  0xf0   : > { %v442_v17 = vadd.f32 %v4077_v13, %v441_v16 }
  0xf1   : > { %451 = vst [vmem:[#allocation5 + $0x8] sm:$0xff] %v447_v15 }
  0xf2   : > { %450 = vst [vmem:[#allocation5] sm:$0xff] %v442_v17 }
  0xf7   : > { %v525_v18 = vpop.f32.mrb[0].mxu1 }
  0xf8   : > { %v4343_v19 = vpop.f32.mrb[1].mxu1 }
  0xf9   : > { %v454_v20 = vld [vmem:[#allocation5] sm:$0x1]  ;;  %v568_v38 = vld [vmem:[#allocation5 + $0x1] sm:$0x1]  ;;  %v671_v56 = vld [vmem:[#allocation5 + $0x2] sm:$0x1] }
  0xfa   : > { %v529_v21 = vadd.f32 %v525_v18, %v454_v20  ;;  %v774_v14 = vld [vmem:[#allocation5 + $0x3] sm:$0x1] }
  0xfc   : > { %4962 = vtanh.f32 %v529_v21  ;;  %v4081_v24 = vmul.f32 -1.442695, %v529_v21 }
  0xfe   : > { %4964 = vpow2.f32 %v4081_v24 }
 0x106   : > { %v4963_v22 = vpop.eup %4962 }
 0x107   : > { %547 = vrot.lane.b32.xlu0 %v4963_v22, %s5262_s17 }
 0x108   : > { %v4965_v25 = vpop.eup %4964 }
 0x109   : > { %v533_v26 = vadd.f32 1.0, %v4965_v25 }
 0x10b   : > { %542 = vrot.lane.b32.xlu0 %v4082_v23, %s5263_s18  ;;  %4966 = vrcp.f32 %v533_v26 }
 0x115   : > { %v4967_v27 = vpop.eup %4966 }
 0x179   : > { %v548_v28 = vpop.permute.xlu0 %547 }
 0x17a   : > { %v550_v29 = vmul.f32 %v4967_v27, %v548_v28 }
 0x17c   : > { %552 = vrot.lane.b32.xlu1 %v550_v29, %s5263_s18 }
 0x17d   : > { %v543_v30 = vpop.permute.xlu0 %542 }
 0x17e   : > { %v545_v31 = vmul.f32 %v4967_v27, %v543_v30 }
 0x1ee   : > { %v553_v32 = vpop.permute.xlu1 %552 }
 0x1ef   : > { %v555_v33 = vadd.f32 %v553_v32, %v545_v31  ;;  %v877_v32 = vld [vmem:[#allocation5 + $0x4] sm:$0x1] }
 0x1f1   : > { %4968 = vtanh.f32 %v555_v33 }
 0x1fb   : > { %v4969_v34 = vpop.eup %4968 }
 0x1fc   : > { %558 = vrot.lane.b32.xlu1 %v4969_v34, %s5262_s17 }
 0x26e   : > { %v559_v35 = vpop.permute.xlu1 %558 }
 0x26f   : > { %v561_v36 = vmul.f32 %v4967_v27, %v559_v35 }
 0x271   : > { %563 = vrot.lane.b32.xlu0 %v561_v36, %s5263_s18 }
 0x2e3   : > { %v564_v37 = vpop.permute.xlu0 %563 }
 0x2e4   : > { %567 = vst.msk [vmem:[#allocation4] sm:$0x1] %vm566_vm4, %v564_v37  ;;  %4353 = vmatmul.mubr.msk.f32.vlgmr.msra.gmra.mrb[2].mxu0 %vm455_vm3, %v564_v37 }
 0x2e5   : > { %4727 = vmatpush3.bf16.msra.mxu0 %v5362_v8  ;;  %4374 = vmatprep.mubr.msk.f32.mxu0 %vm5260_vm2, %v5261_v10 }
 0x2e6   : > { %4728 = vmatprep.subr.bf16.mxu0 %v5259_v7 }
 0x2e9   : > { %4730 = vmatpush3.bf16.msra.mxu0 %v5371_v11 }
 0x2ea   : > { %4737 = vmatprep.subr.bf16.mxu0 %v5259_v7 }
 0x3b7   : > { %v637_v39 = vpop.f32.mrb[2].mxu0 }
 0x3b8   : > { %v641_v40 = vadd.f32 %v637_v39, %v568_v38  ;;  %v4354_v41 = vpop.f32.mrb[3].mxu0 }
 0x3ba   : > { %4970 = vtanh.f32 %v641_v40  ;;  %v4084_v43 = vmul.f32 -1.442695, %v641_v40 }
 0x3bc   : > { %4972 = vpow2.f32 %v4084_v43 }
 0x3c4   : > { %v4971_v42 = vpop.eup %4970 }
 0x3c5   : > { %651 = vrot.lane.b32.xlu1 %v4971_v42, %s5262_s17 }
 0x3c6   : > { %v4973_v44 = vpop.eup %4972 }
 0x3c7   : > { %v645_v45 = vadd.f32 1.0, %v4973_v44 }
 0x3c9   : > { %4974 = vrcp.f32 %v645_v45 }
 0x3d3   : > { %v4975_v46 = vpop.eup %4974 }
 0x3d4   : > { %v649_v49 = vmul.f32 %v4975_v46, %v555_v33 }
 0x437   : > { %v652_v47 = vpop.permute.xlu1 %651 }
 0x438   : > { %v654_v48 = vmul.f32 %v4975_v46, %v652_v47 }
 0x43a   : > { %656 = vrot.lane.b32.xlu0 %v654_v48, %s5263_s18 }
 0x4ac   : > { %v657_v50 = vpop.permute.xlu0 %656 }
 0x4ad   : > { %v659_v51 = vadd.f32 %v657_v50, %v649_v49  ;;  %v980_v50 = vld [vmem:[#allocation5 + $0x5] sm:$0x1] }
 0x4af   : > { %4976 = vtanh.f32 %v659_v51 }
 0x4b9   : > { %v4977_v52 = vpop.eup %4976 }
 0x4ba   : > { %662 = vrot.lane.b32.xlu1 %v4977_v52, %s5262_s17 }
 0x52c   : > { %v663_v53 = vpop.permute.xlu1 %662 }
 0x52d   : > { %v665_v54 = vmul.f32 %v4975_v46, %v663_v53 }
 0x52f   : > { %667 = vrot.lane.b32.xlu0 %v665_v54, %s5263_s18 }
 0x5a1   : > { %v668_v55 = vpop.permute.xlu0 %667 }
 0x5a2   : > { %670 = vst.msk [vmem:[#allocation4 + $0x1] sm:$0x1] %vm566_vm4, %v668_v55  ;;  %4364 = vmatmul.mubr.msk.f32.vlgmr.msra.gmra.mrb[2].mxu1 %vm455_vm3, %v668_v55 }
 0x5a3   : > { %4733 = vmatpush3.bf16.msra.mxu1 %v5362_v8  ;;  %4385 = vmatprep.mubr.msk.f32.mxu1 %vm5260_vm2, %v5261_v10 }
 0x5a4   : > { %4734 = vmatprep.subr.bf16.mxu1 %v5259_v7 }
 0x5a7   : > { %4736 = vmatpush3.bf16.msra.mxu1 %v5371_v11 }
 0x5a8   : > { %4743 = vmatprep.subr.bf16.mxu1 %v5259_v7 }
 0x675   : > { %v740_v57 = vpop.f32.mrb[2].mxu1 }
 0x676   : > { %v744_v58 = vadd.f32 %v740_v57, %v671_v56  ;;  %v4365_v59 = vpop.f32.mrb[3].mxu1 }
 0x678   : > { %4978 = vtanh.f32 %v744_v58  ;;  %v4086_v61 = vmul.f32 -1.442695, %v744_v58 }
 0x67a   : > { %4980 = vpow2.f32 %v4086_v61 }
 0x682   : > { %v4979_v60 = vpop.eup %4978 }
 0x683   : > { %754 = vrot.lane.b32.xlu1 %v4979_v60, %s5262_s17 }
 0x684   : > { %v4981_v62 = vpop.eup %4980 }
 0x685   : > { %v748_v63 = vadd.f32 1.0, %v4981_v62 }
 0x687   : > { %4982 = vrcp.f32 %v748_v63 }
 0x691   : > { %v4983_v0 = vpop.eup %4982 }
 0x692   : > { %v752_v3 = vmul.f32 %v4983_v0, %v659_v51 }
 0x6f5   : > { %v755_v1 = vpop.permute.xlu1 %754 }
 0x6f6   : > { %v757_v2 = vmul.f32 %v4983_v0, %v755_v1 }
 0x6f8   : > { %759 = vrot.lane.b32.xlu0 %v757_v2, %s5263_s18 }
 0x76a   : > { %v760_v4 = vpop.permute.xlu0 %759 }
 0x76b   : > { %v762_v5 = vadd.f32 %v760_v4, %v752_v3  ;;  %v1083_v4 = vld [vmem:[#allocation5 + $0x6] sm:$0x1] }
 0x76d   : > { %4984 = vtanh.f32 %v762_v5 }
 0x777   : > { %v4985_v6 = vpop.eup %4984 }
 0x778   : > { %765 = vrot.lane.b32.xlu1 %v4985_v6, %s5262_s17 }
 0x7ea   : > { %v766_v9 = vpop.permute.xlu1 %765 }
 0x7eb   : > { %v768_v12 = vmul.f32 %v4983_v0, %v766_v9 }
 0x7ed   : > { %770 = vrot.lane.b32.xlu0 %v768_v12, %s5263_s18 }
 0x85f   : > { %v771_v13 = vpop.permute.xlu0 %770 }
 0x860   : > { %773 = vst.msk [vmem:[#allocation4 + $0x2] sm:$0x1] %vm566_vm4, %v771_v13  ;;  %4375 = vmatmul.mubr.msk.f32.vlgmr.msra.gmra.mrb[4].mxu0 %vm455_vm3, %v771_v13 }
 0x861   : > { %4739 = vmatpush3.bf16.msra.mxu0 %v5362_v8  ;;  %4396 = vmatprep.mubr.msk.f32.mxu0 %vm5260_vm2, %v5261_v10 }
 0x862   : > { %4740 = vmatprep.subr.bf16.mxu0 %v5259_v7 }
 0x865   : > { %4742 = vmatpush3.bf16.msra.mxu0 %v5371_v11 }
 0x866   : > { %4749 = vmatprep.subr.bf16.mxu0 %v5259_v7 }
 0x933   : > { %v843_v15 = vpop.f32.mrb[4].mxu0 }
 0x934   : > { %v847_v16 = vadd.f32 %v843_v15, %v774_v14  ;;  %v4376_v17 = vpop.f32.mrb[5].mxu0 }
 0x936   : > { %4986 = vtanh.f32 %v847_v16  ;;  %v4088_v19 = vmul.f32 -1.442695, %v847_v16 }
 0x938   : > { %4988 = vpow2.f32 %v4088_v19 }
 0x940   : > { %v4987_v18 = vpop.eup %4986 }
 0x941   : > { %857 = vrot.lane.b32.xlu1 %v4987_v18, %s5262_s17 }
 0x942   : > { %v4989_v20 = vpop.eup %4988 }
 0x943   : > { %v851_v21 = vadd.f32 1.0, %v4989_v20 }
 0x945   : > { %4990 = vrcp.f32 %v851_v21 }
 0x94f   : > { %v4991_v22 = vpop.eup %4990 }
 0x950   : > { %v855_v25 = vmul.f32 %v4991_v22, %v762_v5 }
 0x9b3   : > { %v858_v23 = vpop.permute.xlu1 %857 }
 0x9b4   : > { %v860_v24 = vmul.f32 %v4991_v22, %v858_v23 }
 0x9b6   : > { %862 = vrot.lane.b32.xlu0 %v860_v24, %s5263_s18 }
 0xa28   : > { %v863_v26 = vpop.permute.xlu0 %862 }
 0xa29   : > { %v865_v27 = vadd.f32 %v863_v26, %v855_v25  ;;  %v1186_v26 = vld [vmem:[#allocation5 + $0x7] sm:$0x1] }
 0xa2b   : > { %4992 = vtanh.f32 %v865_v27 }
 0xa35   : > { %v4993_v28 = vpop.eup %4992 }
 0xa36   : > { %868 = vrot.lane.b32.xlu1 %v4993_v28, %s5262_s17 }
 0xaa8   : > { %v869_v29 = vpop.permute.xlu1 %868 }
 0xaa9   : > { %v871_v30 = vmul.f32 %v4991_v22, %v869_v29 }
 0xaab   : > { %873 = vrot.lane.b32.xlu0 %v871_v30, %s5263_s18 }
 0xb1d   : > { %v874_v31 = vpop.permute.xlu0 %873 }
 0xb1e   : > { %876 = vst.msk [vmem:[#allocation4 + $0x3] sm:$0x1] %vm566_vm4, %v874_v31  ;;  %4386 = vmatmul.mubr.msk.f32.vlgmr.msra.gmra.mrb[4].mxu1 %vm455_vm3, %v874_v31 }
 0xb1f   : > { %4745 = vmatpush3.bf16.msra.mxu1 %v5362_v8  ;;  %4407 = vmatprep.mubr.msk.f32.mxu1 %vm5260_vm2, %v5261_v10 }
 0xb20   : > { %4746 = vmatprep.subr.bf16.mxu1 %v5259_v7 }
 0xb23   : > { %4748 = vmatpush3.bf16.msra.mxu1 %v5371_v11 }
 0xb24   : > { %4755 = vmatprep.subr.bf16.mxu1 %v5259_v7 }
 0xbf1   : > { %v946_v33 = vpop.f32.mrb[4].mxu1 }
 0xbf2   : > { %v950_v34 = vadd.f32 %v946_v33, %v877_v32  ;;  %v4387_v35 = vpop.f32.mrb[5].mxu1 }
 0xbf4   : > { %4994 = vtanh.f32 %v950_v34  ;;  %v4090_v37 = vmul.f32 -1.442695, %v950_v34 }
 0xbf6   : > { %4996 = vpow2.f32 %v4090_v37 }
 0xbfe   : > { %v4995_v36 = vpop.eup %4994 }
 0xbff   : > { %960 = vrot.lane.b32.xlu1 %v4995_v36, %s5262_s17 }
 0xc00   : > { %v4997_v38 = vpop.eup %4996 }
 0xc01   : > { %v954_v39 = vadd.f32 1.0, %v4997_v38 }
 0xc03   : > { %4998 = vrcp.f32 %v954_v39 }
 0xc0d   : > { %v4999_v40 = vpop.eup %4998 }
 0xc0e   : > { %v958_v43 = vmul.f32 %v4999_v40, %v865_v27 }
 0xc71   : > { %v961_v41 = vpop.permute.xlu1 %960 }
 0xc72   : > { %v963_v42 = vmul.f32 %v4999_v40, %v961_v41 }
 0xc74   : > { %965 = vrot.lane.b32.xlu0 %v963_v42, %s5263_s18 }
 0xce6   : > { %v966_v44 = vpop.permute.xlu0 %965 }
 0xce7   : > { %v968_v45 = vadd.f32 %v966_v44, %v958_v43  ;;  %v1289_v44 = vld [vmem:[#allocation5 + $0x8] sm:$0x1] }
 0xce9   : > { %5000 = vtanh.f32 %v968_v45 }
 0xcf3   : > { %v5001_v46 = vpop.eup %5000 }
 0xcf4   : > { %971 = vrot.lane.b32.xlu1 %v5001_v46, %s5262_s17 }
 0xd66   : > { %v972_v47 = vpop.permute.xlu1 %971 }
 0xd67   : > { %v974_v48 = vmul.f32 %v4999_v40, %v972_v47 }
 0xd69   : > { %976 = vrot.lane.b32.xlu0 %v974_v48, %s5263_s18 }
 0xddb   : > { %v977_v49 = vpop.permute.xlu0 %976 }
 0xddc   : > { %979 = vst.msk [vmem:[#allocation4 + $0x4] sm:$0x1] %vm566_vm4, %v977_v49  ;;  %4397 = vmatmul.mubr.msk.f32.vlgmr.msra.gmra.mrb[6].mxu0 %vm455_vm3, %v977_v49 }
 0xddd   : > { %4751 = vmatpush3.bf16.msra.mxu0 %v5362_v8  ;;  %4418 = vmatprep.mubr.msk.f32.mxu0 %vm5260_vm2, %v5261_v10 }
 0xdde   : > { %4752 = vmatprep.subr.bf16.mxu0 %v5259_v7 }
 0xde1   : > { %4754 = vmatpush3.bf16.msra.mxu0 %v5371_v11 }
 0xde2   : > { %4761 = vmatprep.subr.bf16.mxu0 %v5259_v7 }
 0xeaf   : > { %v1049_v51 = vpop.f32.mrb[6].mxu0 }
 0xeb0   : > { %v1053_v52 = vadd.f32 %v1049_v51, %v980_v50  ;;  %v4398_v53 = vpop.f32.mrb[7].mxu0 }
 0xeb2   : > { %5002 = vtanh.f32 %v1053_v52  ;;  %v4092_v55 = vmul.f32 -1.442695, %v1053_v52 }
 0xeb4   : > { %5004 = vpow2.f32 %v4092_v55 }
 0xebc   : > { %v5003_v54 = vpop.eup %5002 }
 0xebd   : > { %1063 = vrot.lane.b32.xlu1 %v5003_v54, %s5262_s17 }
 0xebe   : > { %v5005_v56 = vpop.eup %5004 }
 0xebf   : > { %v1057_v57 = vadd.f32 1.0, %v5005_v56 }
 0xec1   : > { %5006 = vrcp.f32 %v1057_v57 }
 0xecb   : > { %v5007_v58 = vpop.eup %5006 }
 0xecc   : > { %v1061_v61 = vmul.f32 %v5007_v58, %v968_v45 }
 0xf2f   : > { %v1064_v59 = vpop.permute.xlu1 %1063 }
 0xf30   : > { %v1066_v60 = vmul.f32 %v5007_v58, %v1064_v59 }
 0xf32   : > { %1068 = vrot.lane.b32.xlu0 %v1066_v60, %s5263_s18 }
 0xfa4   : > { %v1069_v62 = vpop.permute.xlu0 %1068 }
 0xfa5   : > { %v1071_v63 = vadd.f32 %v1069_v62, %v1061_v61  ;;  %v1392_v62 = vld [vmem:[#allocation5 + $0x9] sm:$0x1] }
 0xfa7   : > { %5008 = vtanh.f32 %v1071_v63 }
 0xfb1   : > { %v5009_v0 = vpop.eup %5008 }
 0xfb2   : > { %1074 = vrot.lane.b32.xlu1 %v5009_v0, %s5262_s17 }
0x1024   : > { %v1075_v1 = vpop.permute.xlu1 %1074 }
0x1025   : > { %v1077_v2 = vmul.f32 %v5007_v58, %v1075_v1 }
0x1027   : > { %1079 = vrot.lane.b32.xlu0 %v1077_v2, %s5263_s18 }
0x1099   : > { %v1080_v3 = vpop.permute.xlu0 %1079 }
0x109a   : > { %1082 = vst.msk [vmem:[#allocation4 + $0x5] sm:$0x1] %vm566_vm4, %v1080_v3  ;;  %4408 = vmatmul.mubr.msk.f32.vlgmr.msra.gmra.mrb[6].mxu1 %vm455_vm3, %v1080_v3 }
0x109b   : > { %4757 = vmatpush3.bf16.msra.mxu1 %v5362_v8  ;;  %4429 = vmatprep.mubr.msk.f32.mxu1 %vm5260_vm2, %v5261_v10 }
0x109c   : > { %4758 = vmatprep.subr.bf16.mxu1 %v5259_v7 }
0x109f   : > { %4760 = vmatpush3.bf16.msra.mxu1 %v5371_v11 }
0x10a0   : > { %4767 = vmatprep.subr.bf16.mxu1 %v5259_v7 }
0x116d   : > { %v1152_v5 = vpop.f32.mrb[6].mxu1 }
0x116e   : > { %v1156_v6 = vadd.f32 %v1152_v5, %v1083_v4  ;;  %v4409_v9 = vpop.f32.mrb[7].mxu1 }
0x1170   : > { %5010 = vtanh.f32 %v1156_v6  ;;  %v4094_v13 = vmul.f32 -1.442695, %v1156_v6 }
0x1172   : > { %5012 = vpow2.f32 %v4094_v13 }
0x117a   : > { %v5011_v12 = vpop.eup %5010 }
0x117b   : > { %1166 = vrot.lane.b32.xlu1 %v5011_v12, %s5262_s17 }
0x117c   : > { %v5013_v14 = vpop.eup %5012 }
0x117d   : > { %v1160_v15 = vadd.f32 1.0, %v5013_v14 }
0x117f   : > { %5014 = vrcp.f32 %v1160_v15 }
0x1189   : > { %v5015_v16 = vpop.eup %5014 }
0x118a   : > { %v1164_v19 = vmul.f32 %v5015_v16, %v1071_v63 }
0x11ed   : > { %v1167_v17 = vpop.permute.xlu1 %1166 }
0x11ee   : > { %v1169_v18 = vmul.f32 %v5015_v16, %v1167_v17 }
0x11f0   : > { %1171 = vrot.lane.b32.xlu0 %v1169_v18, %s5263_s18 }
0x1262   : > { %v1172_v20 = vpop.permute.xlu0 %1171 }
0x1263   : > { %v1174_v21 = vadd.f32 %v1172_v20, %v1164_v19  ;;  %v1495_v20 = vld [vmem:[#allocation5 + $0xa] sm:$0x1] }
0x1265   : > { %5016 = vtanh.f32 %v1174_v21 }
0x126f   : > { %v5017_v22 = vpop.eup %5016 }
0x1270   : > { %1177 = vrot.lane.b32.xlu1 %v5017_v22, %s5262_s17 }
0x12e2   : > { %v1178_v23 = vpop.permute.xlu1 %1177 }
0x12e3   : > { %v1180_v24 = vmul.f32 %v5015_v16, %v1178_v23 }
0x12e5   : > { %1182 = vrot.lane.b32.xlu0 %v1180_v24, %s5263_s18 }
0x1357   : > { %v1183_v25 = vpop.permute.xlu0 %1182 }
0x1358   : > { %1185 = vst.msk [vmem:[#allocation4 + $0x6] sm:$0x1] %vm566_vm4, %v1183_v25  ;;  %4419 = vmatmul.mubr.msk.f32.vlgmr.msra.gmra.mrb[8].mxu0 %vm455_vm3, %v1183_v25 }
0x1359   : > { %4763 = vmatpush3.bf16.msra.mxu0 %v5362_v8  ;;  %4440 = vmatprep.mubr.msk.f32.mxu0 %vm5260_vm2, %v5261_v10 }
0x135a   : > { %4764 = vmatprep.subr.bf16.mxu0 %v5259_v7 }
0x135d   : > { %4766 = vmatpush3.bf16.msra.mxu0 %v5371_v11 }
0x135e   : > { %4773 = vmatprep.subr.bf16.mxu0 %v5259_v7 }
0x142b   : > { %v1255_v27 = vpop.f32.mrb[8].mxu0 }
0x142c   : > { %v1259_v28 = vadd.f32 %v1255_v27, %v1186_v26  ;;  %v4420_v29 = vpop.f32.mrb[9].mxu0 }
0x142e   : > { %5018 = vtanh.f32 %v1259_v28  ;;  %v4096_v31 = vmul.f32 -1.442695, %v1259_v28 }
0x1430   : > { %5020 = vpow2.f32 %v4096_v31 }
0x1438   : > { %v5019_v30 = vpop.eup %5018 }
0x1439   : > { %1269 = vrot.lane.b32.xlu1 %v5019_v30, %s5262_s17 }
0x143a   : > { %v5021_v32 = vpop.eup %5020 }
0x143b   : > { %v1263_v33 = vadd.f32 1.0, %v5021_v32 }
0x143d   : > { %5022 = vrcp.f32 %v1263_v33 }
0x1447   : > { %v5023_v34 = vpop.eup %5022 }
0x1448   : > { %v1267_v37 = vmul.f32 %v5023_v34, %v1174_v21 }
0x14ab   : > { %v1270_v35 = vpop.permute.xlu1 %1269 }
0x14ac   : > { %v1272_v36 = vmul.f32 %v5023_v34, %v1270_v35 }
0x14ae   : > { %1274 = vrot.lane.b32.xlu0 %v1272_v36, %s5263_s18 }
0x1520   : > { %v1275_v38 = vpop.permute.xlu0 %1274 }
0x1521   : > { %v1277_v39 = vadd.f32 %v1275_v38, %v1267_v37  ;;  %v1598_v38 = vld [vmem:[#allocation5 + $0xb] sm:$0x1] }
0x1523   : > { %5024 = vtanh.f32 %v1277_v39 }
0x152d   : > { %v5025_v40 = vpop.eup %5024 }
0x152e   : > { %1280 = vrot.lane.b32.xlu1 %v5025_v40, %s5262_s17 }
0x15a0   : > { %v1281_v41 = vpop.permute.xlu1 %1280 }
0x15a1   : > { %v1283_v42 = vmul.f32 %v5023_v34, %v1281_v41 }
0x15a3   : > { %1285 = vrot.lane.b32.xlu0 %v1283_v42, %s5263_s18 }
0x1615   : > { %v1286_v43 = vpop.permute.xlu0 %1285 }
0x1616   : > { %1288 = vst.msk [vmem:[#allocation4 + $0x7] sm:$0x1] %vm566_vm4, %v1286_v43  ;;  %4430 = vmatmul.mubr.msk.f32.vlgmr.msra.gmra.mrb[8].mxu1 %vm455_vm3, %v1286_v43 }
0x1617   : > { %4769 = vmatpush3.bf16.msra.mxu1 %v5362_v8  ;;  %4451 = vmatprep.mubr.msk.f32.mxu1 %vm5260_vm2, %v5261_v10 }
0x1618   : > { %4770 = vmatprep.subr.bf16.mxu1 %v5259_v7 }
0x161b   : > { %4772 = vmatpush3.bf16.msra.mxu1 %v5371_v11 }
0x161c   : > { %4779 = vmatprep.subr.bf16.mxu1 %v5259_v7 }
0x16e9   : > { %v1358_v45 = vpop.f32.mrb[8].mxu1 }
0x16ea   : > { %v1362_v46 = vadd.f32 %v1358_v45, %v1289_v44  ;;  %v4431_v47 = vpop.f32.mrb[9].mxu1 }
0x16ec   : > { %5026 = vtanh.f32 %v1362_v46  ;;  %v4098_v49 = vmul.f32 -1.442695, %v1362_v46 }
0x16ee   : > { %5028 = vpow2.f32 %v4098_v49 }
0x16f6   : > { %v5027_v48 = vpop.eup %5026 }
0x16f7   : > { %1372 = vrot.lane.b32.xlu1 %v5027_v48, %s5262_s17 }
0x16f8   : > { %v5029_v50 = vpop.eup %5028 }
0x16f9   : > { %v1366_v51 = vadd.f32 1.0, %v5029_v50 }
0x16fb   : > { %5030 = vrcp.f32 %v1366_v51 }
0x1705   : > { %v5031_v52 = vpop.eup %5030 }
0x1706   : > { %v1370_v55 = vmul.f32 %v5031_v52, %v1277_v39 }
0x1769   : > { %v1373_v53 = vpop.permute.xlu1 %1372 }
0x176a   : > { %v1375_v54 = vmul.f32 %v5031_v52, %v1373_v53 }
0x176c   : > { %1377 = vrot.lane.b32.xlu0 %v1375_v54, %s5263_s18 }
0x17de   : > { %v1378_v56 = vpop.permute.xlu0 %1377 }
0x17df   : > { %v1380_v57 = vadd.f32 %v1378_v56, %v1370_v55  ;;  %v1701_v56 = vld [vmem:[#allocation5 + $0xc] sm:$0x1] }
0x17e1   : > { %5032 = vtanh.f32 %v1380_v57 }
0x17eb   : > { %v5033_v58 = vpop.eup %5032 }
0x17ec   : > { %1383 = vrot.lane.b32.xlu1 %v5033_v58, %s5262_s17 }
0x185e   : > { %v1384_v59 = vpop.permute.xlu1 %1383 }
0x185f   : > { %v1386_v60 = vmul.f32 %v5031_v52, %v1384_v59 }
0x1861   : > { %1388 = vrot.lane.b32.xlu0 %v1386_v60, %s5263_s18 }
0x18d3   : > { %v1389_v61 = vpop.permute.xlu0 %1388 }
0x18d4   : > { %1391 = vst.msk [vmem:[#allocation4 + $0x8] sm:$0x1] %vm566_vm4, %v1389_v61  ;;  %4441 = vmatmul.mubr.msk.f32.vlgmr.msra.gmra.mrb[10].mxu0 %vm455_vm3, %v1389_v61 }
0x18d5   : > { %4775 = vmatpush3.bf16.msra.mxu0 %v5362_v8  ;;  %4462 = vmatprep.mubr.msk.f32.mxu0 %vm5260_vm2, %v5261_v10 }
0x18d6   : > { %4776 = vmatprep.subr.bf16.mxu0 %v5259_v7 }
0x18d9   : > { %4778 = vmatpush3.bf16.msra.mxu0 %v5371_v11 }
0x18da   : > { %4785 = vmatprep.subr.bf16.mxu0 %v5259_v7 }
0x19a7   : > { %v1461_v63 = vpop.f32.mrb[10].mxu0 }
0x19a8   : > { %v1465_v0 = vadd.f32 %v1461_v63, %v1392_v62  ;;  %v4442_v1 = vpop.f32.mrb[11].mxu0 }
0x19aa   : > { %5034 = vtanh.f32 %v1465_v0  ;;  %v4100_v3 = vmul.f32 -1.442695, %v1465_v0 }
0x19ac   : > { %5036 = vpow2.f32 %v4100_v3 }
0x19b4   : > { %v5035_v2 = vpop.eup %5034 }
0x19b5   : > { %1475 = vrot.lane.b32.xlu1 %v5035_v2, %s5262_s17 }
0x19b6   : > { %v5037_v4 = vpop.eup %5036 }
0x19b7   : > { %v1469_v5 = vadd.f32 1.0, %v5037_v4 }
0x19b9   : > { %5038 = vrcp.f32 %v1469_v5 }
0x19c3   : > { %v5039_v6 = vpop.eup %5038 }
0x19c4   : > { %v1473_v13 = vmul.f32 %v5039_v6, %v1380_v57 }
0x1a27   : > { %v1476_v9 = vpop.permute.xlu1 %1475 }
0x1a28   : > { %v1478_v12 = vmul.f32 %v5039_v6, %v1476_v9 }
0x1a2a   : > { %1480 = vrot.lane.b32.xlu0 %v1478_v12, %s5263_s18 }
0x1a9c   : > { %v1481_v14 = vpop.permute.xlu0 %1480 }
0x1a9d   : > { %v1483_v15 = vadd.f32 %v1481_v14, %v1473_v13  ;;  %v1804_v14 = vld [vmem:[#allocation5 + $0xd] sm:$0x1] }
0x1a9f   : > { %5040 = vtanh.f32 %v1483_v15 }
0x1aa9   : > { %v5041_v16 = vpop.eup %5040 }
0x1aaa   : > { %1486 = vrot.lane.b32.xlu1 %v5041_v16, %s5262_s17 }
0x1b1c   : > { %v1487_v17 = vpop.permute.xlu1 %1486 }
0x1b1d   : > { %v1489_v18 = vmul.f32 %v5039_v6, %v1487_v17 }
0x1b1f   : > { %1491 = vrot.lane.b32.xlu0 %v1489_v18, %s5263_s18 }
0x1b91   : > { %v1492_v19 = vpop.permute.xlu0 %1491 }
0x1b92   : > { %1494 = vst.msk [vmem:[#allocation4 + $0x9] sm:$0x1] %vm566_vm4, %v1492_v19  ;;  %4452 = vmatmul.mubr.msk.f32.vlgmr.msra.gmra.mrb[10].mxu1 %vm455_vm3, %v1492_v19 }
0x1b93   : > { %4781 = vmatpush3.bf16.msra.mxu1 %v5362_v8  ;;  %4473 = vmatprep.mubr.msk.f32.mxu1 %vm5260_vm2, %v5261_v10 }
0x1b94   : > { %4782 = vmatprep.subr.bf16.mxu1 %v5259_v7 }
0x1b97   : > { %4784 = vmatpush3.bf16.msra.mxu1 %v5371_v11 }
0x1b98   : > { %4791 = vmatprep.subr.bf16.mxu1 %v5259_v7 }
0x1c65   : > { %v1564_v21 = vpop.f32.mrb[10].mxu1 }
0x1c66   : > { %v1568_v22 = vadd.f32 %v1564_v21, %v1495_v20  ;;  %v4453_v23 = vpop.f32.mrb[11].mxu1 }
0x1c68   : > { %5042 = vtanh.f32 %v1568_v22  ;;  %v4102_v25 = vmul.f32 -1.442695, %v1568_v22 }
0x1c6a   : > { %5044 = vpow2.f32 %v4102_v25 }
0x1c72   : > { %v5043_v24 = vpop.eup %5042 }
0x1c73   : > { %1578 = vrot.lane.b32.xlu1 %v5043_v24, %s5262_s17 }
0x1c74   : > { %v5045_v26 = vpop.eup %5044 }
0x1c75   : > { %v1572_v27 = vadd.f32 1.0, %v5045_v26 }
0x1c77   : > { %5046 = vrcp.f32 %v1572_v27 }
0x1c81   : > { %v5047_v28 = vpop.eup %5046 }
0x1c82   : > { %v1576_v31 = vmul.f32 %v5047_v28, %v1483_v15 }
0x1ce5   : > { %v1579_v29 = vpop.permute.xlu1 %1578 }
0x1ce6   : > { %v1581_v30 = vmul.f32 %v5047_v28, %v1579_v29 }
0x1ce8   : > { %1583 = vrot.lane.b32.xlu0 %v1581_v30, %s5263_s18  ;;  %v2128_v30 = vld [vmem:[#allocation4] sm:$0xff] }
0x1d5a   : > { %v1584_v32 = vpop.permute.xlu0 %1583 }
0x1d5b   : > { %v1586_v33 = vadd.f32 %v1584_v32, %v1576_v31  ;;  %v1907_v31 = vld [vmem:[#allocation5 + $0xe] sm:$0x1] }
0x1d5d   : > { %5048 = vtanh.f32 %v1586_v33 }
0x1d67   : > { %v5049_v34 = vpop.eup %5048 }
0x1d68   : > { %1589 = vrot.lane.b32.xlu1 %v5049_v34, %s5262_s17 }
0x1dda   : > { %v1590_v35 = vpop.permute.xlu1 %1589 }
0x1ddb   : > { %v1592_v36 = vmul.f32 %v5047_v28, %v1590_v35 }
0x1ddd   : > { %1594 = vrot.lane.b32.xlu0 %v1592_v36, %s5263_s18 }
0x1e4f   : > { %v1595_v37 = vpop.permute.xlu0 %1594 }
0x1e50   : > { %1597 = vst.msk [vmem:[#allocation4 + $0xa] sm:$0x1] %vm566_vm4, %v1595_v37  ;;  %4463 = vmatmul.mubr.msk.f32.vlgmr.msra.gmra.mrb[12].mxu0 %vm455_vm3, %v1595_v37 }
0x1e51   : > { %4787 = vmatpush3.bf16.msra.mxu0 %v5362_v8  ;;  %4484 = vmatprep.mubr.msk.f32.mxu0 %vm5260_vm2, %v5261_v10 }
0x1e52   : > { %4788 = vmatprep.subr.bf16.mxu0 %v5259_v7 }
0x1e55   : > { %4790 = vmatpush3.bf16.msra.mxu0 %v5371_v11 }
0x1e56   : > { %4797 = vmatprep.subr.bf16.mxu0 %v5259_v7 }
0x1f23   : > { %v1667_v39 = vpop.f32.mrb[12].mxu0 }
0x1f24   : > { %v1671_v40 = vadd.f32 %v1667_v39, %v1598_v38  ;;  %v4464_v41 = vpop.f32.mrb[13].mxu0 }
0x1f26   : > { %5050 = vtanh.f32 %v1671_v40  ;;  %v4104_v43 = vmul.f32 -1.442695, %v1671_v40 }
0x1f28   : > { %5052 = vpow2.f32 %v4104_v43 }
0x1f30   : > { %v5051_v42 = vpop.eup %5050 }
0x1f31   : > { %1681 = vrot.lane.b32.xlu1 %v5051_v42, %s5262_s17 }
0x1f32   : > { %v5053_v44 = vpop.eup %5052 }
0x1f33   : > { %v1675_v45 = vadd.f32 1.0, %v5053_v44 }
0x1f35   : > { %5054 = vrcp.f32 %v1675_v45 }
0x1f3f   : > { %v5055_v46 = vpop.eup %5054 }
0x1f40   : > { %v1679_v49 = vmul.f32 %v5055_v46, %v1586_v33 }
0x1fa3   : > { %v1682_v47 = vpop.permute.xlu1 %1681 }
0x1fa4   : > { %v1684_v48 = vmul.f32 %v5055_v46, %v1682_v47 }
0x1fa6   : > { %1686 = vrot.lane.b32.xlu0 %v1684_v48, %s5263_s18 }
0x2018   : > { %v1687_v50 = vpop.permute.xlu0 %1686 }
0x2019   : > { %v1689_v51 = vadd.f32 %v1687_v50, %v1679_v49  ;;  %v2010_v49 = vld [vmem:[#allocation5 + $0xf] sm:$0x1] }
0x201b   : > { %5056 = vtanh.f32 %v1689_v51 }
0x2025   : > { %v5057_v52 = vpop.eup %5056 }
0x2026   : > { %1692 = vrot.lane.b32.xlu1 %v5057_v52, %s5262_s17 }
0x2098   : > { %v1693_v53 = vpop.permute.xlu1 %1692 }
0x2099   : > { %v1695_v54 = vmul.f32 %v5055_v46, %v1693_v53 }
0x209b   : > { %1697 = vrot.lane.b32.xlu0 %v1695_v54, %s5263_s18 }
0x210d   : > { %v1698_v55 = vpop.permute.xlu0 %1697 }
0x210e   : > { %1700 = vst.msk [vmem:[#allocation4 + $0xb] sm:$0x1] %vm566_vm4, %v1698_v55  ;;  %4474 = vmatmul.mubr.msk.f32.vlgmr.msra.gmra.mrb[12].mxu1 %vm455_vm3, %v1698_v55 }
0x210f   : > { %4793 = vmatpush3.bf16.msra.mxu1 %v5362_v8  ;;  %4495 = vmatprep.mubr.msk.f32.mxu1 %vm5260_vm2, %v5261_v10 }
0x2110   : > { %4794 = vmatprep.subr.bf16.mxu1 %v5259_v7 }
0x2113   : > { %4796 = vmatpush3.bf16.msra.mxu1 %v5371_v11 }
0x21e1   : > { %v1770_v57 = vpop.f32.mrb[12].mxu1 }
0x21e2   : > { %v1774_v58 = vadd.f32 %v1770_v57, %v1701_v56  ;;  %v4475_v59 = vpop.f32.mrb[13].mxu1 }
0x21e4   : > { %5058 = vtanh.f32 %v1774_v58  ;;  %v4106_v61 = vmul.f32 -1.442695, %v1774_v58 }
0x21e6   : > { %5060 = vpow2.f32 %v4106_v61 }
0x21ee   : > { %v5059_v60 = vpop.eup %5058 }
0x21ef   : > { %1784 = vrot.lane.b32.xlu1 %v5059_v60, %s5262_s17 }
0x21f0   : > { %v5061_v62 = vpop.eup %5060 }
0x21f1   : > { %v1778_v63 = vadd.f32 1.0, %v5061_v62 }
0x21f3   : > { %5062 = vrcp.f32 %v1778_v63 }
0x21fd   : > { %v5063_v0 = vpop.eup %5062 }
0x21fe   : > { %v1782_v3 = vmul.f32 %v5063_v0, %v1689_v51 }
0x2261   : > { %v1785_v1 = vpop.permute.xlu1 %1784 }
0x2262   : > { %v1787_v2 = vmul.f32 %v5063_v0, %v1785_v1  ;;  %v2120_v1 = vld [vmem:[%s5836_s4 + $0x8] sm:$0xff] }
0x2264   : > { %1789 = vrot.lane.b32.xlu0 %v1787_v2, %s5263_s18  ;;  %v2121_v2 = vld [vmem:[%s5836_s4 + $0x10] sm:$0xff] }
0x22d6   : > { %v1790_v4 = vpop.permute.xlu0 %1789 }
0x22d7   : > { %v1792_v5 = vadd.f32 %v1790_v4, %v1782_v3  ;;  %v2122_v4 = vld [vmem:[%s5836_s4 + $0x18] sm:$0xff] }
0x22d9   : > { %5064 = vtanh.f32 %v1792_v5 }
0x22e3   : > { %v5065_v6 = vpop.eup %5064 }
0x22e4   : > { %1795 = vrot.lane.b32.xlu1 %v5065_v6, %s5262_s17  ;;  %v2123_v6 = vld [vmem:[%s5837_s5] sm:$0xff] }
0x2356   : > { %v1796_v9 = vpop.permute.xlu1 %1795 }
0x2357   : > { %v1798_v12 = vmul.f32 %v5063_v0, %v1796_v9  ;;  %v2119_v0 = vld [vmem:[%s5836_s4] sm:$0xff]  ;;  %v2124_v9 = vld [vmem:[%s5837_s5 + $0x8] sm:$0xff] }
0x2358   : > { %v4803_v3 = vpack.c.bf16 %v2120_v1, %v2119_v0 }
0x2359   : > { %1800 = vrot.lane.b32.xlu0 %v1798_v12, %s5263_s18  ;;  %v2125_v12 = vld [vmem:[%s5837_s5 + $0x10] sm:$0xff] }
0x235a   : > { %4804 = vmatprep.subr.bf16.mxu1 %v4803_v3 }
0x23cb   : > { %v1801_v13 = vpop.permute.xlu0 %1800 }
0x23cc   : > { %1803 = vst.msk [vmem:[#allocation4 + $0xc] sm:$0x1] %vm566_vm4, %v1801_v13  ;;  %4485 = vmatmul.mubr.msk.f32.vlgmr.msra.gmra.mrb[14].mxu0 %vm455_vm3, %v1801_v13  ;;  %v5591_v13 = vpack.c.bf16 %v2124_v9, %v2123_v6 }
0x23cd   : > { %4799 = vmatpush3.bf16.msra.mxu0 %v5362_v8  ;;  %4506 = vmatprep.mubr.msk.f32.mxu0 %vm5260_vm2, %v5261_v10 }
0x23ce   : > { %4800 = vmatprep.subr.bf16.mxu0 %v5259_v7 }
0x23d1   : > { %4802 = vmatpush3.bf16.msra.mxu0 %v5371_v11 }
0x23d2   : > { %4811 = vmatprep.subr.bf16.mxu0 %v5259_v7 }
0x249f   : > { %v1873_v15 = vpop.f32.mrb[14].mxu0 }
0x24a0   : > { %v1877_v16 = vadd.f32 %v1873_v15, %v1804_v14  ;;  %v4486_v17 = vpop.f32.mrb[15].mxu0  ;;  %v2126_v14 = vld [vmem:[%s5837_s5 + $0x18] sm:$0xff] }
0x24a1   : > { %v5598_v17 = vpack.c.bf16 %v2126_v14, %v2125_v12 }
0x24a2   : > { %5066 = vtanh.f32 %v1877_v16  ;;  %v4108_v19 = vmul.f32 -1.442695, %v1877_v16 }
0x24a4   : > { %5068 = vpow2.f32 %v4108_v19  ;;  %v2220_v19 = vld [vmem:[#allocation2 + $0x1] sm:$0x1] }
0x24ac   : > { %v5067_v18 = vpop.eup %5066 }
0x24ad   : > { %1887 = vrot.lane.b32.xlu1 %v5067_v18, %s5262_s17  ;;  %v4118_v18 = vld [vmem:[#allocation3 + $0x1] ss:$0 sm:$0xff] }
0x24ae   : > { %v5069_v8 = vpop.eup %5068 }
0x24af   : > { %v1881_v20 = vadd.f32 1.0, %v5069_v8 }
0x24b1   : > { %5070 = vrcp.f32 %v1881_v20 }
0x24bb   : > { %v5071_v21 = vpop.eup %5070 }
0x24bc   : > { %v1885_v11 = vmul.f32 %v5071_v21, %v1792_v5  ;;  %v4807_v5 = vpack.c.bf16 %v2122_v4, %v2121_v2 }
0x251f   : > { %v1888_v22 = vpop.permute.xlu1 %1887 }
0x2520   : > { %v1890_v23 = vmul.f32 %v5071_v21, %v1888_v22 }
0x2522   : > { %1892 = vrot.lane.b32.xlu0 %v1890_v23, %s5263_s18  ;;  %v4113_v23 = vld [vmem:[%s5838_s6] ss:$0 sm:$0xff] }
0x2594   : > { %v1893_v24 = vpop.permute.xlu0 %1892 }
0x2595   : > { %v1895_v25 = vadd.f32 %v1893_v24, %v1885_v11 }
0x2597   : > { %5072 = vtanh.f32 %v1895_v25 }
0x25a1   : > { %v5073_v26 = vpop.eup %5072 }
0x25a2   : > { %1898 = vrot.lane.b32.xlu1 %v5073_v26, %s5262_s17 }
0x2614   : > { %v1899_v27 = vpop.permute.xlu1 %1898 }
0x2615   : > { %v1901_v28 = vmul.f32 %v5071_v21, %v1899_v27 }
0x2617   : > { %1903 = vrot.lane.b32.xlu0 %v1901_v28, %s5263_s18 }
0x2689   : > { %v1904_v29 = vpop.permute.xlu0 %1903 }
0x268a   : > { %1906 = vst.msk [vmem:[#allocation4 + $0xd] sm:$0x1] %vm566_vm4, %v1904_v29  ;;  %4496 = vmatmul.mubr.msk.f32.vlgmr.msra.gmra.mrb[14].mxu1 %vm455_vm3, %v1904_v29 }
0x268b   : > { %4517 = vmatprep.mubr.msk.f32.mxu1 %vm455_vm3, %v2128_v30  ;;  %4806 = vmatpush3.bf16.msra.mxu1 %v4803_v3 }
0x268c   : > { %4808 = vmatprep.subr.bf16.mxu1 %v4807_v5 }
0x268f   : > { %4810 = vmatpush3.bf16.msra.mxu1 %v4807_v5 }
0x2690   : > { %4817 = vmatprep.subr.bf16.mxu1 %v5259_v7 }
0x275d   : > { %v1976_v32 = vpop.f32.mrb[14].mxu1 }
0x275e   : > { %v1980_v33 = vadd.f32 %v1976_v32, %v1907_v31  ;;  %v4497_v34 = vpop.f32.mrb[15].mxu1 }
0x2760   : > { %5074 = vtanh.f32 %v1980_v33  ;;  %v4110_v36 = vmul.f32 -1.442695, %v1980_v33 }
0x2762   : > { %5076 = vpow2.f32 %v4110_v36 }
0x276a   : > { %v5075_v35 = vpop.eup %5074 }
0x276b   : > { %1990 = vrot.lane.b32.xlu1 %v5075_v35, %s5262_s17 }
0x276c   : > { %v5077_v37 = vpop.eup %5076 }
0x276d   : > { %v1984_v38 = vadd.f32 1.0, %v5077_v37 }
0x276f   : > { %5078 = vrcp.f32 %v1984_v38 }
0x2779   : > { %v5079_v39 = vpop.eup %5078 }
0x277a   : > { %v1988_v42 = vmul.f32 %v5079_v39, %v1895_v25 }
0x27dd   : > { %v1991_v40 = vpop.permute.xlu1 %1990 }
0x27de   : > { %v1993_v41 = vmul.f32 %v5079_v39, %v1991_v40 }
0x27e0   : > { %1995 = vrot.lane.b32.xlu0 %v1993_v41, %s5263_s18 }
0x2852   : > { %v1996_v43 = vpop.permute.xlu0 %1995 }
0x2853   : > { %v1998_v44 = vadd.f32 %v1996_v43, %v1988_v42 }
0x2855   : > { %5080 = vtanh.f32 %v1998_v44 }
0x285f   : > { %v5081_v45 = vpop.eup %5080 }
0x2860   : > { %2001 = vrot.lane.b32.xlu1 %v5081_v45, %s5262_s17 }
0x28d2   : > { %v2002_v46 = vpop.permute.xlu1 %2001 }
0x28d3   : > { %v2004_v47 = vmul.f32 %v5079_v39, %v2002_v46 }
0x28d5   : > { %2006 = vrot.lane.b32.xlu0 %v2004_v47, %s5263_s18 }
0x2947   : > { %v2007_v48 = vpop.permute.xlu0 %2006 }
0x2948   : > { %2009 = vst.msk [vmem:[#allocation4 + $0xe] sm:$0x1] %vm566_vm4, %v2007_v48  ;;  %4507 = vmatmul.mubr.msk.f32.vlgmr.msra.gmra.mrb[16].mxu0 %vm455_vm3, %v2007_v48 }
0x2949   : > { %4528 = vmatprep.mubr.msk.f32.mxu0 %vm5260_vm2, %v5261_v10  ;;  %4813 = vmatpush3.bf16.msra.mxu0 %v5591_v13 }
0x294a   : > { %4814 = vmatprep.subr.bf16.mxu0 %v5259_v7 }
0x294d   : > { %4816 = vmatpush3.bf16.msra.mxu0 %v5598_v17 }
0x294e   : > { %4823 = vmatprep.subr.bf16.mxu0 %v5259_v7 }
0x2950   : > { %4529 = vmatmul.mubr.msk.f32.vlgmr.msra.gmra.mrb[18].mxu0 %vm455_vm3, %v2220_v19 }
0x2951   : > { %4825 = vmatpush3.bf16.msra.mxu0 %v5591_v13  ;;  %4550 = vmatprep.mubr.msk.f32.mxu0 %vm5260_vm2, %v5261_v10 }
0x2952   : > { %4826 = vmatprep.subr.bf16.mxu0 %v5259_v7 }
0x2955   : > { %4828 = vmatpush3.bf16.msra.mxu0 %v5598_v17 }
0x2956   : > { %4835 = vmatprep.subr.bf16.mxu0 %v5259_v7 }
0x2a1b   : > { %v2079_v50 = vpop.f32.mrb[16].mxu0 }
0x2a1c   : > { %v2083_v51 = vadd.f32 %v2079_v50, %v2010_v49  ;;  %v4508_v52 = vpop.f32.mrb[17].mxu0 }
0x2a1e   : > { %5082 = vtanh.f32 %v2083_v51  ;;  %v4112_v54 = vmul.f32 -1.442695, %v2083_v51 }
0x2a20   : > { %5084 = vpow2.f32 %v4112_v54 }
0x2a23   : > { %v2293_v21 = vpop.f32.mrb[18].mxu0 }
0x2a24   : > { %v4530_v22 = vpop.f32.mrb[19].mxu0 }
0x2a28   : > { %v5083_v53 = vpop.eup %5082 }
0x2a29   : > { %2093 = vrot.lane.b32.xlu1 %v5083_v53, %s5262_s17 }
0x2a2a   : > { %v5085_v55 = vpop.eup %5084 }
0x2a2b   : > { %v2087_v56 = vadd.f32 1.0, %v5085_v55 }
0x2a2d   : > { %5086 = vrcp.f32 %v2087_v56 }
0x2a37   : > { %v5087_v57 = vpop.eup %5086 }
0x2a38   : > { %v2091_v60 = vmul.f32 %v5087_v57, %v1998_v44 }
0x2a9b   : > { %v2094_v58 = vpop.permute.xlu1 %2093 }
0x2a9c   : > { %v2096_v59 = vmul.f32 %v5087_v57, %v2094_v58 }
0x2a9e   : > { %2098 = vrot.lane.b32.xlu0 %v2096_v59, %s5263_s18 }
0x2b10   : > { %v2099_v61 = vpop.permute.xlu0 %2098 }
0x2b11   : > { %v5566_v62 = vadd.f32 %v2099_v61, %v2091_v60 }
0x2b13   : > { %5088 = vtanh.f32 %v5566_v62 }
0x2b1d   : > { %v5089_v63 = vpop.eup %5088 }
0x2b1e   : > { %2104 = vrot.lane.b32.xlu1 %v5089_v63, %s5262_s17 }
0x2b90   : > { %v2105_v15 = vpop.permute.xlu1 %2104 }
0x2b91   : > { %v2107_v16 = vmul.f32 %v5087_v57, %v2105_v15 }
0x2b93   : > { %2109 = vrot.lane.b32.xlu0 %v2107_v16, %s5263_s18 }
0x2b97   : > { %2310 = vrot.lane.b32.xlu0 %v4118_v18, %s5263_s18 }
0x2c05   : > { %v2110_v8 = vpop.permute.xlu0 %2109 }
0x2c06   : > { %2112 = vst.msk [vmem:[#allocation4 + $0xf] sm:$0x1] %vm566_vm4, %v2110_v8  ;;  %2113 = vst.msk [vmem:[#allocation2] sm:$0x1] %vm566_vm4, %v2110_v8 }
0x2c09   : > { %v2311_v36 = vpop.permute.xlu0 %2310 }
0x2c0d   : > { %v2129_v20 = vld [vmem:[#allocation4 + $0x8] sm:$0xff] }
0x2c0e   : > { %4518 = vmatmul.mubr.msk.f32.vlgmr.msra.gmra.mrb[16].mxu1 %vm455_vm3, %v2129_v20 }
0x2c0f   : > { %4819 = vmatpush3.bf16.msra.mxu1 %v5591_v13  ;;  %4539 = vmatprep.mubr.msk.f32.mxu1 %vm5260_vm2, %v5261_v10 }
0x2c10   : > { %4820 = vmatprep.subr.bf16.mxu1 %v5259_v7 }
0x2c13   : > { %4822 = vmatpush3.bf16.msra.mxu1 %v5598_v17 }
0x2c14   : > { %4829 = vmatprep.subr.bf16.mxu1 %v5259_v7 }
0x2ce1   : > { %v4519_v11 = vpop.f32.mrb[16].mxu1 }
0x2ce2   : > { %v2214_v24 = vadd.f32 %v4519_v11, %v4113_v23  ;;  %v2208_v25 = vpop.f32.mrb[17].mxu1 }
0x2ce3   : > { %v2209_v26 = vadd.f32 %v4113_v23, %v2208_v25 }
0x2ce4   : > { %2218 = vst [vmem:[#allocation5 + $0x8] sm:$0xff] %v2214_v24 }
0x2ce5   : > { %2217 = vst [vmem:[#allocation5] sm:$0xff] %v2209_v26 }
0x2cec   : > { %v2223_v27 = vld [vmem:[#allocation5] sm:$0x1]  ;;  %v2335_v44 = vld [vmem:[#allocation5 + $0x1] sm:$0x1]  ;;  %v2438_v63 = vld [vmem:[#allocation5 + $0x2] sm:$0x1] }
0x2ced   : > { %v2297_v28 = vadd.f32 %v2293_v21, %v2223_v27  ;;  %v2541_v22 = vld [vmem:[#allocation5 + $0x3] sm:$0x1] }
0x2cef   : > { %5090 = vtanh.f32 %v2297_v28  ;;  %v4117_v30 = vmul.f32 -1.442695, %v2297_v28 }
0x2cf1   : > { %5092 = vpow2.f32 %v4117_v30 }
0x2cf9   : > { %v5091_v29 = vpop.eup %5090 }
0x2cfa   : > { %2315 = vrot.lane.b32.xlu1 %v5091_v29, %s5262_s17 }
0x2cfb   : > { %v5093_v31 = vpop.eup %5092 }
0x2cfc   : > { %v2301_v32 = vadd.f32 1.0, %v5093_v31 }
0x2cfe   : > { %5094 = vrcp.f32 %v2301_v32 }
0x2d08   : > { %v5095_v33 = vpop.eup %5094 }
0x2d09   : > { %v2313_v37 = vmul.f32 %v5095_v33, %v2311_v36 }
0x2d6c   : > { %v2316_v34 = vpop.permute.xlu1 %2315 }
0x2d6d   : > { %v2318_v35 = vmul.f32 %v5095_v33, %v2316_v34 }
0x2d6f   : > { %2320 = vrot.lane.b32.xlu1 %v2318_v35, %s5263_s18 }
0x2de1   : > { %v2321_v38 = vpop.permute.xlu1 %2320 }
0x2de2   : > { %v2323_v39 = vadd.f32 %v2321_v38, %v2313_v37 }
0x2de4   : > { %5096 = vtanh.f32 %v2323_v39 }
0x2dee   : > { %v5097_v40 = vpop.eup %5096 }
0x2def   : > { %2326 = vrot.lane.b32.xlu0 %v5097_v40, %s5262_s17 }
0x2e61   : > { %v2327_v41 = vpop.permute.xlu0 %2326 }
0x2e62   : > { %v2329_v42 = vmul.f32 %v5095_v33, %v2327_v41 }
0x2e64   : > { %2331 = vrot.lane.b32.xlu1 %v2329_v42, %s5263_s18 }
0x2ed6   : > { %v2332_v43 = vpop.permute.xlu1 %2331 }
0x2ed7   : > { %2334 = vst.msk [vmem:[#allocation4] sm:$0x1] %vm566_vm4, %v2332_v43  ;;  %4540 = vmatmul.mubr.msk.f32.vlgmr.msra.gmra.mrb[18].mxu1 %vm455_vm3, %v2332_v43 }
0x2ed8   : > { %4831 = vmatpush3.bf16.msra.mxu1 %v5591_v13  ;;  %4561 = vmatprep.mubr.msk.f32.mxu1 %vm5260_vm2, %v5261_v10 }
0x2ed9   : > { %4832 = vmatprep.subr.bf16.mxu1 %v5259_v7 }
0x2edc   : > { %4834 = vmatpush3.bf16.msra.mxu1 %v5598_v17 }
0x2edd   : > { %4841 = vmatprep.subr.bf16.mxu1 %v5259_v7 }
0x2faa   : > { %v2404_v45 = vpop.f32.mrb[18].mxu1 }
0x2fab   : > { %v2408_v46 = vadd.f32 %v2404_v45, %v2335_v44  ;;  %v4541_v47 = vpop.f32.mrb[19].mxu1 }
0x2fad   : > { %5098 = vtanh.f32 %v2408_v46  ;;  %v4120_v49 = vmul.f32 -1.442695, %v2408_v46 }
0x2faf   : > { %5100 = vpow2.f32 %v4120_v49 }
0x2fb7   : > { %v5099_v48 = vpop.eup %5098 }
0x2fb8   : > { %2418 = vrot.lane.b32.xlu0 %v5099_v48, %s5262_s17 }
0x2fb9   : > { %v5101_v50 = vpop.eup %5100 }
0x2fba   : > { %v2412_v51 = vadd.f32 1.0, %v5101_v50 }
0x2fbc   : > { %5102 = vrcp.f32 %v2412_v51 }
0x2fc6   : > { %v5103_v52 = vpop.eup %5102 }
0x2fc7   : > { %v2416_v55 = vmul.f32 %v5103_v52, %v2323_v39  ;;  %v2644_v39 = vld [vmem:[#allocation5 + $0x4] sm:$0x1] }
0x302a   : > { %v2419_v53 = vpop.permute.xlu0 %2418 }
0x302b   : > { %v2421_v54 = vmul.f32 %v5103_v52, %v2419_v53 }
0x302d   : > { %2423 = vrot.lane.b32.xlu1 %v2421_v54, %s5263_s18 }
0x309f   : > { %v2424_v56 = vpop.permute.xlu1 %2423 }
0x30a0   : > { %v2426_v57 = vadd.f32 %v2424_v56, %v2416_v55 }
0x30a2   : > { %5104 = vtanh.f32 %v2426_v57 }
0x30ac   : > { %v5105_v58 = vpop.eup %5104 }
0x30ad   : > { %2429 = vrot.lane.b32.xlu0 %v5105_v58, %s5262_s17 }
0x311f   : > { %v2430_v59 = vpop.permute.xlu0 %2429 }
0x3120   : > { %v2432_v60 = vmul.f32 %v5103_v52, %v2430_v59 }
0x3122   : > { %2434 = vrot.lane.b32.xlu1 %v2432_v60, %s5263_s18 }
0x3194   : > { %v2435_v61 = vpop.permute.xlu1 %2434 }
0x3195   : > { %2437 = vst.msk [vmem:[#allocation4 + $0x1] sm:$0x1] %vm566_vm4, %v2435_v61  ;;  %4551 = vmatmul.mubr.msk.f32.vlgmr.msra.gmra.mrb[20].mxu0 %vm455_vm3, %v2435_v61 }
0x3196   : > { %4837 = vmatpush3.bf16.msra.mxu0 %v5591_v13  ;;  %4572 = vmatprep.mubr.msk.f32.mxu0 %vm5260_vm2, %v5261_v10 }
0x3197   : > { %4838 = vmatprep.subr.bf16.mxu0 %v5259_v7 }
0x319a   : > { %4840 = vmatpush3.bf16.msra.mxu0 %v5598_v17 }
0x319b   : > { %4847 = vmatprep.subr.bf16.mxu0 %v5259_v7 }
0x3268   : > { %v2507_v0 = vpop.f32.mrb[20].mxu0 }
0x3269   : > { %v2511_v1 = vadd.f32 %v2507_v0, %v2438_v63  ;;  %v4552_v2 = vpop.f32.mrb[21].mxu0 }
0x326b   : > { %5106 = vtanh.f32 %v2511_v1  ;;  %v4122_v4 = vmul.f32 -1.442695, %v2511_v1 }
0x326d   : > { %5108 = vpow2.f32 %v4122_v4 }
0x3275   : > { %v5107_v3 = vpop.eup %5106 }
0x3276   : > { %2521 = vrot.lane.b32.xlu0 %v5107_v3, %s5262_s17 }
0x3277   : > { %v5109_v5 = vpop.eup %5108 }
0x3278   : > { %v2515_v6 = vadd.f32 1.0, %v5109_v5 }
0x327a   : > { %5110 = vrcp.f32 %v2515_v6 }
0x3284   : > { %v5111_v9 = vpop.eup %5110 }
0x3285   : > { %v2519_v15 = vmul.f32 %v5111_v9, %v2426_v57  ;;  %v2747_v57 = vld [vmem:[#allocation5 + $0x5] sm:$0x1] }
0x32e8   : > { %v2522_v12 = vpop.permute.xlu0 %2521 }
0x32e9   : > { %v2524_v14 = vmul.f32 %v5111_v9, %v2522_v12 }
0x32eb   : > { %2526 = vrot.lane.b32.xlu1 %v2524_v14, %s5263_s18 }
0x335d   : > { %v2527_v16 = vpop.permute.xlu1 %2526 }
0x335e   : > { %v2529_v18 = vadd.f32 %v2527_v16, %v2519_v15 }
0x3360   : > { %5112 = vtanh.f32 %v2529_v18 }
0x336a   : > { %v5113_v19 = vpop.eup %5112 }
0x336b   : > { %2532 = vrot.lane.b32.xlu0 %v5113_v19, %s5262_s17 }
0x33dd   : > { %v2533_v8 = vpop.permute.xlu0 %2532 }
0x33de   : > { %v2535_v20 = vmul.f32 %v5111_v9, %v2533_v8 }
0x33e0   : > { %2537 = vrot.lane.b32.xlu1 %v2535_v20, %s5263_s18 }
0x3452   : > { %v2538_v21 = vpop.permute.xlu1 %2537 }
0x3453   : > { %2540 = vst.msk [vmem:[#allocation4 + $0x2] sm:$0x1] %vm566_vm4, %v2538_v21  ;;  %4562 = vmatmul.mubr.msk.f32.vlgmr.msra.gmra.mrb[20].mxu1 %vm455_vm3, %v2538_v21 }
0x3454   : > { %4843 = vmatpush3.bf16.msra.mxu1 %v5591_v13  ;;  %4583 = vmatprep.mubr.msk.f32.mxu1 %vm5260_vm2, %v5261_v10 }
0x3455   : > { %4844 = vmatprep.subr.bf16.mxu1 %v5259_v7 }
0x3458   : > { %4846 = vmatpush3.bf16.msra.mxu1 %v5598_v17 }
0x3459   : > { %4853 = vmatprep.subr.bf16.mxu1 %v5259_v7 }
0x3526   : > { %v2610_v23 = vpop.f32.mrb[20].mxu1 }
0x3527   : > { %v2614_v11 = vadd.f32 %v2610_v23, %v2541_v22  ;;  %v4563_v24 = vpop.f32.mrb[21].mxu1 }
0x3529   : > { %5114 = vtanh.f32 %v2614_v11  ;;  %v4124_v26 = vmul.f32 -1.442695, %v2614_v11 }
0x352b   : > { %5116 = vpow2.f32 %v4124_v26 }
0x3533   : > { %v5115_v25 = vpop.eup %5114 }
0x3534   : > { %2624 = vrot.lane.b32.xlu0 %v5115_v25, %s5262_s17 }
0x3535   : > { %v5117_v27 = vpop.eup %5116 }
0x3536   : > { %v2618_v28 = vadd.f32 1.0, %v5117_v27 }
0x3538   : > { %5118 = vrcp.f32 %v2618_v28 }
0x3542   : > { %v5119_v29 = vpop.eup %5118 }
0x3543   : > { %v2622_v32 = vmul.f32 %v5119_v29, %v2529_v18  ;;  %v2850_v18 = vld [vmem:[#allocation5 + $0x6] sm:$0x1] }
0x35a6   : > { %v2625_v30 = vpop.permute.xlu0 %2624 }
0x35a7   : > { %v2627_v31 = vmul.f32 %v5119_v29, %v2625_v30 }
0x35a9   : > { %2629 = vrot.lane.b32.xlu1 %v2627_v31, %s5263_s18 }
0x361b   : > { %v2630_v33 = vpop.permute.xlu1 %2629 }
0x361c   : > { %v2632_v34 = vadd.f32 %v2630_v33, %v2622_v32 }
0x361e   : > { %5120 = vtanh.f32 %v2632_v34 }
0x3628   : > { %v5121_v35 = vpop.eup %5120 }
0x3629   : > { %2635 = vrot.lane.b32.xlu0 %v5121_v35, %s5262_s17 }
0x369b   : > { %v2636_v36 = vpop.permute.xlu0 %2635 }
0x369c   : > { %v2638_v37 = vmul.f32 %v5119_v29, %v2636_v36 }
0x369e   : > { %2640 = vrot.lane.b32.xlu1 %v2638_v37, %s5263_s18 }
0x3710   : > { %v2641_v38 = vpop.permute.xlu1 %2640 }
0x3711   : > { %2643 = vst.msk [vmem:[#allocation4 + $0x3] sm:$0x1] %vm566_vm4, %v2641_v38  ;;  %4573 = vmatmul.mubr.msk.f32.vlgmr.msra.gmra.mrb[22].mxu0 %vm455_vm3, %v2641_v38 }
0x3712   : > { %4849 = vmatpush3.bf16.msra.mxu0 %v5591_v13  ;;  %4594 = vmatprep.mubr.msk.f32.mxu0 %vm5260_vm2, %v5261_v10 }
0x3713   : > { %4850 = vmatprep.subr.bf16.mxu0 %v5259_v7 }
0x3716   : > { %4852 = vmatpush3.bf16.msra.mxu0 %v5598_v17 }
0x3717   : > { %4859 = vmatprep.subr.bf16.mxu0 %v5259_v7 }
0x37e4   : > { %v2713_v40 = vpop.f32.mrb[22].mxu0 }
0x37e5   : > { %v2717_v41 = vadd.f32 %v2713_v40, %v2644_v39  ;;  %v4574_v42 = vpop.f32.mrb[23].mxu0 }
0x37e7   : > { %5122 = vtanh.f32 %v2717_v41  ;;  %v4126_v44 = vmul.f32 -1.442695, %v2717_v41 }
0x37e9   : > { %5124 = vpow2.f32 %v4126_v44 }
0x37f1   : > { %v5123_v43 = vpop.eup %5122 }
0x37f2   : > { %2727 = vrot.lane.b32.xlu0 %v5123_v43, %s5262_s17 }
0x37f3   : > { %v5125_v45 = vpop.eup %5124 }
0x37f4   : > { %v2721_v46 = vadd.f32 1.0, %v5125_v45 }
0x37f6   : > { %5126 = vrcp.f32 %v2721_v46 }
0x3800   : > { %v5127_v47 = vpop.eup %5126 }
0x3801   : > { %v2725_v50 = vmul.f32 %v5127_v47, %v2632_v34  ;;  %v2953_v34 = vld [vmem:[#allocation5 + $0x7] sm:$0x1] }
0x3864   : > { %v2728_v48 = vpop.permute.xlu0 %2727 }
0x3865   : > { %v2730_v49 = vmul.f32 %v5127_v47, %v2728_v48 }
0x3867   : > { %2732 = vrot.lane.b32.xlu1 %v2730_v49, %s5263_s18 }
0x38d9   : > { %v2733_v51 = vpop.permute.xlu1 %2732 }
0x38da   : > { %v2735_v52 = vadd.f32 %v2733_v51, %v2725_v50 }
0x38dc   : > { %5128 = vtanh.f32 %v2735_v52 }
0x38e6   : > { %v5129_v53 = vpop.eup %5128 }
0x38e7   : > { %2738 = vrot.lane.b32.xlu0 %v5129_v53, %s5262_s17 }
0x3959   : > { %v2739_v54 = vpop.permute.xlu0 %2738 }
0x395a   : > { %v2741_v55 = vmul.f32 %v5127_v47, %v2739_v54 }
0x395c   : > { %2743 = vrot.lane.b32.xlu1 %v2741_v55, %s5263_s18 }
0x39ce   : > { %v2744_v56 = vpop.permute.xlu1 %2743 }
0x39cf   : > { %2746 = vst.msk [vmem:[#allocation4 + $0x4] sm:$0x1] %vm566_vm4, %v2744_v56  ;;  %4584 = vmatmul.mubr.msk.f32.vlgmr.msra.gmra.mrb[22].mxu1 %vm455_vm3, %v2744_v56 }
0x39d0   : > { %4855 = vmatpush3.bf16.msra.mxu1 %v5591_v13  ;;  %4605 = vmatprep.mubr.msk.f32.mxu1 %vm5260_vm2, %v5261_v10 }
0x39d1   : > { %4856 = vmatprep.subr.bf16.mxu1 %v5259_v7 }
0x39d4   : > { %4858 = vmatpush3.bf16.msra.mxu1 %v5598_v17 }
0x39d5   : > { %4865 = vmatprep.subr.bf16.mxu1 %v5259_v7 }
0x3aa2   : > { %v2816_v58 = vpop.f32.mrb[22].mxu1 }
0x3aa3   : > { %v2820_v59 = vadd.f32 %v2816_v58, %v2747_v57  ;;  %v4585_v60 = vpop.f32.mrb[23].mxu1 }
0x3aa5   : > { %5130 = vtanh.f32 %v2820_v59  ;;  %v4128_v63 = vmul.f32 -1.442695, %v2820_v59 }
0x3aa7   : > { %5132 = vpow2.f32 %v4128_v63 }
0x3aaf   : > { %v5131_v61 = vpop.eup %5130 }
0x3ab0   : > { %2830 = vrot.lane.b32.xlu0 %v5131_v61, %s5262_s17 }
0x3ab1   : > { %v5133_v0 = vpop.eup %5132 }
0x3ab2   : > { %v2824_v1 = vadd.f32 1.0, %v5133_v0 }
0x3ab4   : > { %5134 = vrcp.f32 %v2824_v1 }
0x3abe   : > { %v5135_v2 = vpop.eup %5134 }
0x3abf   : > { %v2828_v5 = vmul.f32 %v5135_v2, %v2735_v52  ;;  %v3056_v52 = vld [vmem:[#allocation5 + $0x8] sm:$0x1] }
0x3b22   : > { %v2831_v3 = vpop.permute.xlu0 %2830 }
0x3b23   : > { %v2833_v4 = vmul.f32 %v5135_v2, %v2831_v3 }
0x3b25   : > { %2835 = vrot.lane.b32.xlu1 %v2833_v4, %s5263_s18 }
0x3b97   : > { %v2836_v6 = vpop.permute.xlu1 %2835 }
0x3b98   : > { %v2838_v9 = vadd.f32 %v2836_v6, %v2828_v5 }
0x3b9a   : > { %5136 = vtanh.f32 %v2838_v9 }
0x3ba4   : > { %v5137_v12 = vpop.eup %5136 }
0x3ba5   : > { %2841 = vrot.lane.b32.xlu0 %v5137_v12, %s5262_s17 }
0x3c17   : > { %v2842_v14 = vpop.permute.xlu0 %2841 }
0x3c18   : > { %v2844_v15 = vmul.f32 %v5135_v2, %v2842_v14 }
0x3c1a   : > { %2846 = vrot.lane.b32.xlu1 %v2844_v15, %s5263_s18 }
0x3c8c   : > { %v2847_v16 = vpop.permute.xlu1 %2846 }
0x3c8d   : > { %2849 = vst.msk [vmem:[#allocation4 + $0x5] sm:$0x1] %vm566_vm4, %v2847_v16  ;;  %4595 = vmatmul.mubr.msk.f32.vlgmr.msra.gmra.mrb[24].mxu0 %vm455_vm3, %v2847_v16 }
0x3c8e   : > { %4861 = vmatpush3.bf16.msra.mxu0 %v5591_v13  ;;  %4616 = vmatprep.mubr.msk.f32.mxu0 %vm5260_vm2, %v5261_v10 }
0x3c8f   : > { %4862 = vmatprep.subr.bf16.mxu0 %v5259_v7 }
0x3c92   : > { %4864 = vmatpush3.bf16.msra.mxu0 %v5598_v17 }
0x3c93   : > { %4871 = vmatprep.subr.bf16.mxu0 %v5259_v7 }
0x3d60   : > { %v2919_v19 = vpop.f32.mrb[24].mxu0 }
0x3d61   : > { %v2923_v8 = vadd.f32 %v2919_v19, %v2850_v18  ;;  %v4596_v20 = vpop.f32.mrb[25].mxu0 }
0x3d63   : > { %5138 = vtanh.f32 %v2923_v8  ;;  %v4130_v22 = vmul.f32 -1.442695, %v2923_v8 }
0x3d65   : > { %5140 = vpow2.f32 %v4130_v22 }
0x3d6d   : > { %v5139_v21 = vpop.eup %5138 }
0x3d6e   : > { %2933 = vrot.lane.b32.xlu0 %v5139_v21, %s5262_s17 }
0x3d6f   : > { %v5141_v23 = vpop.eup %5140 }
0x3d70   : > { %v2927_v11 = vadd.f32 1.0, %v5141_v23 }
0x3d72   : > { %5142 = vrcp.f32 %v2927_v11 }
0x3d7c   : > { %v5143_v24 = vpop.eup %5142 }
0x3d7d   : > { %v2931_v27 = vmul.f32 %v5143_v24, %v2838_v9  ;;  %v3159_v9 = vld [vmem:[#allocation5 + $0x9] sm:$0x1] }
0x3de0   : > { %v2934_v25 = vpop.permute.xlu0 %2933 }
0x3de1   : > { %v2936_v26 = vmul.f32 %v5143_v24, %v2934_v25 }
0x3de3   : > { %2938 = vrot.lane.b32.xlu1 %v2936_v26, %s5263_s18 }
0x3e55   : > { %v2939_v28 = vpop.permute.xlu1 %2938 }
0x3e56   : > { %v2941_v29 = vadd.f32 %v2939_v28, %v2931_v27 }
0x3e58   : > { %5144 = vtanh.f32 %v2941_v29 }
0x3e62   : > { %v5145_v30 = vpop.eup %5144 }
0x3e63   : > { %2944 = vrot.lane.b32.xlu0 %v5145_v30, %s5262_s17 }
0x3ed5   : > { %v2945_v31 = vpop.permute.xlu0 %2944 }
0x3ed6   : > { %v2947_v32 = vmul.f32 %v5143_v24, %v2945_v31 }
0x3ed8   : > { %2949 = vrot.lane.b32.xlu1 %v2947_v32, %s5263_s18 }
0x3f4a   : > { %v2950_v33 = vpop.permute.xlu1 %2949 }
0x3f4b   : > { %2952 = vst.msk [vmem:[#allocation4 + $0x6] sm:$0x1] %vm566_vm4, %v2950_v33  ;;  %4606 = vmatmul.mubr.msk.f32.vlgmr.msra.gmra.mrb[24].mxu1 %vm455_vm3, %v2950_v33 }
0x3f4c   : > { %4867 = vmatpush3.bf16.msra.mxu1 %v5591_v13  ;;  %4627 = vmatprep.mubr.msk.f32.mxu1 %vm5260_vm2, %v5261_v10 }
0x3f4d   : > { %4868 = vmatprep.subr.bf16.mxu1 %v5259_v7 }
0x3f50   : > { %4870 = vmatpush3.bf16.msra.mxu1 %v5598_v17 }
0x3f51   : > { %4877 = vmatprep.subr.bf16.mxu1 %v5259_v7 }
0x401e   : > { %v3022_v35 = vpop.f32.mrb[24].mxu1 }
0x401f   : > { %v3026_v36 = vadd.f32 %v3022_v35, %v2953_v34  ;;  %v4607_v37 = vpop.f32.mrb[25].mxu1 }
0x4021   : > { %5146 = vtanh.f32 %v3026_v36  ;;  %v4132_v39 = vmul.f32 -1.442695, %v3026_v36 }
0x4023   : > { %5148 = vpow2.f32 %v4132_v39 }
0x402b   : > { %v5147_v38 = vpop.eup %5146 }
0x402c   : > { %3036 = vrot.lane.b32.xlu0 %v5147_v38, %s5262_s17 }
0x402d   : > { %v5149_v40 = vpop.eup %5148 }
0x402e   : > { %v3030_v41 = vadd.f32 1.0, %v5149_v40 }
0x4030   : > { %5150 = vrcp.f32 %v3030_v41 }
0x403a   : > { %v5151_v42 = vpop.eup %5150 }
0x403b   : > { %v3034_v45 = vmul.f32 %v5151_v42, %v2941_v29  ;;  %v3262_v29 = vld [vmem:[#allocation5 + $0xa] sm:$0x1] }
0x409e   : > { %v3037_v43 = vpop.permute.xlu0 %3036 }
0x409f   : > { %v3039_v44 = vmul.f32 %v5151_v42, %v3037_v43 }
0x40a1   : > { %3041 = vrot.lane.b32.xlu1 %v3039_v44, %s5263_s18 }
0x4113   : > { %v3042_v46 = vpop.permute.xlu1 %3041 }
0x4114   : > { %v3044_v47 = vadd.f32 %v3042_v46, %v3034_v45 }
0x4116   : > { %5152 = vtanh.f32 %v3044_v47 }
0x4120   : > { %v5153_v48 = vpop.eup %5152 }
0x4121   : > { %3047 = vrot.lane.b32.xlu0 %v5153_v48, %s5262_s17 }
0x4193   : > { %v3048_v49 = vpop.permute.xlu0 %3047 }
0x4194   : > { %v3050_v50 = vmul.f32 %v5151_v42, %v3048_v49 }
0x4196   : > { %3052 = vrot.lane.b32.xlu1 %v3050_v50, %s5263_s18 }
0x4208   : > { %v3053_v51 = vpop.permute.xlu1 %3052 }
0x4209   : > { %3055 = vst.msk [vmem:[#allocation4 + $0x7] sm:$0x1] %vm566_vm4, %v3053_v51  ;;  %4617 = vmatmul.mubr.msk.f32.vlgmr.msra.gmra.mrb[26].mxu0 %vm455_vm3, %v3053_v51 }
0x420a   : > { %4873 = vmatpush3.bf16.msra.mxu0 %v5591_v13  ;;  %4638 = vmatprep.mubr.msk.f32.mxu0 %vm5260_vm2, %v5261_v10 }
0x420b   : > { %4874 = vmatprep.subr.bf16.mxu0 %v5259_v7 }
0x420e   : > { %4876 = vmatpush3.bf16.msra.mxu0 %v5598_v17 }
0x420f   : > { %4883 = vmatprep.subr.bf16.mxu0 %v5259_v7 }
0x42dc   : > { %v3125_v53 = vpop.f32.mrb[26].mxu0 }
0x42dd   : > { %v3129_v54 = vadd.f32 %v3125_v53, %v3056_v52  ;;  %v4618_v55 = vpop.f32.mrb[27].mxu0 }
0x42df   : > { %5154 = vtanh.f32 %v3129_v54  ;;  %v4134_v57 = vmul.f32 -1.442695, %v3129_v54 }
0x42e1   : > { %5156 = vpow2.f32 %v4134_v57 }
0x42e9   : > { %v5155_v56 = vpop.eup %5154 }
0x42ea   : > { %3139 = vrot.lane.b32.xlu0 %v5155_v56, %s5262_s17 }
0x42eb   : > { %v5157_v58 = vpop.eup %5156 }
0x42ec   : > { %v3133_v59 = vadd.f32 1.0, %v5157_v58 }
0x42ee   : > { %5158 = vrcp.f32 %v3133_v59 }
0x42f8   : > { %v5159_v60 = vpop.eup %5158 }
0x42f9   : > { %v3137_v0 = vmul.f32 %v5159_v60, %v3044_v47  ;;  %v3365_v47 = vld [vmem:[#allocation5 + $0xb] sm:$0x1] }
0x435c   : > { %v3140_v61 = vpop.permute.xlu0 %3139 }
0x435d   : > { %v3142_v63 = vmul.f32 %v5159_v60, %v3140_v61 }
0x435f   : > { %3144 = vrot.lane.b32.xlu1 %v3142_v63, %s5263_s18 }
0x43d1   : > { %v3145_v1 = vpop.permute.xlu1 %3144 }
0x43d2   : > { %v3147_v2 = vadd.f32 %v3145_v1, %v3137_v0 }
0x43d4   : > { %5160 = vtanh.f32 %v3147_v2 }
0x43de   : > { %v5161_v3 = vpop.eup %5160 }
0x43df   : > { %3150 = vrot.lane.b32.xlu0 %v5161_v3, %s5262_s17 }
0x4451   : > { %v3151_v4 = vpop.permute.xlu0 %3150 }
0x4452   : > { %v3153_v5 = vmul.f32 %v5159_v60, %v3151_v4 }
0x4454   : > { %3155 = vrot.lane.b32.xlu1 %v3153_v5, %s5263_s18 }
0x44c6   : > { %v3156_v6 = vpop.permute.xlu1 %3155 }
0x44c7   : > { %3158 = vst.msk [vmem:[#allocation4 + $0x8] sm:$0x1] %vm566_vm4, %v3156_v6  ;;  %4628 = vmatmul.mubr.msk.f32.vlgmr.msra.gmra.mrb[26].mxu1 %vm455_vm3, %v3156_v6 }
0x44c8   : > { %4879 = vmatpush3.bf16.msra.mxu1 %v5591_v13  ;;  %4649 = vmatprep.mubr.msk.f32.mxu1 %vm5260_vm2, %v5261_v10 }
0x44c9   : > { %4880 = vmatprep.subr.bf16.mxu1 %v5259_v7 }
0x44cc   : > { %4882 = vmatpush3.bf16.msra.mxu1 %v5598_v17 }
0x44cd   : > { %4889 = vmatprep.subr.bf16.mxu1 %v5259_v7 }
0x459a   : > { %v3228_v12 = vpop.f32.mrb[26].mxu1 }
0x459b   : > { %v3232_v14 = vadd.f32 %v3228_v12, %v3159_v9  ;;  %v4629_v15 = vpop.f32.mrb[27].mxu1 }
0x459d   : > { %5162 = vtanh.f32 %v3232_v14  ;;  %v4136_v18 = vmul.f32 -1.442695, %v3232_v14 }
0x459f   : > { %5164 = vpow2.f32 %v4136_v18 }
0x45a7   : > { %v5163_v16 = vpop.eup %5162 }
0x45a8   : > { %3242 = vrot.lane.b32.xlu0 %v5163_v16, %s5262_s17 }
0x45a9   : > { %v5165_v19 = vpop.eup %5164 }
0x45aa   : > { %v3236_v8 = vadd.f32 1.0, %v5165_v19 }
0x45ac   : > { %5166 = vrcp.f32 %v3236_v8 }
0x45b6   : > { %v5167_v20 = vpop.eup %5166 }
0x45b7   : > { %v3240_v23 = vmul.f32 %v5167_v20, %v3147_v2  ;;  %v3468_v2 = vld [vmem:[#allocation5 + $0xc] sm:$0x1] }
0x461a   : > { %v3243_v21 = vpop.permute.xlu0 %3242 }
0x461b   : > { %v3245_v22 = vmul.f32 %v5167_v20, %v3243_v21 }
0x461d   : > { %3247 = vrot.lane.b32.xlu1 %v3245_v22, %s5263_s18 }
0x468f   : > { %v3248_v11 = vpop.permute.xlu1 %3247 }
0x4690   : > { %v3250_v24 = vadd.f32 %v3248_v11, %v3240_v23 }
0x4692   : > { %5168 = vtanh.f32 %v3250_v24 }
0x469c   : > { %v5169_v25 = vpop.eup %5168 }
0x469d   : > { %3253 = vrot.lane.b32.xlu0 %v5169_v25, %s5262_s17 }
0x470f   : > { %v3254_v26 = vpop.permute.xlu0 %3253 }
0x4710   : > { %v3256_v27 = vmul.f32 %v5167_v20, %v3254_v26 }
0x4712   : > { %3258 = vrot.lane.b32.xlu1 %v3256_v27, %s5263_s18 }
0x4784   : > { %v3259_v28 = vpop.permute.xlu1 %3258 }
0x4785   : > { %3261 = vst.msk [vmem:[#allocation4 + $0x9] sm:$0x1] %vm566_vm4, %v3259_v28  ;;  %4639 = vmatmul.mubr.msk.f32.vlgmr.msra.gmra.mrb[28].mxu0 %vm455_vm3, %v3259_v28 }
0x4786   : > { %4885 = vmatpush3.bf16.msra.mxu0 %v5591_v13  ;;  %4660 = vmatprep.mubr.msk.f32.mxu0 %vm5260_vm2, %v5261_v10 }
0x4787   : > { %4886 = vmatprep.subr.bf16.mxu0 %v5259_v7 }
0x478a   : > { %4888 = vmatpush3.bf16.msra.mxu0 %v5598_v17 }
0x478b   : > { %4895 = vmatprep.subr.bf16.mxu0 %v5259_v7 }
0x4858   : > { %v3331_v30 = vpop.f32.mrb[28].mxu0 }
0x4859   : > { %v3335_v31 = vadd.f32 %v3331_v30, %v3262_v29  ;;  %v4640_v32 = vpop.f32.mrb[29].mxu0 }
0x485b   : > { %5170 = vtanh.f32 %v3335_v31  ;;  %v4138_v34 = vmul.f32 -1.442695, %v3335_v31 }
0x485d   : > { %5172 = vpow2.f32 %v4138_v34 }
0x4865   : > { %v5171_v33 = vpop.eup %5170 }
0x4866   : > { %3345 = vrot.lane.b32.xlu0 %v5171_v33, %s5262_s17 }
0x4867   : > { %v5173_v35 = vpop.eup %5172 }
0x4868   : > { %v3339_v36 = vadd.f32 1.0, %v5173_v35 }
0x486a   : > { %5174 = vrcp.f32 %v3339_v36 }
0x4874   : > { %v5175_v37 = vpop.eup %5174 }
0x4875   : > { %v3343_v40 = vmul.f32 %v5175_v37, %v3250_v24  ;;  %v3571_v24 = vld [vmem:[#allocation5 + $0xd] sm:$0x1] }
0x48d8   : > { %v3346_v38 = vpop.permute.xlu0 %3345 }
0x48d9   : > { %v3348_v39 = vmul.f32 %v5175_v37, %v3346_v38  ;;  %v3886_v38 = vld [vmem:[#allocation4] sm:$0xff] }
0x48db   : > { %3350 = vrot.lane.b32.xlu1 %v3348_v39, %s5263_s18  ;;  %v3674_v39 = vld [vmem:[#allocation5 + $0xe] sm:$0x1] }
0x494d   : > { %v3351_v41 = vpop.permute.xlu1 %3350 }
0x494e   : > { %v3353_v42 = vadd.f32 %v3351_v41, %v3343_v40 }
0x4950   : > { %5176 = vtanh.f32 %v3353_v42 }
0x495a   : > { %v5177_v43 = vpop.eup %5176 }
0x495b   : > { %3356 = vrot.lane.b32.xlu0 %v5177_v43, %s5262_s17 }
0x49cd   : > { %v3357_v44 = vpop.permute.xlu0 %3356 }
0x49ce   : > { %v3359_v45 = vmul.f32 %v5175_v37, %v3357_v44 }
0x49d0   : > { %3361 = vrot.lane.b32.xlu1 %v3359_v45, %s5263_s18 }
0x4a42   : > { %v3362_v46 = vpop.permute.xlu1 %3361 }
0x4a43   : > { %3364 = vst.msk [vmem:[#allocation4 + $0xa] sm:$0x1] %vm566_vm4, %v3362_v46  ;;  %4650 = vmatmul.mubr.msk.f32.vlgmr.msra.gmra.mrb[28].mxu1 %vm455_vm3, %v3362_v46 }
0x4a44   : > { %4891 = vmatpush3.bf16.msra.mxu1 %v5591_v13  ;;  %4671 = vmatprep.mubr.msk.f32.mxu1 %vm5260_vm2, %v5261_v10 }
0x4a45   : > { %4892 = vmatprep.subr.bf16.mxu1 %v5259_v7 }
0x4a48   : > { %4894 = vmatpush3.bf16.msra.mxu1 %v5598_v17 }
0x4a49   : > { %4901 = vmatprep.subr.bf16.mxu1 %v5259_v7 }
0x4b16   : > { %v3434_v48 = vpop.f32.mrb[28].mxu1 }
0x4b17   : > { %v3438_v49 = vadd.f32 %v3434_v48, %v3365_v47  ;;  %v4651_v50 = vpop.f32.mrb[29].mxu1 }
0x4b19   : > { %5178 = vtanh.f32 %v3438_v49  ;;  %v4140_v52 = vmul.f32 -1.442695, %v3438_v49 }
0x4b1b   : > { %5180 = vpow2.f32 %v4140_v52 }
0x4b23   : > { %v5179_v51 = vpop.eup %5178 }
0x4b24   : > { %3448 = vrot.lane.b32.xlu0 %v5179_v51, %s5262_s17 }
0x4b25   : > { %v5181_v53 = vpop.eup %5180 }
0x4b26   : > { %v3442_v54 = vadd.f32 1.0, %v5181_v53 }
0x4b28   : > { %5182 = vrcp.f32 %v3442_v54 }
0x4b32   : > { %v5183_v55 = vpop.eup %5182 }
0x4b33   : > { %v3446_v58 = vmul.f32 %v5183_v55, %v3353_v42 }
0x4b96   : > { %v3449_v56 = vpop.permute.xlu0 %3448 }
0x4b97   : > { %v3451_v57 = vmul.f32 %v5183_v55, %v3449_v56 }
0x4b99   : > { %3453 = vrot.lane.b32.xlu1 %v3451_v57, %s5263_s18  ;;  %v3777_v57 = vld [vmem:[#allocation5 + $0xf] sm:$0x1] }
0x4c0b   : > { %v3454_v59 = vpop.permute.xlu1 %3453 }
0x4c0c   : > { %v3456_v60 = vadd.f32 %v3454_v59, %v3446_v58 }
0x4c0e   : > { %5184 = vtanh.f32 %v3456_v60 }
0x4c18   : > { %v5185_v61 = vpop.eup %5184 }
0x4c19   : > { %3459 = vrot.lane.b32.xlu0 %v5185_v61, %s5262_s17 }
0x4c8b   : > { %v3460_v63 = vpop.permute.xlu0 %3459 }
0x4c8c   : > { %v3462_v0 = vmul.f32 %v5183_v55, %v3460_v63 }
0x4c8e   : > { %3464 = vrot.lane.b32.xlu1 %v3462_v0, %s5263_s18 }
0x4d00   : > { %v3465_v1 = vpop.permute.xlu1 %3464 }
0x4d01   : > { %3467 = vst.msk [vmem:[#allocation4 + $0xb] sm:$0x1] %vm566_vm4, %v3465_v1  ;;  %4661 = vmatmul.mubr.msk.f32.vlgmr.msra.gmra.mrb[30].mxu0 %vm455_vm3, %v3465_v1 }
0x4d02   : > { %4897 = vmatpush3.bf16.msra.mxu0 %v5591_v13  ;;  %4682 = vmatprep.mubr.msk.f32.mxu0 %vm5260_vm2, %v5261_v10 }
0x4d03   : > { %4898 = vmatprep.subr.bf16.mxu0 %v5259_v7 }
0x4d06   : > { %4900 = vmatpush3.bf16.msra.mxu0 %v5598_v17 }
0x4dd4   : > { %v3537_v3 = vpop.f32.mrb[30].mxu0 }
0x4dd5   : > { %v3541_v4 = vadd.f32 %v3537_v3, %v3468_v2  ;;  %v4662_v5 = vpop.f32.mrb[31].mxu0 }
0x4dd7   : > { %5186 = vtanh.f32 %v3541_v4  ;;  %v4142_v9 = vmul.f32 -1.442695, %v3541_v4 }
0x4dd9   : > { %5188 = vpow2.f32 %v4142_v9 }
0x4de1   : > { %v5187_v6 = vpop.eup %5186 }
0x4de2   : > { %3551 = vrot.lane.b32.xlu0 %v5187_v6, %s5262_s17 }
0x4de3   : > { %v5189_v12 = vpop.eup %5188 }
0x4de4   : > { %v3545_v14 = vadd.f32 1.0, %v5189_v12 }
0x4de6   : > { %5190 = vrcp.f32 %v3545_v14  ;;  %v3888_v14 = vld [vmem:[%s5839_s7] sm:$0xff] }
0x4df0   : > { %v5191_v15 = vpop.eup %5190 }
0x4df1   : > { %v3549_v19 = vmul.f32 %v5191_v15, %v3456_v60 }
0x4e54   : > { %v3552_v16 = vpop.permute.xlu0 %3551 }
0x4e55   : > { %v3554_v18 = vmul.f32 %v5191_v15, %v3552_v16 }
0x4e57   : > { %3556 = vrot.lane.b32.xlu1 %v3554_v18, %s5263_s18  ;;  %v3890_v18 = vld [vmem:[%s5839_s7 + $0x10] sm:$0xff] }
0x4ec9   : > { %v3557_v8 = vpop.permute.xlu1 %3556 }
0x4eca   : > { %v3559_v20 = vadd.f32 %v3557_v8, %v3549_v19  ;;  %v3891_v19 = vld [vmem:[%s5839_s7 + $0x18] sm:$0xff] }
0x4ecc   : > { %5192 = vtanh.f32 %v3559_v20 }
0x4ed6   : > { %v5193_v21 = vpop.eup %5192 }
0x4ed7   : > { %3562 = vrot.lane.b32.xlu0 %v5193_v21, %s5262_s17 }
0x4f49   : > { %v3563_v22 = vpop.permute.xlu0 %3562 }
0x4f4a   : > { %v3565_v23 = vmul.f32 %v5191_v15, %v3563_v22  ;;  %v3889_v15 = vld [vmem:[%s5839_s7 + $0x8] sm:$0xff] }
0x4f4b   : > { %v4907_v16 = vpack.c.bf16 %v3889_v15, %v3888_v14 }
0x4f4c   : > { %3567 = vrot.lane.b32.xlu1 %v3565_v23, %s5263_s18 }
0x4f4d   : > { %4908 = vmatprep.subr.bf16.mxu0 %v4907_v16 }
0x4fbe   : > { %v3568_v11 = vpop.permute.xlu1 %3567 }
0x4fbf   : > { %3570 = vst.msk [vmem:[#allocation4 + $0xc] sm:$0x1] %vm566_vm4, %v3568_v11  ;;  %4672 = vmatmul.mubr.msk.f32.vlgmr.msra.gmra.mrb[30].mxu1 %vm455_vm3, %v3568_v11 }
0x4fc0   : > { %4903 = vmatpush3.bf16.msra.mxu1 %v5591_v13  ;;  %4693 = vmatprep.mubr.msk.f32.mxu1 %vm5260_vm2, %v5261_v10 }
0x4fc1   : > { %4904 = vmatprep.subr.bf16.mxu1 %v5259_v7 }
0x4fc4   : > { %4906 = vmatpush3.bf16.msra.mxu1 %v5598_v17 }
0x5092   : > { %v3640_v25 = vpop.f32.mrb[30].mxu1 }
0x5093   : > { %v3644_v26 = vadd.f32 %v3640_v25, %v3571_v24  ;;  %v4673_v27 = vpop.f32.mrb[31].mxu1 }
0x5095   : > { %5194 = vtanh.f32 %v3644_v26  ;;  %v4144_v29 = vmul.f32 -1.442695, %v3644_v26 }
0x5097   : > { %5196 = vpow2.f32 %v4144_v29 }
0x509f   : > { %v5195_v28 = vpop.eup %5194 }
0x50a0   : > { %3654 = vrot.lane.b32.xlu0 %v5195_v28, %s5262_s17 }
0x50a1   : > { %v5197_v30 = vpop.eup %5196 }
0x50a2   : > { %v3648_v31 = vadd.f32 1.0, %v5197_v30 }
0x50a4   : > { %5198 = vrcp.f32 %v3648_v31 }
0x50ae   : > { %v5199_v13 = vpop.eup %5198 }
0x50af   : > { %v3652_v7 = vmul.f32 %v5199_v13, %v3559_v20 }
0x5112   : > { %v3655_v32 = vpop.permute.xlu0 %3654 }
0x5113   : > { %v3657_v10 = vmul.f32 %v5199_v13, %v3655_v32 }
0x5115   : > { %3659 = vrot.lane.b32.xlu1 %v3657_v10, %s5263_s18 }
0x5187   : > { %v3660_v17 = vpop.permute.xlu1 %3659 }
0x5188   : > { %v3662_v33 = vadd.f32 %v3660_v17, %v3652_v7 }
0x518a   : > { %5200 = vtanh.f32 %v3662_v33 }
0x5194   : > { %v5201_v34 = vpop.eup %5200 }
0x5195   : > { %3665 = vrot.lane.b32.xlu0 %v5201_v34, %s5262_s17 }
0x5207   : > { %v3666_v35 = vpop.permute.xlu0 %3665 }
0x5208   : > { %v3668_v36 = vmul.f32 %v5199_v13, %v3666_v35 }
0x520a   : > { %3670 = vrot.lane.b32.xlu1 %v3668_v36, %s5263_s18 }
0x527c   : > { %v3671_v37 = vpop.permute.xlu1 %3670 }
0x527d   : > { %3673 = vst.msk [vmem:[#allocation4 + $0xd] sm:$0x1] %vm566_vm4, %v3671_v37  ;;  %4683 = vmatmul.mubr.msk.f32.vlgmr.msra.gmra.mrb[32].mxu0 %vm455_vm3, %v3671_v37 }
0x527e   : > { %4704 = vmatprep.mubr.msk.f32.mxu0 %vm455_vm3, %v3886_v38  ;;  %4910 = vmatpush3.bf16.msra.mxu0 %v4907_v16 }
0x5350   : > { %v3743_v40 = vpop.f32.mrb[32].mxu0 }
0x5351   : > { %v3747_v41 = vadd.f32 %v3743_v40, %v3674_v39  ;;  %v4684_v42 = vpop.f32.mrb[33].mxu0 }
0x5353   : > { %5202 = vtanh.f32 %v3747_v41  ;;  %v4146_v44 = vmul.f32 -1.442695, %v3747_v41 }
0x5355   : > { %5204 = vpow2.f32 %v4146_v44 }
0x535d   : > { %v5203_v43 = vpop.eup %5202 }
0x535e   : > { %3757 = vrot.lane.b32.xlu0 %v5203_v43, %s5262_s17 }
0x535f   : > { %v5205_v45 = vpop.eup %5204 }
0x5360   : > { %v3751_v46 = vadd.f32 1.0, %v5205_v45 }
0x5362   : > { %5206 = vrcp.f32 %v3751_v46 }
0x536c   : > { %v5207_v47 = vpop.eup %5206 }
0x536d   : > { %v3755_v50 = vmul.f32 %v5207_v47, %v3662_v33 }
0x53d0   : > { %v3758_v48 = vpop.permute.xlu0 %3757 }
0x53d1   : > { %v3760_v49 = vmul.f32 %v5207_v47, %v3758_v48 }
0x53d3   : > { %3762 = vrot.lane.b32.xlu1 %v3760_v49, %s5263_s18 }
0x5445   : > { %v3763_v51 = vpop.permute.xlu1 %3762 }
0x5446   : > { %v3765_v52 = vadd.f32 %v3763_v51, %v3755_v50 }
0x5448   : > { %5208 = vtanh.f32 %v3765_v52 }
0x5452   : > { %v5209_v53 = vpop.eup %5208 }
0x5453   : > { %3768 = vrot.lane.b32.xlu0 %v5209_v53, %s5262_s17 }
0x54c5   : > { %v3769_v54 = vpop.permute.xlu0 %3768 }
0x54c6   : > { %v3771_v55 = vmul.f32 %v5207_v47, %v3769_v54 }
0x54c8   : > { %3773 = vrot.lane.b32.xlu1 %v3771_v55, %s5263_s18 }
0x553a   : > { %v3774_v56 = vpop.permute.xlu1 %3773 }
0x553b   : > { %3776 = vst.msk [vmem:[#allocation4 + $0xe] sm:$0x1] %vm566_vm4, %v3774_v56  ;;  %4694 = vmatmul.mubr.msk.f32.vlgmr.msra.gmra.mrb[32].mxu1 %vm455_vm3, %v3774_v56 }
0x560e   : > { %v3846_v58 = vpop.f32.mrb[32].mxu1 }
0x560f   : > { %v3850_v59 = vadd.f32 %v3846_v58, %v3777_v57  ;;  %v4695_v60 = vpop.f32.mrb[33].mxu1 }
0x5611   : > { %5210 = vtanh.f32 %v3850_v59  ;;  %v4148_v63 = vmul.f32 -1.442695, %v3850_v59 }
0x5613   : > { %5212 = vpow2.f32 %v4148_v63 }
0x561b   : > { %v5211_v61 = vpop.eup %5210 }
0x561c   : > { %3860 = vrot.lane.b32.xlu0 %v5211_v61, %s5262_s17 }
0x561d   : > { %v5213_v0 = vpop.eup %5212 }
0x561e   : > { %v3854_v1 = vadd.f32 1.0, %v5213_v0 }
0x5620   : > { %5214 = vrcp.f32 %v3854_v1 }
0x562a   : > { %v5215_v2 = vpop.eup %5214 }
0x562b   : > { %v3858_v5 = vmul.f32 %v5215_v2, %v3765_v52 }
0x568e   : > { %v3861_v3 = vpop.permute.xlu0 %3860 }
0x568f   : > { %v3863_v4 = vmul.f32 %v5215_v2, %v3861_v3 }
0x5691   : > { %3865 = vrot.lane.b32.xlu1 %v3863_v4, %s5263_s18 }
0x5703   : > { %v3866_v6 = vpop.permute.xlu1 %3865 }
0x5704   : > { %v3868_v9 = vadd.f32 %v3866_v6, %v3858_v5 }
0x5706   : > { %5216 = vtanh.f32 %v3868_v9 }
0x5710   : > { %v5217_v12 = vpop.eup %5216 }
0x5711   : > { %3871 = vrot.lane.b32.xlu0 %v5217_v12, %s5262_s17 }
0x5715   : > { %2115 = vrot.lane.b32.xlu0 %v5566_v62, %s5264_s24  ;;  %v4911_v62 = vpack.c.bf16 %v3891_v19, %v3890_v18 }
0x5717   : > { %4912 = vmatprep.subr.bf16.mxu0 %v4911_v62 }
0x5718   : > { %4914 = vmatpush3.bf16.msra.mxu0 %v4911_v62 }
0x5783   : > { %v3872_v8 = vpop.permute.xlu0 %3871 }
0x5784   : > { %v3874_v20 = vmul.f32 %v5215_v2, %v3872_v8 }
0x5786   : > { %3876 = vrot.lane.b32.xlu1 %v3874_v20, %s5263_s18 }
0x5787   : > { %v2116_v21 = vpop.permute.xlu0 %2115 }
0x5788   : > { %2118 = vst.msk [vmem:[#allocation3] sm:$0x1] %vm566_vm4, %v2116_v21 }
0x578a   : > { %3882 = vrot.lane.b32.xlu1 %v3868_v9, %s5264_s24 }
0x57f8   : > { %v3877_v22 = vpop.permute.xlu1 %3876 }
0x57f9   : > { %3879 = vst.msk [vmem:[#allocation4 + $0xf] sm:$0x1] %vm566_vm4, %v3877_v22  ;;  %3880 = vst.msk [vmem:[#allocation2 + $0x1] sm:$0x1] %vm566_vm4, %v3877_v22 }
0x57fc   : > { %v3883_v23 = vpop.permute.xlu1 %3882 }
0x57fd   : > { %3885 = vst.msk [vmem:[#allocation3 + $0x1] sm:$0x1] %vm566_vm4, %v3883_v23 }
0x5800   : > { %v3887_v11 = vld [vmem:[#allocation4 + $0x8] sm:$0xff] }
0x5801   : > { %4705 = vmatmul.mubr.msk.f32.vlgmr.msra.gmra.mrb[34].mxu0 %vm455_vm3, %v3887_v11 }
0x58d4   : > { %v4706_v24 = vpop.f32.mrb[34].mxu0 }
0x58d5   : > { %3974 = vst.msk [vmem:[%s5346_s21 + $0x8] sm:$0xff] %vm368_vm1, %v4706_v24  ;;  %v3964_v25 = vpop.f32.mrb[35].mxu0 }
0x58d6   : > { %3973 = vst.msk [vmem:[%s5346_s21] sm:$0xff] %vm368_vm1, %v3964_v25 }
0x58d7 PF: > { %s18_s9 = sadd.s32 1, %s5256_s9   ;;  %s5841_s27 = smov %s5248_s29 }
0x58d8   : > { %p15_p8 = scmp.ge.s32.totalorder %s18_s9, 6   ;;  %s5842_s28 = smov %s5252_s30 }
0x58d9   : > { %s5843_s29 = smov %s5846_s10  ;;  %s5844_s30 = smov %s5850_s11 }
0x58da   :  { %17 = sbr.rel (!%p15_p8) target bundleno = 3 (0x3), region = 88 }

</bundles_post_ra>
